<compile_context>
chip_gen: v7x
topology: tpu7x:2x2x1
jax: 0.10.0
libtpu: 0.0.40
codegen_flags: <defaults>
</compile_context>

<pallas_src>
import functools

import numpy as np
import jax
import jax.numpy as jnp
from jax.experimental import pallas as pl
from jax.experimental.pallas import tpu as pltpu


def _postres2d_kernel(x_ref, w1_ref, sb1_ref, w2_ref, sb2_ref, ws_ref, sbs_ref,
                      out_ref, xpad_ref, ypad_ref, *, has_shortcut):
    # x_ref:    (1, H, W, Cin)   one batch element, NHWC
    # w1_ref:   (9, Cin, Cout)   conv1 3x3 taps (dy*3+dx major)
    # sb1_ref:  (2, Cout)        folded BN1 [scale; bias] (conv bias folded in)
    # w2_ref:   (9, Cout, Cout)  conv2 3x3 taps
    # sb2_ref:  (2, Cout)
    # ws_ref:   (Cin, Cout)      shortcut 1x1 conv (unused if has_shortcut=False)
    # sbs_ref:  (2, Cout)
    # out_ref:  (1, H, W, Cout)
    # xpad_ref: VMEM (H+2, W+2, Cin)  zero-padded input tile
    # ypad_ref: VMEM (H+2, W+2, Cout) zero-padded conv1 activation tile
    _, H, W, Cin = x_ref.shape
    Cout = out_ref.shape[3]

    x = x_ref[0].astype(jnp.float32)                     # (H, W, Cin)

    # Build the zero-padded input tile entirely in VMEM.
    xpad_ref[...] = jnp.zeros_like(xpad_ref)
    xpad_ref[pl.ds(1, H), pl.ds(1, W), :] = x

    scale1 = sb1_ref[0:1, :]
    bias1 = sb1_ref[1:2, :]
    scale2 = sb2_ref[0:1, :]
    bias2 = sb2_ref[1:2, :]

    # conv1 (3x3, pad=1, stride=1) as 9 shifted MXU matmuls, f32 accumulate.
    acc1 = jnp.zeros((H * W, Cout), jnp.float32)
    for k in range(9):
        dy, dx = divmod(k, 3)
        patch = xpad_ref[pl.ds(dy, H), pl.ds(dx, W), :].reshape(H * W, Cin)
        acc1 = acc1 + jnp.dot(patch, w1_ref[k].astype(jnp.float32),
                              preferred_element_type=jnp.float32)
    y1 = jnp.maximum(acc1 * scale1 + bias1, 0.0)          # BN1 + ReLU

    # conv2 needs a zero-padded copy of y1 (kept in VMEM, never hits HBM).
    ypad_ref[...] = jnp.zeros_like(ypad_ref)
    ypad_ref[pl.ds(1, H), pl.ds(1, W), :] = y1.reshape(H, W, Cout)

    acc2 = jnp.zeros((H * W, Cout), jnp.float32)
    for k in range(9):
        dy, dx = divmod(k, 3)
        patch = ypad_ref[pl.ds(dy, H), pl.ds(dx, W), :].reshape(H * W, Cout)
        acc2 = acc2 + jnp.dot(patch, w2_ref[k].astype(jnp.float32),
                              preferred_element_type=jnp.float32)
    y2 = acc2 * scale2 + bias2                            # BN2

    if has_shortcut:
        res = jnp.dot(x.reshape(H * W, Cin), ws_ref[...].astype(jnp.float32),
                      preferred_element_type=jnp.float32)
        res = res * sbs_ref[0:1, :] + sbs_ref[1:2, :]     # 1x1 conv + BN
    else:
        res = x.reshape(H * W, Cin)                       # identity (Cin == Cout)

    out = jnp.maximum(y2 + res, 0.0)
    out_ref[0] = out.reshape(H, W, Cout).astype(out_ref.dtype)


def postres2d_forward(x, params, *, has_shortcut):
    """PostRes2d forward (stride=1, inference BN). x: (N, H, W, Cin) NHWC."""
    N, H, W, Cin = x.shape
    w1 = params["w1"]                                     # (3, 3, Cin, Cout)
    Cout = w1.shape[-1]
    eps = 1e-5

    def fold(bn, conv_bias):
        gamma, beta, mean, var = bn
        scale = gamma / jnp.sqrt(var + eps)
        bias = (conv_bias - mean) * scale + beta
        return jnp.stack([scale, bias]).astype(jnp.float32)   # (2, Cout)

    w1_t = w1.reshape(9, Cin, Cout).astype(jnp.float32)
    w2_t = params["w2"].reshape(9, Cout, Cout).astype(jnp.float32)
    sb1 = fold(params["bn1"], params["b1"])
    sb2 = fold(params["bn2"], params["b2"])
    if has_shortcut:
        ws_t = params["ws"].reshape(Cin, Cout).astype(jnp.float32)
        sbs = fold(params["bns"], params["bs"])
    else:
        assert Cin == Cout, "identity shortcut requires n_in == n_out"
        ws_t = jnp.zeros((Cin, Cout), jnp.float32)        # unused
        sbs = jnp.zeros((2, Cout), jnp.float32)           # unused

    kernel = functools.partial(_postres2d_kernel, has_shortcut=has_shortcut)

    return pl.pallas_call(
        kernel,
        out_shape=jax.ShapeDtypeStruct((N, H, W, Cout), x.dtype),
        grid=(N,),
        in_specs=[
            pl.BlockSpec((1, H, W, Cin), lambda n: (n, 0, 0, 0)),
            pl.BlockSpec((9, Cin, Cout), lambda n: (0, 0, 0)),
            pl.BlockSpec((2, Cout), lambda n: (0, 0)),
            pl.BlockSpec((9, Cout, Cout), lambda n: (0, 0, 0)),
            pl.BlockSpec((2, Cout), lambda n: (0, 0)),
            pl.BlockSpec((Cin, Cout), lambda n: (0, 0)),
            pl.BlockSpec((2, Cout), lambda n: (0, 0)),
        ],
        out_specs=pl.BlockSpec((1, H, W, Cout), lambda n: (n, 0, 0, 0)),
        scratch_shapes=[
            pltpu.VMEM((H + 2, W + 2, Cin), jnp.float32),
            pltpu.VMEM((H + 2, W + 2, Cout), jnp.float32),
        ],
        compiler_params=pltpu.CompilerParams(
            dimension_semantics=("parallel",)),
    )(x, w1_t, sb1, w2_t, sb2, ws_t, sbs)


def _reference_postres2d(x, params, has_shortcut, eps=1e-5):
    """Pure-JAX replica of PostRes2d.forward (eval-mode BN, stride=1)."""
    dn = ("NHWC", "HWIO", "NHWC")

    def conv(inp, w, b):
        y = jax.lax.conv_general_dilated(inp, w, (1, 1), "SAME",
                                         dimension_numbers=dn)
        return y + b

    def bn(y, p):
        gamma, beta, mean, var = p
        return (y - mean) / jnp.sqrt(var + eps) * gamma + beta

    out = jnp.maximum(bn(conv(x, params["w1"], params["b1"]), params["bn1"]), 0.0)
    out = bn(conv(out, params["w2"], params["b2"]), params["bn2"])
    if has_shortcut:
        res = bn(conv(x, params["ws"], params["bs"]), params["bns"])
    else:
        res = x
    return jnp.maximum(out + res, 0.0)


def _make_params(key, cin, cout, has_shortcut):
    ks = jax.random.split(key, 9)

    def bn_params(k):
        k1, k2, k3, k4 = jax.random.split(k, 4)
        gamma = jax.random.uniform(k1, (cout,), jnp.float32, 0.5, 1.5)
        beta = 0.1 * jax.random.normal(k2, (cout,), jnp.float32)
        mean = 0.1 * jax.random.normal(k3, (cout,), jnp.float32)
        var = jax.random.uniform(k4, (cout,), jnp.float32, 0.5, 1.5)
        return (gamma, beta, mean, var)

    p = {
        "w1": 0.3 * jax.random.normal(ks[0], (3, 3, cin, cout), jnp.float32),
        "b1": 0.1 * jax.random.normal(ks[1], (cout,), jnp.float32),
        "bn1": bn_params(ks[2]),
        "w2": 0.3 * jax.random.normal(ks[3], (3, 3, cout, cout), jnp.float32),
        "b2": 0.1 * jax.random.normal(ks[4], (cout,), jnp.float32),
        "bn2": bn_params(ks[5]),
    }
    if has_shortcut:
        p["ws"] = 0.3 * jax.random.normal(ks[6], (1, 1, cin, cout), jnp.float32)
        p["bs"] = 0.1 * jax.random.normal(ks[7], (cout,), jnp.float32)
        p["bns"] = bn_params(ks[8])
    return p


if __name__ == "__main__":
    key = jax.random.PRNGKey(0)
    k_x1, k_p1, k_x2, k_p2 = jax.random.split(key, 4)

    # Case 1: n_in != n_out -> conv1x1 + BN shortcut path.
    N, H, W, Cin, Cout = 2, 16, 16, 4, 8
    x1 = jax.random.normal(k_x1, (N, H, W, Cin), jnp.float32)
    p1 = _make_params(k_p1, Cin, Cout, has_shortcut=True)
    got1 = jax.block_until_ready(postres2d_forward(x1, p1, has_shortcut=True))
    ref1 = jax.block_until_ready(_reference_postres2d(x1, p1, True))
    err1 = float(np.max(np.abs(np.asarray(got1) - np.asarray(ref1))))
    assert got1.shape == (N, H, W, Cout)
    assert np.allclose(np.asarray(got1), np.asarray(ref1),
                       atol=1e-3, rtol=1e-3), err1
    assert np.all(np.isfinite(np.asarray(got1)))

    # Case 2: n_in == n_out, stride=1 -> identity shortcut path.
    C = 8
    x2 = jax.random.normal(k_x2, (N, H, W, C), jnp.float32)
    p2 = _make_params(k_p2, C, C, has_shortcut=False)
    got2 = jax.block_until_ready(postres2d_forward(x2, p2, has_shortcut=False))
    ref2 = jax.block_until_ready(_reference_postres2d(x2, p2, False))
    err2 = float(np.max(np.abs(np.asarray(got2) - np.asarray(ref2))))
    assert np.allclose(np.asarray(got2), np.asarray(ref2),
                       atol=1e-3, rtol=1e-3), err2
    assert np.all(np.isfinite(np.asarray(got2)))

    print("KERNEL_OK")
</pallas_src>

<mosaic_0001>
module attributes {stable_mosaic.version = 11 : i64} {
  func.func @_postres2d_kernel(%arg0: i32, %arg1: memref<1x16x16x4xf32, #tpu.memory_space<vmem>>, %arg2: memref<9x4x8xf32, #tpu.memory_space<vmem>>, %arg3: memref<2x8xf32, #tpu.memory_space<vmem>>, %arg4: memref<9x8x8xf32, #tpu.memory_space<vmem>>, %arg5: memref<2x8xf32, #tpu.memory_space<vmem>>, %arg6: memref<4x8xf32, #tpu.memory_space<vmem>>, %arg7: memref<2x8xf32, #tpu.memory_space<vmem>>, %arg8: memref<1x16x16x8xf32, #tpu.memory_space<vmem>>, %arg9: memref<18x18x4xf32, #tpu.memory_space<vmem>>, %arg10: memref<18x18x8xf32, #tpu.memory_space<vmem>>) attributes {dimension_semantics = [#tpu.dimension_semantics<parallel>], iteration_bounds = array<i64: 2>, scalar_prefetch = 0 : i64, scratch_operands = 2 : i64, tpu.core_type = #tpu.core_type<tc>, window_params = [{transform_indices = @transform_0, window_bounds = array<i64: 1, 16, 16, 4>}, {pipeline_mode = #tpu.pipeline_mode<synchronous>, transform_indices = @transform_1, window_bounds = array<i64: 9, 4, 8>}, {pipeline_mode = #tpu.pipeline_mode<synchronous>, transform_indices = @transform_2, window_bounds = array<i64: 2, 8>}, {pipeline_mode = #tpu.pipeline_mode<synchronous>, transform_indices = @transform_3, window_bounds = array<i64: 9, 8, 8>}, {pipeline_mode = #tpu.pipeline_mode<synchronous>, transform_indices = @transform_4, window_bounds = array<i64: 2, 8>}, {pipeline_mode = #tpu.pipeline_mode<synchronous>, transform_indices = @transform_5, window_bounds = array<i64: 4, 8>}, {pipeline_mode = #tpu.pipeline_mode<synchronous>, transform_indices = @transform_6, window_bounds = array<i64: 2, 8>}, {transform_indices = @transform_7, window_bounds = array<i64: 1, 16, 16, 8>}]} {
    %c0 = arith.constant 0 : index
    %c0_0 = arith.constant 0 : index
    %c0_1 = arith.constant 0 : index
    %c0_2 = arith.constant 0 : index
    %0 = vector.load %arg1[%c0, %c0_0, %c0_1, %c0_2] : memref<1x16x16x4xf32, #tpu.memory_space<vmem>>, vector<1x16x16x4xf32>
    %1 = vector.shape_cast %0 : vector<1x16x16x4xf32> to vector<16x16x4xf32>
    %cst = arith.constant 0.000000e+00 : f32
    %2 = vector.broadcast %cst : f32 to vector<18x18x4xf32>
    %c0_3 = arith.constant 0 : index
    %c0_4 = arith.constant 0 : index
    %c0_5 = arith.constant 0 : index
    %3 = vector.load %arg9[%c0_3, %c0_4, %c0_5] : memref<18x18x4xf32, #tpu.memory_space<vmem>>, vector<18x18x4xf32>
    tpu.vector_store %arg9[%c0_3, %c0_4, %c0_5], %2 {strides = array<i32>} : memref<18x18x4xf32, #tpu.memory_space<vmem>>, vector<18x18x4xf32>,
    %c1 = arith.constant 1 : index
    %c1_6 = arith.constant 1 : index
    %c0_7 = arith.constant 0 : index
    %4 = vector.load %arg9[%c1, %c1_6, %c0_7] : memref<18x18x4xf32, #tpu.memory_space<vmem>>, vector<16x16x4xf32>
    tpu.vector_store %arg9[%c1, %c1_6, %c0_7], %1 {strides = array<i32>} : memref<18x18x4xf32, #tpu.memory_space<vmem>>, vector<16x16x4xf32>,
    %c0_8 = arith.constant 0 : index
    %c0_9 = arith.constant 0 : index
    %5 = vector.load %arg3[%c0_8, %c0_9] : memref<2x8xf32, #tpu.memory_space<vmem>>, vector<1x8xf32>
    %c1_10 = arith.constant 1 : index
    %c0_11 = arith.constant 0 : index
    %6 = vector.load %arg3[%c1_10, %c0_11] : memref<2x8xf32, #tpu.memory_space<vmem>>, vector<1x8xf32>
    %c0_12 = arith.constant 0 : index
    %c0_13 = arith.constant 0 : index
    %7 = vector.load %arg5[%c0_12, %c0_13] : memref<2x8xf32, #tpu.memory_space<vmem>>, vector<1x8xf32>
    %c1_14 = arith.constant 1 : index
    %c0_15 = arith.constant 0 : index
    %8 = vector.load %arg5[%c1_14, %c0_15] : memref<2x8xf32, #tpu.memory_space<vmem>>, vector<1x8xf32>
    %cst_16 = arith.constant 0.000000e+00 : f32
    %9 = vector.broadcast %cst_16 : f32 to vector<256x8xf32>
    %c0_17 = arith.constant 0 : index
    %c0_18 = arith.constant 0 : index
    %c0_19 = arith.constant 0 : index
    %10 = vector.load %arg9[%c0_17, %c0_18, %c0_19] : memref<18x18x4xf32, #tpu.memory_space<vmem>>, vector<16x16x4xf32>
    %11 = vector.shape_cast %10 : vector<16x16x4xf32> to vector<256x4xf32>
    %c0_20 = arith.constant 0 : index
    %c0_21 = arith.constant 0 : index
    %c0_22 = arith.constant 0 : index
    %12 = vector.load %arg2[%c0_20, %c0_21, %c0_22] : memref<9x4x8xf32, #tpu.memory_space<vmem>>, vector<1x4x8xf32>
    %13 = vector.shape_cast %12 : vector<1x4x8xf32> to vector<4x8xf32>
    %cst_23 = arith.constant dense<0.000000e+00> : vector<256x8xf32>
    %14 = tpu.matmul %11, %13, %cst_23 {dimension_numbers = #tpu.dot_dimension_numbers<[1], [0], [0], [1], [0, 0, 1, 1], [], []>} : vector<256x4xf32>, vector<4x8xf32>, vector<256x8xf32> -> vector<256x8xf32>
    %15 = arith.addf %9, %14 : vector<256x8xf32>
    %c0_24 = arith.constant 0 : index
    %c1_25 = arith.constant 1 : index
    %c0_26 = arith.constant 0 : index
    %16 = vector.load %arg9[%c0_24, %c1_25, %c0_26] : memref<18x18x4xf32, #tpu.memory_space<vmem>>, vector<16x16x4xf32>
    %17 = vector.shape_cast %16 : vector<16x16x4xf32> to vector<256x4xf32>
    %c1_27 = arith.constant 1 : index
    %c0_28 = arith.constant 0 : index
    %c0_29 = arith.constant 0 : index
    %18 = vector.load %arg2[%c1_27, %c0_28, %c0_29] : memref<9x4x8xf32, #tpu.memory_space<vmem>>, vector<1x4x8xf32>
    %19 = vector.shape_cast %18 : vector<1x4x8xf32> to vector<4x8xf32>
    %cst_30 = arith.constant dense<0.000000e+00> : vector<256x8xf32>
    %20 = tpu.matmul %17, %19, %cst_30 {dimension_numbers = #tpu.dot_dimension_numbers<[1], [0], [0], [1], [0, 0, 1, 1], [], []>} : vector<256x4xf32>, vector<4x8xf32>, vector<256x8xf32> -> vector<256x8xf32>
    %21 = arith.addf %15, %20 : vector<256x8xf32>
    %c0_31 = arith.constant 0 : index
    %c2 = arith.constant 2 : index
    %c0_32 = arith.constant 0 : index
    %22 = vector.load %arg9[%c0_31, %c2, %c0_32] : memref<18x18x4xf32, #tpu.memory_space<vmem>>, vector<16x16x4xf32>
    %23 = vector.shape_cast %22 : vector<16x16x4xf32> to vector<256x4xf32>
    %c2_33 = arith.constant 2 : index
    %c0_34 = arith.constant 0 : index
    %c0_35 = arith.constant 0 : index
    %24 = vector.load %arg2[%c2_33, %c0_34, %c0_35] : memref<9x4x8xf32, #tpu.memory_space<vmem>>, vector<1x4x8xf32>
    %25 = vector.shape_cast %24 : vector<1x4x8xf32> to vector<4x8xf32>
    %cst_36 = arith.constant dense<0.000000e+00> : vector<256x8xf32>
    %26 = tpu.matmul %23, %25, %cst_36 {dimension_numbers = #tpu.dot_dimension_numbers<[1], [0], [0], [1], [0, 0, 1, 1], [], []>} : vector<256x4xf32>, vector<4x8xf32>, vector<256x8xf32> -> vector<256x8xf32>
    %27 = arith.addf %21, %26 : vector<256x8xf32>
    %c1_37 = arith.constant 1 : index
    %c0_38 = arith.constant 0 : index
    %c0_39 = arith.constant 0 : index
    %28 = vector.load %arg9[%c1_37, %c0_38, %c0_39] : memref<18x18x4xf32, #tpu.memory_space<vmem>>, vector<16x16x4xf32>
    %29 = vector.shape_cast %28 : vector<16x16x4xf32> to vector<256x4xf32>
    %c3 = arith.constant 3 : index
    %c0_40 = arith.constant 0 : index
    %c0_41 = arith.constant 0 : index
    %30 = vector.load %arg2[%c3, %c0_40, %c0_41] : memref<9x4x8xf32, #tpu.memory_space<vmem>>, vector<1x4x8xf32>
    %31 = vector.shape_cast %30 : vector<1x4x8xf32> to vector<4x8xf32>
    %cst_42 = arith.constant dense<0.000000e+00> : vector<256x8xf32>
    %32 = tpu.matmul %29, %31, %cst_42 {dimension_numbers = #tpu.dot_dimension_numbers<[1], [0], [0], [1], [0, 0, 1, 1], [], []>} : vector<256x4xf32>, vector<4x8xf32>, vector<256x8xf32> -> vector<256x8xf32>
    %33 = arith.addf %27, %32 : vector<256x8xf32>
    %c1_43 = arith.constant 1 : index
    %c1_44 = arith.constant 1 : index
    %c0_45 = arith.constant 0 : index
    %34 = vector.load %arg9[%c1_43, %c1_44, %c0_45] : memref<18x18x4xf32, #tpu.memory_space<vmem>>, vector<16x16x4xf32>
    %35 = vector.shape_cast %34 : vector<16x16x4xf32> to vector<256x4xf32>
    %c4 = arith.constant 4 : index
    %c0_46 = arith.constant 0 : index
    %c0_47 = arith.constant 0 : index
    %36 = vector.load %arg2[%c4, %c0_46, %c0_47] : memref<9x4x8xf32, #tpu.memory_space<vmem>>, vector<1x4x8xf32>
    %37 = vector.shape_cast %36 : vector<1x4x8xf32> to vector<4x8xf32>
    %cst_48 = arith.constant dense<0.000000e+00> : vector<256x8xf32>
    %38 = tpu.matmul %35, %37, %cst_48 {dimension_numbers = #tpu.dot_dimension_numbers<[1], [0], [0], [1], [0, 0, 1, 1], [], []>} : vector<256x4xf32>, vector<4x8xf32>, vector<256x8xf32> -> vector<256x8xf32>
    %39 = arith.addf %33, %38 : vector<256x8xf32>
    %c1_49 = arith.constant 1 : index
    %c2_50 = arith.constant 2 : index
    %c0_51 = arith.constant 0 : index
    %40 = vector.load %arg9[%c1_49, %c2_50, %c0_51] : memref<18x18x4xf32, #tpu.memory_space<vmem>>, vector<16x16x4xf32>
    %41 = vector.shape_cast %40 : vector<16x16x4xf32> to vector<256x4xf32>
    %c5 = arith.constant 5 : index
    %c0_52 = arith.constant 0 : index
    %c0_53 = arith.constant 0 : index
    %42 = vector.load %arg2[%c5, %c0_52, %c0_53] : memref<9x4x8xf32, #tpu.memory_space<vmem>>, vector<1x4x8xf32>
    %43 = vector.shape_cast %42 : vector<1x4x8xf32> to vector<4x8xf32>
    %cst_54 = arith.constant dense<0.000000e+00> : vector<256x8xf32>
    %44 = tpu.matmul %41, %43, %cst_54 {dimension_numbers = #tpu.dot_dimension_numbers<[1], [0], [0], [1], [0, 0, 1, 1], [], []>} : vector<256x4xf32>, vector<4x8xf32>, vector<256x8xf32> -> vector<256x8xf32>
    %45 = arith.addf %39, %44 : vector<256x8xf32>
    %c2_55 = arith.constant 2 : index
    %c0_56 = arith.constant 0 : index
    %c0_57 = arith.constant 0 : index
    %46 = vector.load %arg9[%c2_55, %c0_56, %c0_57] : memref<18x18x4xf32, #tpu.memory_space<vmem>>, vector<16x16x4xf32>
    %47 = vector.shape_cast %46 : vector<16x16x4xf32> to vector<256x4xf32>
    %c6 = arith.constant 6 : index
    %c0_58 = arith.constant 0 : index
    %c0_59 = arith.constant 0 : index
    %48 = vector.load %arg2[%c6, %c0_58, %c0_59] : memref<9x4x8xf32, #tpu.memory_space<vmem>>, vector<1x4x8xf32>
    %49 = vector.shape_cast %48 : vector<1x4x8xf32> to vector<4x8xf32>
    %cst_60 = arith.constant dense<0.000000e+00> : vector<256x8xf32>
    %50 = tpu.matmul %47, %49, %cst_60 {dimension_numbers = #tpu.dot_dimension_numbers<[1], [0], [0], [1], [0, 0, 1, 1], [], []>} : vector<256x4xf32>, vector<4x8xf32>, vector<256x8xf32> -> vector<256x8xf32>
    %51 = arith.addf %45, %50 : vector<256x8xf32>
    %c2_61 = arith.constant 2 : index
    %c1_62 = arith.constant 1 : index
    %c0_63 = arith.constant 0 : index
    %52 = vector.load %arg9[%c2_61, %c1_62, %c0_63] : memref<18x18x4xf32, #tpu.memory_space<vmem>>, vector<16x16x4xf32>
    %53 = vector.shape_cast %52 : vector<16x16x4xf32> to vector<256x4xf32>
    %c7 = arith.constant 7 : index
    %c0_64 = arith.constant 0 : index
    %c0_65 = arith.constant 0 : index
    %54 = vector.load %arg2[%c7, %c0_64, %c0_65] : memref<9x4x8xf32, #tpu.memory_space<vmem>>, vector<1x4x8xf32>
    %55 = vector.shape_cast %54 : vector<1x4x8xf32> to vector<4x8xf32>
    %cst_66 = arith.constant dense<0.000000e+00> : vector<256x8xf32>
    %56 = tpu.matmul %53, %55, %cst_66 {dimension_numbers = #tpu.dot_dimension_numbers<[1], [0], [0], [1], [0, 0, 1, 1], [], []>} : vector<256x4xf32>, vector<4x8xf32>, vector<256x8xf32> -> vector<256x8xf32>
    %57 = arith.addf %51, %56 : vector<256x8xf32>
    %c2_67 = arith.constant 2 : index
    %c2_68 = arith.constant 2 : index
    %c0_69 = arith.constant 0 : index
    %58 = vector.load %arg9[%c2_67, %c2_68, %c0_69] : memref<18x18x4xf32, #tpu.memory_space<vmem>>, vector<16x16x4xf32>
    %59 = vector.shape_cast %58 : vector<16x16x4xf32> to vector<256x4xf32>
    %c8 = arith.constant 8 : index
    %c0_70 = arith.constant 0 : index
    %c0_71 = arith.constant 0 : index
    %60 = vector.load %arg2[%c8, %c0_70, %c0_71] : memref<9x4x8xf32, #tpu.memory_space<vmem>>, vector<1x4x8xf32>
    %61 = vector.shape_cast %60 : vector<1x4x8xf32> to vector<4x8xf32>
    %cst_72 = arith.constant dense<0.000000e+00> : vector<256x8xf32>
    %62 = tpu.matmul %59, %61, %cst_72 {dimension_numbers = #tpu.dot_dimension_numbers<[1], [0], [0], [1], [0, 0, 1, 1], [], []>} : vector<256x4xf32>, vector<4x8xf32>, vector<256x8xf32> -> vector<256x8xf32>
    %63 = arith.addf %57, %62 : vector<256x8xf32>
    %64 = vector.broadcast %5 : vector<1x8xf32> to vector<256x8xf32>
    %65 = arith.mulf %63, %64 : vector<256x8xf32>
    %66 = vector.broadcast %6 : vector<1x8xf32> to vector<256x8xf32>
    %67 = arith.addf %65, %66 : vector<256x8xf32>
    %cst_73 = arith.constant 0.000000e+00 : f32
    %68 = vector.broadcast %cst_73 : f32 to vector<256x8xf32>
    %69 = arith.maximumf %67, %68 : vector<256x8xf32>
    %cst_74 = arith.constant 0.000000e+00 : f32
    %70 = vector.broadcast %cst_74 : f32 to vector<18x18x8xf32>
    %c0_75 = arith.constant 0 : index
    %c0_76 = arith.constant 0 : index
    %c0_77 = arith.constant 0 : index
    %71 = vector.load %arg10[%c0_75, %c0_76, %c0_77] : memref<18x18x8xf32, #tpu.memory_space<vmem>>, vector<18x18x8xf32>
    tpu.vector_store %arg10[%c0_75, %c0_76, %c0_77], %70 {strides = array<i32>} : memref<18x18x8xf32, #tpu.memory_space<vmem>>, vector<18x18x8xf32>,
    %72 = vector.shape_cast %69 : vector<256x8xf32> to vector<16x16x8xf32>
    %c1_78 = arith.constant 1 : index
    %c1_79 = arith.constant 1 : index
    %c0_80 = arith.constant 0 : index
    %73 = vector.load %arg10[%c1_78, %c1_79, %c0_80] : memref<18x18x8xf32, #tpu.memory_space<vmem>>, vector<16x16x8xf32>
    tpu.vector_store %arg10[%c1_78, %c1_79, %c0_80], %72 {strides = array<i32>} : memref<18x18x8xf32, #tpu.memory_space<vmem>>, vector<16x16x8xf32>,
    %cst_81 = arith.constant 0.000000e+00 : f32
    %74 = vector.broadcast %cst_81 : f32 to vector<256x8xf32>
    %c0_82 = arith.constant 0 : index
    %c0_83 = arith.constant 0 : index
    %c0_84 = arith.constant 0 : index
    %75 = vector.load %arg10[%c0_82, %c0_83, %c0_84] : memref<18x18x8xf32, #tpu.memory_space<vmem>>, vector<16x16x8xf32>
    %76 = vector.shape_cast %75 : vector<16x16x8xf32> to vector<256x8xf32>
    %c0_85 = arith.constant 0 : index
    %c0_86 = arith.constant 0 : index
    %c0_87 = arith.constant 0 : index
    %77 = vector.load %arg4[%c0_85, %c0_86, %c0_87] : memref<9x8x8xf32, #tpu.memory_space<vmem>>, vector<1x8x8xf32>
    %78 = vector.shape_cast %77 : vector<1x8x8xf32> to vector<8x8xf32>
    %cst_88 = arith.constant dense<0.000000e+00> : vector<256x8xf32>
    %79 = tpu.matmul %76, %78, %cst_88 {dimension_numbers = #tpu.dot_dimension_numbers<[1], [0], [0], [1], [0, 0, 1, 1], [], []>} : vector<256x8xf32>, vector<8x8xf32>, vector<256x8xf32> -> vector<256x8xf32>
    %80 = arith.addf %74, %79 : vector<256x8xf32>
    %c0_89 = arith.constant 0 : index
    %c1_90 = arith.constant 1 : index
    %c0_91 = arith.constant 0 : index
    %81 = vector.load %arg10[%c0_89, %c1_90, %c0_91] : memref<18x18x8xf32, #tpu.memory_space<vmem>>, vector<16x16x8xf32>
    %82 = vector.shape_cast %81 : vector<16x16x8xf32> to vector<256x8xf32>
    %c1_92 = arith.constant 1 : index
    %c0_93 = arith.constant 0 : index
    %c0_94 = arith.constant 0 : index
    %83 = vector.load %arg4[%c1_92, %c0_93, %c0_94] : memref<9x8x8xf32, #tpu.memory_space<vmem>>, vector<1x8x8xf32>
    %84 = vector.shape_cast %83 : vector<1x8x8xf32> to vector<8x8xf32>
    %cst_95 = arith.constant dense<0.000000e+00> : vector<256x8xf32>
    %85 = tpu.matmul %82, %84, %cst_95 {dimension_numbers = #tpu.dot_dimension_numbers<[1], [0], [0], [1], [0, 0, 1, 1], [], []>} : vector<256x8xf32>, vector<8x8xf32>, vector<256x8xf32> -> vector<256x8xf32>
    %86 = arith.addf %80, %85 : vector<256x8xf32>
    %c0_96 = arith.constant 0 : index
    %c2_97 = arith.constant 2 : index
    %c0_98 = arith.constant 0 : index
    %87 = vector.load %arg10[%c0_96, %c2_97, %c0_98] : memref<18x18x8xf32, #tpu.memory_space<vmem>>, vector<16x16x8xf32>
    %88 = vector.shape_cast %87 : vector<16x16x8xf32> to vector<256x8xf32>
    %c2_99 = arith.constant 2 : index
    %c0_100 = arith.constant 0 : index
    %c0_101 = arith.constant 0 : index
    %89 = vector.load %arg4[%c2_99, %c0_100, %c0_101] : memref<9x8x8xf32, #tpu.memory_space<vmem>>, vector<1x8x8xf32>
    %90 = vector.shape_cast %89 : vector<1x8x8xf32> to vector<8x8xf32>
    %cst_102 = arith.constant dense<0.000000e+00> : vector<256x8xf32>
    %91 = tpu.matmul %88, %90, %cst_102 {dimension_numbers = #tpu.dot_dimension_numbers<[1], [0], [0], [1], [0, 0, 1, 1], [], []>} : vector<256x8xf32>, vector<8x8xf32>, vector<256x8xf32> -> vector<256x8xf32>
    %92 = arith.addf %86, %91 : vector<256x8xf32>
    %c1_103 = arith.constant 1 : index
    %c0_104 = arith.constant 0 : index
    %c0_105 = arith.constant 0 : index
    %93 = vector.load %arg10[%c1_103, %c0_104, %c0_105] : memref<18x18x8xf32, #tpu.memory_space<vmem>>, vector<16x16x8xf32>
    %94 = vector.shape_cast %93 : vector<16x16x8xf32> to vector<256x8xf32>
    %c3_106 = arith.constant 3 : index
    %c0_107 = arith.constant 0 : index
    %c0_108 = arith.constant 0 : index
    %95 = vector.load %arg4[%c3_106, %c0_107, %c0_108] : memref<9x8x8xf32, #tpu.memory_space<vmem>>, vector<1x8x8xf32>
    %96 = vector.shape_cast %95 : vector<1x8x8xf32> to vector<8x8xf32>
    %cst_109 = arith.constant dense<0.000000e+00> : vector<256x8xf32>
    %97 = tpu.matmul %94, %96, %cst_109 {dimension_numbers = #tpu.dot_dimension_numbers<[1], [0], [0], [1], [0, 0, 1, 1], [], []>} : vector<256x8xf32>, vector<8x8xf32>, vector<256x8xf32> -> vector<256x8xf32>
    %98 = arith.addf %92, %97 : vector<256x8xf32>
    %c1_110 = arith.constant 1 : index
    %c1_111 = arith.constant 1 : index
    %c0_112 = arith.constant 0 : index
    %99 = vector.load %arg10[%c1_110, %c1_111, %c0_112] : memref<18x18x8xf32, #tpu.memory_space<vmem>>, vector<16x16x8xf32>
    %100 = vector.shape_cast %99 : vector<16x16x8xf32> to vector<256x8xf32>
    %c4_113 = arith.constant 4 : index
    %c0_114 = arith.constant 0 : index
    %c0_115 = arith.constant 0 : index
    %101 = vector.load %arg4[%c4_113, %c0_114, %c0_115] : memref<9x8x8xf32, #tpu.memory_space<vmem>>, vector<1x8x8xf32>
    %102 = vector.shape_cast %101 : vector<1x8x8xf32> to vector<8x8xf32>
    %cst_116 = arith.constant dense<0.000000e+00> : vector<256x8xf32>
    %103 = tpu.matmul %100, %102, %cst_116 {dimension_numbers = #tpu.dot_dimension_numbers<[1], [0], [0], [1], [0, 0, 1, 1], [], []>} : vector<256x8xf32>, vector<8x8xf32>, vector<256x8xf32> -> vector<256x8xf32>
    %104 = arith.addf %98, %103 : vector<256x8xf32>
    %c1_117 = arith.constant 1 : index
    %c2_118 = arith.constant 2 : index
    %c0_119 = arith.constant 0 : index
    %105 = vector.load %arg10[%c1_117, %c2_118, %c0_119] : memref<18x18x8xf32, #tpu.memory_space<vmem>>, vector<16x16x8xf32>
    %106 = vector.shape_cast %105 : vector<16x16x8xf32> to vector<256x8xf32>
    %c5_120 = arith.constant 5 : index
    %c0_121 = arith.constant 0 : index
    %c0_122 = arith.constant 0 : index
    %107 = vector.load %arg4[%c5_120, %c0_121, %c0_122] : memref<9x8x8xf32, #tpu.memory_space<vmem>>, vector<1x8x8xf32>
    %108 = vector.shape_cast %107 : vector<1x8x8xf32> to vector<8x8xf32>
    %cst_123 = arith.constant dense<0.000000e+00> : vector<256x8xf32>
    %109 = tpu.matmul %106, %108, %cst_123 {dimension_numbers = #tpu.dot_dimension_numbers<[1], [0], [0], [1], [0, 0, 1, 1], [], []>} : vector<256x8xf32>, vector<8x8xf32>, vector<256x8xf32> -> vector<256x8xf32>
    %110 = arith.addf %104, %109 : vector<256x8xf32>
    %c2_124 = arith.constant 2 : index
    %c0_125 = arith.constant 0 : index
    %c0_126 = arith.constant 0 : index
    %111 = vector.load %arg10[%c2_124, %c0_125, %c0_126] : memref<18x18x8xf32, #tpu.memory_space<vmem>>, vector<16x16x8xf32>
    %112 = vector.shape_cast %111 : vector<16x16x8xf32> to vector<256x8xf32>
    %c6_127 = arith.constant 6 : index
    %c0_128 = arith.constant 0 : index
    %c0_129 = arith.constant 0 : index
    %113 = vector.load %arg4[%c6_127, %c0_128, %c0_129] : memref<9x8x8xf32, #tpu.memory_space<vmem>>, vector<1x8x8xf32>
    %114 = vector.shape_cast %113 : vector<1x8x8xf32> to vector<8x8xf32>
    %cst_130 = arith.constant dense<0.000000e+00> : vector<256x8xf32>
    %115 = tpu.matmul %112, %114, %cst_130 {dimension_numbers = #tpu.dot_dimension_numbers<[1], [0], [0], [1], [0, 0, 1, 1], [], []>} : vector<256x8xf32>, vector<8x8xf32>, vector<256x8xf32> -> vector<256x8xf32>
    %116 = arith.addf %110, %115 : vector<256x8xf32>
    %c2_131 = arith.constant 2 : index
    %c1_132 = arith.constant 1 : index
    %c0_133 = arith.constant 0 : index
    %117 = vector.load %arg10[%c2_131, %c1_132, %c0_133] : memref<18x18x8xf32, #tpu.memory_space<vmem>>, vector<16x16x8xf32>
    %118 = vector.shape_cast %117 : vector<16x16x8xf32> to vector<256x8xf32>
    %c7_134 = arith.constant 7 : index
    %c0_135 = arith.constant 0 : index
    %c0_136 = arith.constant 0 : index
    %119 = vector.load %arg4[%c7_134, %c0_135, %c0_136] : memref<9x8x8xf32, #tpu.memory_space<vmem>>, vector<1x8x8xf32>
    %120 = vector.shape_cast %119 : vector<1x8x8xf32> to vector<8x8xf32>
    %cst_137 = arith.constant dense<0.000000e+00> : vector<256x8xf32>
    %121 = tpu.matmul %118, %120, %cst_137 {dimension_numbers = #tpu.dot_dimension_numbers<[1], [0], [0], [1], [0, 0, 1, 1], [], []>} : vector<256x8xf32>, vector<8x8xf32>, vector<256x8xf32> -> vector<256x8xf32>
    %122 = arith.addf %116, %121 : vector<256x8xf32>
    %c2_138 = arith.constant 2 : index
    %c2_139 = arith.constant 2 : index
    %c0_140 = arith.constant 0 : index
    %123 = vector.load %arg10[%c2_138, %c2_139, %c0_140] : memref<18x18x8xf32, #tpu.memory_space<vmem>>, vector<16x16x8xf32>
    %124 = vector.shape_cast %123 : vector<16x16x8xf32> to vector<256x8xf32>
    %c8_141 = arith.constant 8 : index
    %c0_142 = arith.constant 0 : index
    %c0_143 = arith.constant 0 : index
    %125 = vector.load %arg4[%c8_141, %c0_142, %c0_143] : memref<9x8x8xf32, #tpu.memory_space<vmem>>, vector<1x8x8xf32>
    %126 = vector.shape_cast %125 : vector<1x8x8xf32> to vector<8x8xf32>
    %cst_144 = arith.constant dense<0.000000e+00> : vector<256x8xf32>
    %127 = tpu.matmul %124, %126, %cst_144 {dimension_numbers = #tpu.dot_dimension_numbers<[1], [0], [0], [1], [0, 0, 1, 1], [], []>} : vector<256x8xf32>, vector<8x8xf32>, vector<256x8xf32> -> vector<256x8xf32>
    %128 = arith.addf %122, %127 : vector<256x8xf32>
    %129 = vector.broadcast %7 : vector<1x8xf32> to vector<256x8xf32>
    %130 = arith.mulf %128, %129 : vector<256x8xf32>
    %131 = vector.broadcast %8 : vector<1x8xf32> to vector<256x8xf32>
    %132 = arith.addf %130, %131 : vector<256x8xf32>
    %133 = vector.shape_cast %1 : vector<16x16x4xf32> to vector<256x4xf32>
    %c0_145 = arith.constant 0 : index
    %c0_146 = arith.constant 0 : index
    %134 = vector.load %arg6[%c0_145, %c0_146] : memref<4x8xf32, #tpu.memory_space<vmem>>, vector<4x8xf32>
    %cst_147 = arith.constant dense<0.000000e+00> : vector<256x8xf32>
    %135 = tpu.matmul %133, %134, %cst_147 {dimension_numbers = #tpu.dot_dimension_numbers<[1], [0], [0], [1], [0, 0, 1, 1], [], []>} : vector<256x4xf32>, vector<4x8xf32>, vector<256x8xf32> -> vector<256x8xf32>
    %c0_148 = arith.constant 0 : index
    %c0_149 = arith.constant 0 : index
    %136 = vector.load %arg7[%c0_148, %c0_149] : memref<2x8xf32, #tpu.memory_space<vmem>>, vector<1x8xf32>
    %137 = vector.broadcast %136 : vector<1x8xf32> to vector<256x8xf32>
    %138 = arith.mulf %135, %137 : vector<256x8xf32>
    %c1_150 = arith.constant 1 : index
    %c0_151 = arith.constant 0 : index
    %139 = vector.load %arg7[%c1_150, %c0_151] : memref<2x8xf32, #tpu.memory_space<vmem>>, vector<1x8xf32>
    %140 = vector.broadcast %139 : vector<1x8xf32> to vector<256x8xf32>
    %141 = arith.addf %138, %140 : vector<256x8xf32>
    %142 = arith.addf %132, %141 : vector<256x8xf32>
    %cst_152 = arith.constant 0.000000e+00 : f32
    %143 = vector.broadcast %cst_152 : f32 to vector<256x8xf32>
    %144 = arith.maximumf %142, %143 : vector<256x8xf32>
    %145 = vector.shape_cast %144 : vector<256x8xf32> to vector<16x16x8xf32>
    %c0_153 = arith.constant 0 : index
    %c0_154 = arith.constant 0 : index
    %c0_155 = arith.constant 0 : index
    %c0_156 = arith.constant 0 : index
    %146 = vector.load %arg8[%c0_153, %c0_154, %c0_155, %c0_156] : memref<1x16x16x8xf32, #tpu.memory_space<vmem>>, vector<1x16x16x8xf32>
    %147 = vector.shape_cast %146 : vector<1x16x16x8xf32> to vector<16x16x8xf32>
    %148 = vector.shape_cast %145 : vector<16x16x8xf32> to vector<1x16x16x8xf32>
    tpu.vector_store %arg8[%c0_153, %c0_154, %c0_155, %c0_156], %148 {strides = array<i32>} : memref<1x16x16x8xf32, #tpu.memory_space<vmem>>, vector<1x16x16x8xf32>,
    return
  }
  func.func @transform_0(%arg0: i32) -> (i32, i32, i32, i32) {
    %c0_i32 = arith.constant 0 : i32
    %c0_i32_0 = arith.constant 0 : i32
    %c0_i32_1 = arith.constant 0 : i32
    %c0_i32_2 = arith.constant 0 : i32
    return %arg0, %c0_i32, %c0_i32_0, %c0_i32_1 : i32, i32, i32, i32
  }
  func.func @transform_1(%arg0: i32) -> (i32, i32, i32) {
    %c0_i32 = arith.constant 0 : i32
    %c0_i32_0 = arith.constant 0 : i32
    %c0_i32_1 = arith.constant 0 : i32
    %c0_i32_2 = arith.constant 0 : i32
    return %c0_i32, %c0_i32_0, %c0_i32_1 : i32, i32, i32
  }
  func.func @transform_2(%arg0: i32) -> (i32, i32) {
    %c0_i32 = arith.constant 0 : i32
    %c0_i32_0 = arith.constant 0 : i32
    %c0_i32_1 = arith.constant 0 : i32
    return %c0_i32, %c0_i32_0 : i32, i32
  }
  func.func @transform_3(%arg0: i32) -> (i32, i32, i32) {
    %c0_i32 = arith.constant 0 : i32
    %c0_i32_0 = arith.constant 0 : i32
    %c0_i32_1 = arith.constant 0 : i32
    %c0_i32_2 = arith.constant 0 : i32
    return %c0_i32, %c0_i32_0, %c0_i32_1 : i32, i32, i32
  }
  func.func @transform_4(%arg0: i32) -> (i32, i32) {
    %c0_i32 = arith.constant 0 : i32
    %c0_i32_0 = arith.constant 0 : i32
    %c0_i32_1 = arith.constant 0 : i32
    return %c0_i32, %c0_i32_0 : i32, i32
  }
  func.func @transform_5(%arg0: i32) -> (i32, i32) {
    %c0_i32 = arith.constant 0 : i32
    %c0_i32_0 = arith.constant 0 : i32
    %c0_i32_1 = arith.constant 0 : i32
    return %c0_i32, %c0_i32_0 : i32, i32
  }
  func.func @transform_6(%arg0: i32) -> (i32, i32) {
    %c0_i32 = arith.constant 0 : i32
    %c0_i32_0 = arith.constant 0 : i32
    %c0_i32_1 = arith.constant 0 : i32
    return %c0_i32, %c0_i32_0 : i32, i32
  }
  func.func @transform_7(%arg0: i32) -> (i32, i32, i32, i32) {
    %c0_i32 = arith.constant 0 : i32
    %c0_i32_0 = arith.constant 0 : i32
    %c0_i32_1 = arith.constant 0 : i32
    %c0_i32_2 = arith.constant 0 : i32
    return %arg0, %c0_i32, %c0_i32_0, %c0_i32_1 : i32, i32, i32, i32
  }
}

</mosaic_0001>

<bundles_post_ra>
// kernel: tpu_custom_call.1
= control target key start
LH: loop header
LB: loop body
LE: loop exit
PB: predicated region body
PF: predicated region fallthrough
CT: control target
= control target key end

     0   :  { %s10887_s24 = smov 0   ;;  %s13414_s0 = inlined_call_operand.vmem [shape: f32[2,16,16,4], index: 0, kind: input, shape index: {}]   ;;  %s13415_s1 = inlined_call_operand.vmem [shape: f32[9,4,8], index: 1, kind: input, shape index: {}]   ;;  %s13416_s2 = inlined_call_operand.vmem [shape: f32[2,8], index: 2, kind: input, shape index: {}]   ;;  %s13417_s3 = inlined_call_operand.vmem [shape: f32[9,8,8], index: 3, kind: input, shape index: {}]   ;;  %s13418_s4 = inlined_call_operand.vmem [shape: f32[2,8], index: 4, kind: input, shape index: {}]   ;;  %s13419_s5 = inlined_call_operand.vmem [shape: f32[4,8], index: 5, kind: input, shape index: {}]   ;;  %s13420_s6 = inlined_call_operand.vmem [shape: f32[2,8], index: 6, kind: input, shape index: {}]   ;;  %s13421_s7 = inlined_call_operand.vmem [shape: f32[2,16,16,8], index: 7, kind: output, shape index: {}]  }
   0x1 LB: > { %s8085_s25 = sadd.s32 4294967295, %s10844_s24   ;;  %p8089_p0 = scmp.ge.s32.totalorder %s10844_s24, 1  ;;  %s10844_s24 = sphi %s10887_s24, %s17_s24  }
   0x2   : > { %p237_p1 = scmp.lt.s32.totalorder %s10844_s24, 3 }
   0x4   : > { %p238_p2 = pnand %p8089_p0, %p237_p1 }
   0x6   : > { %241 = sbr.rel (%p238_p2) target bundleno = 1547 (0x60b), region = 48 }
   0xd   : > { %v10898_v0 = vld [vmem:[%s13415_s1 + $0x4] sm:$0xf]  ;;  %vm567_vm0 = vcmask 1043456   ;;  %vm311_vm1 = vcmask 31744   ;;  %vm314_vm2 = vcmask 25600   ;;  %v13422_v1 = vmov 0.0  }
   0xe   : > { %9365 = vmatprep.subr.msk.mxu0 %vm567_vm0, %v10898_v0  ;;  %312 = vst.msk [vmem:[#allocation2] sm:$0xff] %vm311_vm1, %v13422_v1  ;;  %313 = vst.msk [vmem:[#allocation2 + $0x8] sm:$0xff] %vm311_vm1, %v13422_v1  ;;  %v436_v2 = vld [vmem:[%s13415_s1] sm:$0xf]  ;;  %p269_p3 = scmp.lt.s32.totalorder %s8085_s25, 1  ;;  %10315 = vmatprep.subr.msk.mxu1 %vm567_vm0, %v10898_v0  ;;  %vm3955_vm3 = vcmask 64512  }
   0xf   : > { %316 = vst.msk [vmem:[#allocation2 + $0x18] sm:$0xff] %vm311_vm1, %v13422_v1  ;;  %317 = vst.msk [vmem:[#allocation2 + $0x20] sm:$0xff] %vm311_vm1, %v13422_v1  ;;  %9366 = vmatpush3.msk.msra.mxu0 %vm567_vm0, %v10898_v0  ;;  %10316 = vmatpush3.msk.msra.mxu1 %vm567_vm0, %v10898_v0  ;;  %v11046_v6 = vld [vmem:[%s13415_s1 + $0x8] sm:$0xf]  ;;  %v11256_v53 = vld [vmem:[%s13415_s1 + $0xc] sm:$0xf] }
  0x10   : > { %319 = vst.msk [vmem:[#allocation2 + $0x30] sm:$0xff] %vm311_vm1, %v13422_v1  ;;  %320 = vst.msk [vmem:[#allocation2 + $0x38] sm:$0xff] %vm311_vm1, %v13422_v1  ;;  %9415 = vmatprep.subr.msk.mxu0 %vm567_vm0, %v436_v2  ;;  %s13802_s25 = smov (!%p269_p3, %s8085_s25), 1  ;;  %vm3958_vm4 = vcmask 58368  }
  0x11   : > { %322 = vst.msk [vmem:[#allocation2 + $0x48] sm:$0xff] %vm311_vm1, %v13422_v1  ;;  %323 = vst.msk [vmem:[#allocation2 + $0x50] sm:$0xff] %vm311_vm1, %v13422_v1  ;;  %s8736_s30 = sshll.u32 %s13802_s25, 8 }
  0x12   : > { %325 = vst.msk [vmem:[#allocation2 + $0x60] sm:$0xff] %vm311_vm1, %v13422_v1  ;;  %326 = vst.msk [vmem:[#allocation2 + $0x68] sm:$0xff] %vm311_vm1, %v13422_v1  ;;  %s11032_s10 = scalar_lea.vmem %s13414_s0, %s8736_s30  ;;  %s13204_s19 = scalar_lea.vmem %s13421_s7, %s8736_s30 }
  0x13   : > { %328 = vst.msk [vmem:[#allocation2 + $0x78] sm:$0xff] %vm311_vm1, %v13422_v1  ;;  %329 = vst.msk [vmem:[#allocation2 + $0x80] sm:$0xff] %vm311_vm1, %v13422_v1  ;;  %v11035_v3 = vld [vmem:[%s11032_s10] sm:$0xff]  ;;  %v11038_v4 = vld [vmem:[%s11032_s10 + $0x8] sm:$0xff] }
  0x14   : > { %331 = vst.msk [vmem:[#allocation2 + $0x90] sm:$0xff] %vm311_vm1, %v13422_v1  ;;  %332 = vst.msk [vmem:[#allocation2 + $0x98] sm:$0xff] %vm311_vm1, %v13422_v1  ;;  %v11041_v5 = vld [vmem:[%s11032_s10 + $0x10] sm:$0xff]  ;;  %v11055_v9 = vld [vmem:[%s11032_s10 + $0x18] sm:$0xff] }
  0x15   : > { %334 = vst.msk [vmem:[#allocation2 + $0xa8] sm:$0xff] %vm311_vm1, %v13422_v1  ;;  %335 = vst.msk [vmem:[#allocation2 + $0xb0] sm:$0xff] %vm311_vm1, %v13422_v1  ;;  %v437_v7 = vld [vmem:[#allocation2 + $0x1] sm:$0xff]  ;;  %v11067_v12 = vld [vmem:[%s11032_s10 + $0x30] sm:$0xff] }
  0x16   : > { %337 = vst.msk [vmem:[#allocation2 + $0xc0] sm:$0xff] %vm311_vm1, %v13422_v1  ;;  %338 = vst.msk [vmem:[#allocation2 + $0xc8] sm:$0xff] %vm311_vm1, %v13422_v1  ;;  %9367 = vmatprep.mubr.msk.f32.mxu0 %vm311_vm1, %v437_v7  ;;  %v11061_v10 = vld [vmem:[%s11032_s10 + $0x20] sm:$0xff]  ;;  %v11064_v11 = vld [vmem:[%s11032_s10 + $0x28] sm:$0xff] }
  0x17   : > { %340 = vst.msk [vmem:[#allocation2 + $0xd8] sm:$0xff] %vm311_vm1, %v13422_v1  ;;  %341 = vst.msk [vmem:[#allocation2 + $0xe0] sm:$0xff] %vm311_vm1, %v13422_v1  ;;  %v11077_v13 = vld [vmem:[%s11032_s10 + $0x38] sm:$0xff]  ;;  %v11080_v14 = vld [vmem:[%s11032_s10 + $0x40] sm:$0xff] }
  0x18   : > { %343 = vst.msk [vmem:[#allocation2 + $0xf0] sm:$0xff] %vm311_vm1, %v13422_v1  ;;  %344 = vst.msk [vmem:[#allocation2 + $0xf8] sm:$0xff] %vm311_vm1, %v13422_v1  ;;  %v11083_v15 = vld [vmem:[%s11032_s10 + $0x48] sm:$0xff]  ;;  %v11093_v16 = vld [vmem:[%s11032_s10 + $0x50] sm:$0xff] }
  0x19   : > { %346 = vst.msk [vmem:[#allocation2 + $0x108] sm:$0xff] %vm311_vm1, %v13422_v1  ;;  %347 = vst.msk [vmem:[#allocation2 + $0x110] sm:$0xff] %vm311_vm1, %v13422_v1  ;;  %v11096_v17 = vld [vmem:[%s11032_s10 + $0x58] sm:$0xff]  ;;  %v11099_v18 = vld [vmem:[%s11032_s10 + $0x60] sm:$0xff] }
  0x1a   : > { %349 = vst.msk [vmem:[#allocation2 + $0x120] sm:$0xff] %vm311_vm1, %v13422_v1  ;;  %350 = vst.msk [vmem:[#allocation2 + $0x128] sm:$0xff] %vm311_vm1, %v13422_v1  ;;  %v11108_v19 = vld [vmem:[%s11032_s10 + $0x68] sm:$0xff]  ;;  %v11115_v20 = vld [vmem:[%s11032_s10 + $0x70] sm:$0xff] }
  0x1b   : > { %352 = vst.msk [vmem:[#allocation2 + $0x138] sm:$0xff] %vm311_vm1, %v13422_v1  ;;  %353 = vst.msk [vmem:[#allocation2 + $0x140] sm:$0xff] %vm311_vm1, %v13422_v1  ;;  %v11118_v21 = vld [vmem:[%s11032_s10 + $0x78] sm:$0xff]  ;;  %v11121_v22 = vld [vmem:[%s11032_s10 + $0x80] sm:$0xff] }
  0x1c   : > { %355 = vst.msk [vmem:[#allocation2 + $0x150] sm:$0xff] %vm311_vm1, %v13422_v1  ;;  %356 = vst.msk [vmem:[#allocation2 + $0x158] sm:$0xff] %vm311_vm1, %v13422_v1  ;;  %v11130_v23 = vld [vmem:[%s11032_s10 + $0x88] sm:$0xff]  ;;  %v11133_v24 = vld [vmem:[%s11032_s10 + $0x90] sm:$0xff] }
  0x1d   : > { %358 = vst.msk [vmem:[#allocation2 + $0x168] sm:$0xff] %vm311_vm1, %v13422_v1  ;;  %359 = vst.msk [vmem:[#allocation2 + $0x170] sm:$0xff] %vm311_vm1, %v13422_v1  ;;  %v11136_v25 = vld [vmem:[%s11032_s10 + $0x98] sm:$0xff]  ;;  %v11177_v35 = vld [vmem:[%s11032_s10 + $0xa0] sm:$0xff] }
  0x1e   : > { %361 = vst.msk [vmem:[#allocation2 + $0x180] sm:$0xff] %vm311_vm1, %v13422_v1  ;;  %362 = vst.msk [vmem:[#allocation2 + $0x188] sm:$0xff] %vm311_vm1, %v13422_v1  ;;  %v11180_v36 = vld [vmem:[%s11032_s10 + $0xa8] sm:$0xff]  ;;  %v11187_v37 = vld [vmem:[%s11032_s10 + $0xb0] sm:$0xff] }
  0x1f   : > { %364 = vst.msk [vmem:[#allocation2 + $0x198] sm:$0xff] %vm311_vm1, %v13422_v1  ;;  %365 = vst.msk [vmem:[#allocation2 + $0x1a0] sm:$0xff] %vm311_vm1, %v13422_v1  ;;  %v11190_v38 = vld [vmem:[%s11032_s10 + $0xb8] sm:$0xff]  ;;  %v11193_v39 = vld [vmem:[%s11032_s10 + $0xc0] sm:$0xff] }
  0x20   : > { %315 = vst.msk [vmem:[#allocation2 + $0x10] sm:$0x3] %vm314_vm2, %v13422_v1  ;;  %318 = vst.msk [vmem:[#allocation2 + $0x28] sm:$0x3] %vm314_vm2, %v13422_v1  ;;  %v11202_v40 = vld [vmem:[%s11032_s10 + $0xc8] sm:$0xff]  ;;  %v11205_v41 = vld [vmem:[%s11032_s10 + $0xd0] sm:$0xff] }
  0x21   : > { %321 = vst.msk [vmem:[#allocation2 + $0x40] sm:$0x3] %vm314_vm2, %v13422_v1  ;;  %324 = vst.msk [vmem:[#allocation2 + $0x58] sm:$0x3] %vm314_vm2, %v13422_v1  ;;  %v11208_v42 = vld [vmem:[%s11032_s10 + $0xd8] sm:$0xff]  ;;  %v11219_v43 = vld [vmem:[%s11032_s10 + $0xe0] sm:$0xff] }
  0x22   : > { %327 = vst.msk [vmem:[#allocation2 + $0x70] sm:$0x3] %vm314_vm2, %v13422_v1  ;;  %330 = vst.msk [vmem:[#allocation2 + $0x88] sm:$0x3] %vm314_vm2, %v13422_v1  ;;  %v11222_v44 = vld [vmem:[%s11032_s10 + $0xe8] sm:$0xff]  ;;  %v404_v50 = vld [vmem:[#allocation2] sm:$0xff] }
  0x23   : > { %333 = vst.msk [vmem:[#allocation2 + $0xa0] sm:$0x3] %vm314_vm2, %v13422_v1  ;;  %336 = vst.msk [vmem:[#allocation2 + $0xb8] sm:$0x3] %vm314_vm2, %v13422_v1  ;;  %v405_v51 = vld [vmem:[#allocation2 + $0x8] sm:$0xff] }
  0x24   : > { %339 = vst.msk [vmem:[#allocation2 + $0xd0] sm:$0x3] %vm314_vm2, %v13422_v1  ;;  %342 = vst.msk [vmem:[#allocation2 + $0xe8] sm:$0x3] %vm314_vm2, %v13422_v1 }
  0x25   : > { %345 = vst.msk [vmem:[#allocation2 + $0x100] sm:$0x3] %vm314_vm2, %v13422_v1  ;;  %348 = vst.msk [vmem:[#allocation2 + $0x118] sm:$0x3] %vm314_vm2, %v13422_v1 }
  0x26   : > { %351 = vst.msk [vmem:[#allocation2 + $0x130] sm:$0x3] %vm314_vm2, %v13422_v1  ;;  %354 = vst.msk [vmem:[#allocation2 + $0x148] sm:$0x3] %vm314_vm2, %v13422_v1 }
  0x27   : > { %357 = vst.msk [vmem:[#allocation2 + $0x160] sm:$0x3] %vm314_vm2, %v13422_v1  ;;  %360 = vst.msk [vmem:[#allocation2 + $0x178] sm:$0x3] %vm314_vm2, %v13422_v1  ;;  %v438_v8 = vld [vmem:[#allocation2 + $0x9] sm:$0xff] }
  0x28   : > { %363 = vst.msk [vmem:[#allocation2 + $0x190] sm:$0x3] %vm314_vm2, %v13422_v1  ;;  %366 = vst.msk [vmem:[#allocation2 + $0x1a8] sm:$0x3] %vm314_vm2, %v13422_v1  ;;  %9368 = vmatmul.mubr.msk.f32.vlgmr.msra.gmra.mrb[0].mxu0 %vm311_vm1, %v438_v8 }
  0x29   : > { %13572 = vst [vmem:[#allocation4_spill] sm:$0xff] %v11035_v3  ;;  %13573 = vst [vmem:[#allocation5_spill] sm:$0xff] %v11038_v4  ;;  %9416 = vmatpush3.msk.msra.mxu0 %vm567_vm0, %v436_v2 }
  0x2a   : > { %13574 = vst [vmem:[#allocation6_spill] sm:$0xff] %v11041_v5  ;;  %368 = vst.msk [vmem:[#allocation2 + $0x19] sm:$0xff] %vm311_vm1, %v11035_v3  ;;  %9465 = vmatprep.subr.msk.mxu0 %vm567_vm0, %v11046_v6 }
  0x2b   : > { %369 = vst.msk [vmem:[#allocation2 + $0x21] sm:$0xff] %vm311_vm1, %v11038_v4  ;;  %370 = vst.msk [vmem:[#allocation2 + $0x31] sm:$0xff] %vm311_vm1, %v11041_v5 }
  0x2c   : > { %13575 = vst [vmem:[#allocation7_spill] sm:$0xff] %v11055_v9  ;;  %371 = vst.msk [vmem:[#allocation2 + $0x39] sm:$0xff] %vm311_vm1, %v11055_v9 }
  0x2d   : > { %13576 = vst [vmem:[#allocation8_spill] sm:$0xff] %v11061_v10  ;;  %13577 = vst [vmem:[#allocation9_spill] sm:$0xff] %v11064_v11 }
  0x2e   : > { %13578 = vst [vmem:[#allocation10_spill] sm:$0xff] %v11067_v12  ;;  %372 = vst.msk [vmem:[#allocation2 + $0x49] sm:$0xff] %vm311_vm1, %v11061_v10 }
  0x2f   : > { %373 = vst.msk [vmem:[#allocation2 + $0x51] sm:$0xff] %vm311_vm1, %v11064_v11  ;;  %374 = vst.msk [vmem:[#allocation2 + $0x61] sm:$0xff] %vm311_vm1, %v11067_v12 }
  0x30   : > { %13579 = vst [vmem:[#allocation11_spill] sm:$0xff] %v11077_v13  ;;  %13580 = vst [vmem:[#allocation12_spill] sm:$0xff] %v11080_v14 }
  0x31   : > { %13581 = vst [vmem:[#allocation13_spill] sm:$0xff] %v11083_v15  ;;  %375 = vst.msk [vmem:[#allocation2 + $0x69] sm:$0xff] %vm311_vm1, %v11077_v13  ;;  %v11138_v26 = vld [vmem:[#allocation2 + $0x19] sm:$0xff] }
  0x32   : > { %376 = vst.msk [vmem:[#allocation2 + $0x79] sm:$0xff] %vm311_vm1, %v11080_v14  ;;  %377 = vst.msk [vmem:[#allocation2 + $0x81] sm:$0xff] %vm311_vm1, %v11083_v15  ;;  %v11140_v27 = vld [vmem:[#allocation2 + $0x21] sm:$0xff]  ;;  %v11142_v28 = vld [vmem:[#allocation2 + $0x31] sm:$0xff]  ;;  %9370 = vmatprep.mubr.msk.f32.mxu0 %vm311_vm1, %v11138_v26 }
  0x33   : > { %13582 = vst [vmem:[#allocation14_spill] sm:$0xff] %v11093_v16  ;;  %13583 = vst [vmem:[#allocation15_spill] sm:$0xff] %v11096_v17  ;;  %9371 = vmatmul.mubr.msk.f32.gmra.mrb[2].mxu0 %vm311_vm1, %v11140_v27  ;;  %v11156_v29 = vld [vmem:[#allocation2 + $0x39] sm:$0xff]  ;;  %v11265_v55 = vld [vmem:[#allocation2 + $0x30] sm:$0xff] }
  0x34   : > { %13584 = vst [vmem:[#allocation16_spill] sm:$0xff] %v11099_v18  ;;  %378 = vst.msk [vmem:[#allocation2 + $0x91] sm:$0xff] %vm311_vm1, %v11093_v16  ;;  %9373 = vmatprep.mubr.msk.f32.mxu0 %vm311_vm1, %v11142_v28  ;;  %v11251_v52 = vld [vmem:[#allocation2 + $0x18] sm:$0xff]  ;;  %v11263_v54 = vld [vmem:[#allocation2 + $0x20] sm:$0xff] }
  0x35   : > { %379 = vst.msk [vmem:[#allocation2 + $0x99] sm:$0xff] %vm311_vm1, %v11096_v17  ;;  %380 = vst.msk [vmem:[#allocation2 + $0xa9] sm:$0xff] %vm311_vm1, %v11099_v18  ;;  %v11158_v30 = vld [vmem:[#allocation2 + $0x49] sm:$0xff]  ;;  %v11273_v56 = vld [vmem:[#allocation2 + $0x38] sm:$0xff] }
  0x36   : > { %13585 = vst [vmem:[#allocation17_spill] sm:$0xff] %v11108_v19  ;;  %381 = vst.msk [vmem:[#allocation2 + $0xb1] sm:$0xff] %vm311_vm1, %v11108_v19  ;;  %v11164_v31 = vld [vmem:[#allocation2 + $0x51] sm:$0xff]  ;;  %v11166_v32 = vld [vmem:[#allocation2 + $0x61] sm:$0xff] }
  0x37   : > { %13586 = vst [vmem:[#allocation18_spill] sm:$0xff] %v11115_v20  ;;  %13587 = vst [vmem:[#allocation19_spill] sm:$0xff] %v11118_v21  ;;  %9374 = vmatmul.mubr.msk.f32.gmra.mrb[4].mxu0 %vm311_vm1, %v11156_v29  ;;  %v11275_v57 = vld [vmem:[#allocation2 + $0x48] sm:$0xff]  ;;  %v11281_v58 = vld [vmem:[#allocation2 + $0x50] sm:$0xff] }
  0x38   : > { %13588 = vst [vmem:[#allocation20_spill] sm:$0xff] %v11121_v22  ;;  %382 = vst.msk [vmem:[#allocation2 + $0xc1] sm:$0xff] %vm311_vm1, %v11115_v20  ;;  %9376 = vmatprep.mubr.msk.f32.mxu0 %vm311_vm1, %v11158_v30  ;;  %v11170_v33 = vld [vmem:[#allocation2 + $0x69] sm:$0xff]  ;;  %v11283_v59 = vld [vmem:[#allocation2 + $0x60] sm:$0xff] }
  0x39   : > { %383 = vst.msk [vmem:[#allocation2 + $0xc9] sm:$0xff] %vm311_vm1, %v11118_v21  ;;  %384 = vst.msk [vmem:[#allocation2 + $0xd9] sm:$0xff] %vm311_vm1, %v11121_v22  ;;  %v11174_v34 = vld [vmem:[#allocation2 + $0x79] sm:$0xff]  ;;  %v11226_v45 = vld [vmem:[#allocation2 + $0x81] sm:$0xff] }
  0x3a   : > { %13589 = vst [vmem:[#allocation21_spill] sm:$0xff] %v11130_v23  ;;  %13590 = vst [vmem:[#allocation22_spill] sm:$0xff] %v11133_v24  ;;  %v11289_v60 = vld [vmem:[#allocation2 + $0x68] sm:$0xff]  ;;  %v11291_v61 = vld [vmem:[#allocation2 + $0x78] sm:$0xff] }
  0x3b   : > { %13591 = vst [vmem:[#allocation23_spill] sm:$0xff] %v11136_v25  ;;  %385 = vst.msk [vmem:[#allocation2 + $0xe1] sm:$0xff] %vm311_vm1, %v11130_v23  ;;  %9377 = vmatmul.mubr.msk.f32.gmra.mrb[6].mxu0 %vm311_vm1, %v11164_v31  ;;  %v11232_v46 = vld [vmem:[#allocation2 + $0x91] sm:$0xff]  ;;  %v11297_v62 = vld [vmem:[#allocation2 + $0x80] sm:$0xff] }
  0x3c   : > { %386 = vst.msk [vmem:[#allocation2 + $0xf1] sm:$0xff] %vm311_vm1, %v11133_v24  ;;  %387 = vst.msk [vmem:[#allocation2 + $0xf9] sm:$0xff] %vm311_vm1, %v11136_v25  ;;  %9379 = vmatprep.mubr.msk.f32.mxu0 %vm311_vm1, %v11166_v32  ;;  %v11238_v47 = vld [vmem:[#allocation2 + $0x99] sm:$0xff]  ;;  %v11240_v48 = vld [vmem:[#allocation2 + $0xa9] sm:$0xff] }
  0x3d   : > { %13592 = vst [vmem:[#allocation24_spill] sm:$0xff] %v11177_v35  ;;  %13593 = vst [vmem:[#allocation25_spill] sm:$0xff] %v11180_v36  ;;  %v11246_v49 = vld [vmem:[#allocation2 + $0xb1] sm:$0xff]  ;;  %v11307_v2 = vld [vmem:[#allocation2 + $0xa8] sm:$0xff] }
  0x3e   : > { %388 = vst.msk [vmem:[#allocation2 + $0x109] sm:$0xff] %vm311_vm1, %v11177_v35  ;;  %389 = vst.msk [vmem:[#allocation2 + $0x111] sm:$0xff] %vm311_vm1, %v11180_v36  ;;  %v11299_v63 = vld [vmem:[#allocation2 + $0x90] sm:$0xff]  ;;  %v11305_v0 = vld [vmem:[#allocation2 + $0x98] sm:$0xff] }
  0x3f   : > { %13594 = vst [vmem:[#allocation26_spill] sm:$0xff] %v11187_v37  ;;  %13595 = vst [vmem:[#allocation27_spill] sm:$0xff] %v11190_v38  ;;  %9380 = vmatmul.mubr.msk.f32.gmra.mrb[8].mxu0 %vm311_vm1, %v11170_v33  ;;  %v11315_v7 = vld [vmem:[#allocation2 + $0xc0] sm:$0xff]  ;;  %v11366_v36 = vld [vmem:[%s11032_s10 + $0xf0] sm:$0xff] }
  0x40   : > { %13596 = vst [vmem:[#allocation28_spill] sm:$0xff] %v11193_v39  ;;  %390 = vst.msk [vmem:[#allocation2 + $0x121] sm:$0xff] %vm311_vm1, %v11187_v37  ;;  %9382 = vmatprep.mubr.msk.f32.mxu0 %vm311_vm1, %v11174_v34  ;;  %v11321_v8 = vld [vmem:[#allocation2 + $0xc8] sm:$0xff]  ;;  %v11371_v35 = vld [vmem:[%s11032_s10 + $0xf8] sm:$0xff] }
  0x41   : > { %391 = vst.msk [vmem:[#allocation2 + $0x129] sm:$0xff] %vm311_vm1, %v11190_v38  ;;  %392 = vst.msk [vmem:[#allocation2 + $0x139] sm:$0xff] %vm311_vm1, %v11193_v39  ;;  %v1120_v23 = vld [vmem:[#allocation2 + $0x2] sm:$0xff]  ;;  %v11392_v22 = vld [vmem:[#allocation2 + $0x1a] sm:$0xff] }
  0x42   : > { %13597 = vst [vmem:[#allocation29_spill] sm:$0xff] %v11202_v40  ;;  %13598 = vst [vmem:[#allocation30_spill] sm:$0xff] %v11205_v41  ;;  %v11397_v21 = vld [vmem:[%s13415_s1 + $0x10] sm:$0xf]  ;;  %v11404_v20 = vld [vmem:[#allocation2 + $0x22] sm:$0xff] }
  0x43   : > { %13599 = vst [vmem:[#allocation31_spill] sm:$0xff] %v11208_v42  ;;  %393 = vst.msk [vmem:[#allocation2 + $0x141] sm:$0xff] %vm311_vm1, %v11202_v40  ;;  %9383 = vmatmul.mubr.msk.f32.gmra.mrb[10].mxu0 %vm311_vm1, %v11226_v45  ;;  %v11331_v1 = vld [vmem:[#allocation2 + $0xf0] sm:$0xff]  ;;  %v11424_v18 = vld [vmem:[#allocation2 + $0x62] sm:$0xff] }
  0x44   : > { %394 = vst.msk [vmem:[#allocation2 + $0x151] sm:$0xff] %vm311_vm1, %v11205_v41  ;;  %395 = vst.msk [vmem:[#allocation2 + $0x159] sm:$0xff] %vm311_vm1, %v11208_v42  ;;  %9385 = vmatprep.mubr.msk.f32.mxu0 %vm311_vm1, %v11232_v46  ;;  %v11406_v19 = vld [vmem:[#allocation2 + $0x32] sm:$0xff]  ;;  %v11430_v17 = vld [vmem:[#allocation2 + $0x6a] sm:$0xff] }
  0x45   : > { %13600 = vst [vmem:[#allocation32_spill] sm:$0xff] %v11219_v43  ;;  %13601 = vst [vmem:[#allocation33_spill] sm:$0xff] %v11222_v44  ;;  %v11345_v42 = vld [vmem:[#allocation2 + $0x110] sm:$0xff]  ;;  %v11432_v16 = vld [vmem:[#allocation2 + $0x7a] sm:$0xff] }
  0x46   : > { %396 = vst.msk [vmem:[#allocation2 + $0x169] sm:$0xff] %vm311_vm1, %v11219_v43  ;;  %397 = vst.msk [vmem:[#allocation2 + $0x171] sm:$0xff] %vm311_vm1, %v11222_v44  ;;  %v11337_v44 = vld [vmem:[#allocation2 + $0xf8] sm:$0xff]  ;;  %v11339_v43 = vld [vmem:[#allocation2 + $0x108] sm:$0xff] }
  0x47   : > { %9386 = vmatmul.mubr.msk.f32.gmra.mrb[12].mxu0 %vm311_vm1, %v11238_v47  ;;  %v11347_v41 = vld [vmem:[#allocation2 + $0x120] sm:$0xff]  ;;  %13602 = vst [vmem:[#allocation34_spill] sm:$0xff] %v11366_v36  ;;  %398 = vst.msk [vmem:[#allocation2 + $0x181] sm:$0xff] %vm311_vm1, %v11366_v36  ;;  %v11440_v14 = vld [vmem:[#allocation2 + $0x92] sm:$0xff] }
  0x48   : > { %9388 = vmatprep.mubr.msk.f32.mxu0 %vm311_vm1, %v11240_v48  ;;  %v11353_v40 = vld [vmem:[#allocation2 + $0x128] sm:$0xff]  ;;  %v11355_v39 = vld [vmem:[#allocation2 + $0x138] sm:$0xff]  ;;  %13603 = vst [vmem:[#allocation35_spill] sm:$0xff] %v11371_v35  ;;  %399 = vst.msk [vmem:[#allocation2 + $0x189] sm:$0xff] %vm311_vm1, %v11371_v35 }
  0x49   : > { %v1121_v35 = vld [vmem:[#allocation2 + $0xa] sm:$0xff]  ;;  %13604 = vst [vmem:[#allocation36_spill] sm:$0xff] %v11392_v22  ;;  %13605 = vst [vmem:[#allocation37_spill] sm:$0xff] %v11404_v20  ;;  %v11438_v15 = vld [vmem:[#allocation2 + $0x82] sm:$0xff] }
  0x4a   : > { %v11361_v38 = vld [vmem:[#allocation2 + $0x140] sm:$0xff]  ;;  %13606 = vst [vmem:[#allocation38_spill] sm:$0xff] %v11406_v19  ;;  %13610 = vst [vmem:[#allocation42_spill] sm:$0xff] %v11424_v18  ;;  %v11448_v12 = vld [vmem:[#allocation2 + $0xaa] sm:$0xff] }
  0x4b   : > { %9389 = vmatmul.mubr.msk.f32.gmra.mrb[14].mxu0 %vm311_vm1, %v11246_v49  ;;  %v11363_v37 = vld [vmem:[#allocation2 + $0x150] sm:$0xff]  ;;  %v11379_v25 = vld [vmem:[#allocation2 + $0x158] sm:$0xff]  ;;  %13611 = vst [vmem:[#allocation43_spill] sm:$0xff] %v11430_v17  ;;  %13612 = vst [vmem:[#allocation44_spill] sm:$0xff] %v11432_v16 }
  0x4c   : > { %9417 = vmatprep.mubr.msk.f32.mxu0 %vm311_vm1, %v404_v50  ;;  %v11323_v50 = vld [vmem:[#allocation2 + $0xd8] sm:$0xff]  ;;  %13613 = vst [vmem:[#allocation45_spill] sm:$0xff] %v11438_v15  ;;  %13614 = vst [vmem:[#allocation46_spill] sm:$0xff] %v11440_v14  ;;  %v11452_v11 = vld [vmem:[#allocation2 + $0xc1] sm:$0xff] }
  0x4d   : > { %v11381_v24 = vld [vmem:[#allocation2 + $0x168] sm:$0xff]  ;;  %v11387_v36 = vld [vmem:[#allocation2 + $0x170] sm:$0xff]  ;;  %v11446_v13 = vld [vmem:[#allocation2 + $0x9a] sm:$0xff]  ;;  %13616 = vst [vmem:[#allocation48_spill] sm:$0xff] %v11448_v12  ;;  %9391 = vmatprep.mubr.msk.f32.mxu1 %vm311_vm1, %v11452_v11 }
  0x4e   : > { %13615 = vst [vmem:[#allocation47_spill] sm:$0xff] %v11446_v13  ;;  %v11456_v10 = vld [vmem:[#allocation2 + $0xb2] sm:$0xff]  ;;  %v11458_v9 = vld [vmem:[#allocation2 + $0xc9] sm:$0xff] }
  0x4f   : > { %9418 = vmatmul.mubr.msk.f32.vlgmr.msra.gmra.mrb[0].mxu0 %vm311_vm1, %v405_v51  ;;  %v11329_v51 = vld [vmem:[#allocation2 + $0xe0] sm:$0xff]  ;;  %13617 = vst [vmem:[#allocation49_spill] sm:$0xff] %v11456_v10  ;;  %9392 = vmatmul.mubr.msk.f32.vlgmr.msra.gmra.mrb[0].mxu1 %vm311_vm1, %v11458_v9  ;;  %v11472_v3 = vld [vmem:[#allocation2 + $0xca] sm:$0xff] }
  0x50   : > { %9466 = vmatpush3.msk.msra.mxu0 %vm567_vm0, %v11046_v6  ;;  %9420 = vmatprep.mubr.msk.f32.mxu0 %vm311_vm1, %v11251_v52  ;;  %v11313_v6 = vld [vmem:[#allocation2 + $0xb0] sm:$0xff]  ;;  %v11462_v5 = vld [vmem:[#allocation2 + $0xc2] sm:$0xff]  ;;  %v11468_v4 = vld [vmem:[#allocation2 + $0xd9] sm:$0xff]  ;;  %13619 = vst [vmem:[#allocation51_spill] sm:$0xff] %v11472_v3 }
  0x51   : > { %9515 = vmatprep.subr.msk.mxu0 %vm567_vm0, %v11256_v53  ;;  %13618 = vst [vmem:[#allocation50_spill] sm:$0xff] %v11462_v5  ;;  %9394 = vmatprep.mubr.msk.f32.mxu1 %vm311_vm1, %v11468_v4 }
  0x53   : > { %9421 = vmatmul.mubr.msk.f32.gmra.mrb[2].mxu0 %vm311_vm1, %v11263_v54 }
  0x54   : > { %9423 = vmatprep.mubr.msk.f32.mxu0 %vm311_vm1, %v11265_v55 }
  0x57   : > { %9424 = vmatmul.mubr.msk.f32.gmra.mrb[4].mxu0 %vm311_vm1, %v11273_v56 }
  0x58   : > { %9426 = vmatprep.mubr.msk.f32.mxu0 %vm311_vm1, %v11275_v57 }
  0x5b   : > { %9427 = vmatmul.mubr.msk.f32.gmra.mrb[6].mxu0 %vm311_vm1, %v11281_v58 }
  0x5c   : > { %9429 = vmatprep.mubr.msk.f32.mxu0 %vm311_vm1, %v11283_v59 }
  0x5f   : > { %9430 = vmatmul.mubr.msk.f32.gmra.mrb[8].mxu0 %vm311_vm1, %v11289_v60 }
  0x60   : > { %9432 = vmatprep.mubr.msk.f32.mxu0 %vm311_vm1, %v11291_v61 }
  0x63   : > { %9433 = vmatmul.mubr.msk.f32.gmra.mrb[10].mxu0 %vm311_vm1, %v11297_v62 }
  0x64   : > { %9435 = vmatprep.mubr.msk.f32.mxu0 %vm311_vm1, %v11299_v63 }
  0x67   : > { %9436 = vmatmul.mubr.msk.f32.gmra.mrb[12].mxu0 %vm311_vm1, %v11305_v0 }
  0x68   : > { %9438 = vmatprep.mubr.msk.f32.mxu0 %vm311_vm1, %v11307_v2 }
  0x6b   : > { %9439 = vmatmul.mubr.msk.f32.gmra.mrb[14].mxu0 %vm311_vm1, %v11313_v6 }
  0x6c   : > { %9441 = vmatprep.mubr.msk.f32.mxu0 %vm311_vm1, %v11315_v7 }
  0x6f   : > { %9442 = vmatmul.mubr.msk.f32.gmra.mrb[16].mxu0 %vm311_vm1, %v11321_v8 }
  0x70   : > { %9444 = vmatprep.mubr.msk.f32.mxu0 %vm311_vm1, %v11323_v50 }
  0x73   : > { %9445 = vmatmul.mubr.msk.f32.gmra.mrb[18].mxu0 %vm311_vm1, %v11329_v51 }
  0x74   : > { %9447 = vmatprep.mubr.msk.f32.mxu0 %vm311_vm1, %v11331_v1 }
  0x77   : > { %9448 = vmatmul.mubr.msk.f32.gmra.mrb[20].mxu0 %vm311_vm1, %v11337_v44 }
  0x78   : > { %9450 = vmatprep.mubr.msk.f32.mxu0 %vm311_vm1, %v11339_v43 }
  0x7b   : > { %9451 = vmatmul.mubr.msk.f32.gmra.mrb[22].mxu0 %vm311_vm1, %v11345_v42 }
  0x7c   : > { %9453 = vmatprep.mubr.msk.f32.mxu0 %vm311_vm1, %v11347_v41 }
  0x7f   : > { %9454 = vmatmul.mubr.msk.f32.gmra.mrb[24].mxu0 %vm311_vm1, %v11353_v40 }
  0x80   : > { %9456 = vmatprep.mubr.msk.f32.mxu0 %vm311_vm1, %v11355_v39 }
  0x83   : > { %9457 = vmatmul.mubr.msk.f32.gmra.mrb[26].mxu0 %vm311_vm1, %v11361_v38 }
  0x84   : > { %9459 = vmatprep.mubr.msk.f32.mxu0 %vm311_vm1, %v11363_v37 }
  0x87   : > { %9460 = vmatmul.mubr.msk.f32.gmra.mrb[28].mxu0 %vm311_vm1, %v11379_v25 }
  0x88   : > { %9462 = vmatprep.mubr.msk.f32.mxu0 %vm311_vm1, %v11381_v24 }
  0x8b   : > { %9463 = vmatmul.mubr.msk.f32.gmra.mrb[30].mxu0 %vm311_vm1, %v11387_v36 }
  0x8c   : > { %9467 = vmatprep.mubr.msk.f32.mxu0 %vm311_vm1, %v1120_v23  ;;  %v11414_v23 = vld [vmem:[#allocation2 + $0x3a] sm:$0xff] }
  0x8d   : > { %13607 = vst [vmem:[#allocation39_spill] sm:$0xff] %v11414_v23 }
  0x8f   : > { %9468 = vmatmul.mubr.msk.f32.vlgmr.msra.gmra.mrb[0].mxu0 %vm311_vm1, %v1121_v35  ;;  %v11416_v35 = vld [vmem:[#allocation2 + $0x4a] sm:$0xff] }
  0x90   : > { %9516 = vmatpush3.msk.msra.mxu0 %vm567_vm0, %v11256_v53  ;;  %9470 = vmatprep.mubr.msk.f32.mxu0 %vm311_vm1, %v11392_v22  ;;  %13608 = vst [vmem:[#allocation40_spill] sm:$0xff] %v11416_v35  ;;  %v11422_v53 = vld [vmem:[#allocation2 + $0x52] sm:$0xff] }
  0x91   : > { %9565 = vmatprep.subr.msk.mxu0 %vm567_vm0, %v11397_v21  ;;  %13609 = vst [vmem:[#allocation41_spill] sm:$0xff] %v11422_v53  ;;  %v11570_v22 = vld [vmem:[#allocation2 + $0x171] sm:$0xff] }
  0x92   : > { %13636 = vst [vmem:[#allocation68_spill] sm:$0xff] %v11570_v22 }
  0x93   : > { %9471 = vmatmul.mubr.msk.f32.gmra.mrb[2].mxu0 %vm311_vm1, %v11404_v20  ;;  %v11558_v20 = vld [vmem:[#allocation2 + $0x152] sm:$0xff] }
  0x94   : > { %9473 = vmatprep.mubr.msk.f32.mxu0 %vm311_vm1, %v11406_v19  ;;  %v11554_v19 = vld [vmem:[#allocation2 + $0x159] sm:$0xff]  ;;  %13634 = vst [vmem:[#allocation66_spill] sm:$0xff] %v11558_v20 }
  0x95   : > { %13633 = vst [vmem:[#allocation65_spill] sm:$0xff] %v11554_v19 }
  0x97   : > { %9474 = vmatmul.mubr.msk.f32.gmra.mrb[4].mxu0 %vm311_vm1, %v11414_v23  ;;  %v11542_v23 = vld [vmem:[#allocation2 + $0x13a] sm:$0xff] }
  0x98   : > { %9476 = vmatprep.mubr.msk.f32.mxu0 %vm311_vm1, %v11416_v35  ;;  %v11538_v35 = vld [vmem:[#allocation2 + $0x141] sm:$0xff]  ;;  %13630 = vst [vmem:[#allocation62_spill] sm:$0xff] %v11542_v23 }
  0x99   : > { %13629 = vst [vmem:[#allocation61_spill] sm:$0xff] %v11538_v35 }
  0x9b   : > { %9477 = vmatmul.mubr.msk.f32.gmra.mrb[6].mxu0 %vm311_vm1, %v11422_v53  ;;  %v11526_v53 = vld [vmem:[#allocation2 + $0x122] sm:$0xff] }
  0x9c   : > { %9479 = vmatprep.mubr.msk.f32.mxu0 %vm311_vm1, %v11424_v18  ;;  %v11522_v18 = vld [vmem:[#allocation2 + $0x129] sm:$0xff]  ;;  %13626 = vst [vmem:[#allocation58_spill] sm:$0xff] %v11526_v53 }
  0x9f   : > { %9480 = vmatmul.mubr.msk.f32.gmra.mrb[8].mxu0 %vm311_vm1, %v11430_v17  ;;  %v11510_v17 = vld [vmem:[#allocation2 + $0x10a] sm:$0xff] }
  0xa0   : > { %9482 = vmatprep.mubr.msk.f32.mxu0 %vm311_vm1, %v11432_v16  ;;  %v11506_v16 = vld [vmem:[#allocation2 + $0x111] sm:$0xff]  ;;  %13624 = vst [vmem:[#allocation56_spill] sm:$0xff] %v11510_v17 }
  0xa3   : > { %9483 = vmatmul.mubr.msk.f32.gmra.mrb[10].mxu0 %vm311_vm1, %v11438_v15  ;;  %v11494_v15 = vld [vmem:[#allocation2 + $0xf2] sm:$0xff] }
  0xa4   : > { %9485 = vmatprep.mubr.msk.f32.mxu0 %vm311_vm1, %v11440_v14  ;;  %v11490_v14 = vld [vmem:[#allocation2 + $0xf9] sm:$0xff]  ;;  %13622 = vst [vmem:[#allocation54_spill] sm:$0xff] %v11494_v15 }
  0xa7   : > { %9486 = vmatmul.mubr.msk.f32.gmra.mrb[12].mxu0 %vm311_vm1, %v11446_v13  ;;  %v11478_v13 = vld [vmem:[#allocation2 + $0xda] sm:$0xff] }
  0xa8   : > { %9488 = vmatprep.mubr.msk.f32.mxu0 %vm311_vm1, %v11448_v12  ;;  %v11474_v12 = vld [vmem:[#allocation2 + $0xe1] sm:$0xff]  ;;  %13620 = vst [vmem:[#allocation52_spill] sm:$0xff] %v11478_v13 }
  0xa9   : > { %9395 = vmatmul.mubr.msk.f32.gmra.mrb[2].mxu1 %vm311_vm1, %v11474_v12 }
  0xab   : > { %9489 = vmatmul.mubr.msk.f32.gmra.mrb[14].mxu0 %vm311_vm1, %v11456_v10  ;;  %v11484_v10 = vld [vmem:[#allocation2 + $0xf1] sm:$0xff] }
  0xac   : > { %9491 = vmatprep.mubr.msk.f32.mxu0 %vm311_vm1, %v11462_v5  ;;  %v11488_v5 = vld [vmem:[#allocation2 + $0xe2] sm:$0xff]  ;;  %9397 = vmatprep.mubr.msk.f32.mxu1 %vm311_vm1, %v11484_v10 }
  0xad   : > { %13621 = vst [vmem:[#allocation53_spill] sm:$0xff] %v11488_v5  ;;  %9398 = vmatmul.mubr.msk.f32.gmra.mrb[4].mxu1 %vm311_vm1, %v11490_v14 }
  0xaf   : > { %9492 = vmatmul.mubr.msk.f32.gmra.mrb[16].mxu0 %vm311_vm1, %v11472_v3  ;;  %v11500_v3 = vld [vmem:[#allocation2 + $0x109] sm:$0xff] }
  0xb0   : > { %9494 = vmatprep.mubr.msk.f32.mxu0 %vm311_vm1, %v11478_v13  ;;  %v11504_v13 = vld [vmem:[#allocation2 + $0xfa] sm:$0xff]  ;;  %9400 = vmatprep.mubr.msk.f32.mxu1 %vm311_vm1, %v11500_v3 }
  0xb1   : > { %13623 = vst [vmem:[#allocation55_spill] sm:$0xff] %v11504_v13  ;;  %9401 = vmatmul.mubr.msk.f32.gmra.mrb[6].mxu1 %vm311_vm1, %v11506_v16 }
  0xb3   : > { %9495 = vmatmul.mubr.msk.f32.gmra.mrb[18].mxu0 %vm311_vm1, %v11488_v5  ;;  %v11516_v5 = vld [vmem:[#allocation2 + $0x121] sm:$0xff] }
  0xb4   : > { %9497 = vmatprep.mubr.msk.f32.mxu0 %vm311_vm1, %v11494_v15  ;;  %v11520_v15 = vld [vmem:[#allocation2 + $0x112] sm:$0xff]  ;;  %9403 = vmatprep.mubr.msk.f32.mxu1 %vm311_vm1, %v11516_v5 }
  0xb5   : > { %13625 = vst [vmem:[#allocation57_spill] sm:$0xff] %v11520_v15  ;;  %9404 = vmatmul.mubr.msk.f32.gmra.mrb[8].mxu1 %vm311_vm1, %v11522_v18 }
  0xb7   : > { %9498 = vmatmul.mubr.msk.f32.gmra.mrb[20].mxu0 %vm311_vm1, %v11504_v13  ;;  %v11532_v13 = vld [vmem:[#allocation2 + $0x139] sm:$0xff] }
  0xb8   : > { %9500 = vmatprep.mubr.msk.f32.mxu0 %vm311_vm1, %v11510_v17  ;;  %13627 = vst [vmem:[#allocation59_spill] sm:$0xff] %v11532_v13  ;;  %v11536_v17 = vld [vmem:[#allocation2 + $0x12a] sm:$0xff]  ;;  %9406 = vmatprep.mubr.msk.f32.mxu1 %vm311_vm1, %v11532_v13 }
  0xb9   : > { %13628 = vst [vmem:[#allocation60_spill] sm:$0xff] %v11536_v17  ;;  %9407 = vmatmul.mubr.msk.f32.gmra.mrb[10].mxu1 %vm311_vm1, %v11538_v35 }
  0xbb   : > { %9501 = vmatmul.mubr.msk.f32.gmra.mrb[22].mxu0 %vm311_vm1, %v11520_v15  ;;  %v11548_v15 = vld [vmem:[#allocation2 + $0x151] sm:$0xff] }
  0xbc   : > { %9503 = vmatprep.mubr.msk.f32.mxu0 %vm311_vm1, %v11526_v53  ;;  %13631 = vst [vmem:[#allocation63_spill] sm:$0xff] %v11548_v15  ;;  %v11552_v53 = vld [vmem:[#allocation2 + $0x142] sm:$0xff]  ;;  %9409 = vmatprep.mubr.msk.f32.mxu1 %vm311_vm1, %v11548_v15  ;;  %v11574_v15 = vld [vmem:[#allocation2 + $0x16a] sm:$0xff] }
  0xbd   : > { %13632 = vst [vmem:[#allocation64_spill] sm:$0xff] %v11552_v53  ;;  %9410 = vmatmul.mubr.msk.f32.gmra.mrb[12].mxu1 %vm311_vm1, %v11554_v19  ;;  %13637 = vst [vmem:[#allocation69_spill] sm:$0xff] %v11574_v15 }
  0xbf   : > { %9504 = vmatmul.mubr.msk.f32.gmra.mrb[24].mxu0 %vm311_vm1, %v11536_v17  ;;  %v11564_v17 = vld [vmem:[#allocation2 + $0x169] sm:$0xff] }
  0xc0   : > { %9506 = vmatprep.mubr.msk.f32.mxu0 %vm311_vm1, %v11542_v23  ;;  %13635 = vst [vmem:[#allocation67_spill] sm:$0xff] %v11564_v17  ;;  %v11568_v23 = vld [vmem:[#allocation2 + $0x15a] sm:$0xff]  ;;  %9412 = vmatprep.mubr.msk.f32.mxu1 %vm311_vm1, %v11564_v17 }
  0xc1   : > { %9413 = vmatmul.mubr.msk.f32.gmra.mrb[14].mxu1 %vm311_vm1, %v11570_v22 }
  0xc3   : > { %9507 = vmatmul.mubr.msk.f32.gmra.mrb[26].mxu0 %vm311_vm1, %v11552_v53  ;;  %v11582_v53 = vld [vmem:[#allocation2 + $0x172] sm:$0xff] }
  0xc4   : > { %9509 = vmatprep.mubr.msk.f32.mxu0 %vm311_vm1, %v11558_v20  ;;  %v8263_v20 = vld [vmem:[%s13415_s1 + $0x14] sm:$0xf] }
  0xc7   : > { %9510 = vmatmul.mubr.msk.f32.gmra.mrb[28].mxu0 %vm311_vm1, %v11568_v23 }
  0xc8   : > { %9512 = vmatprep.mubr.msk.f32.mxu0 %vm311_vm1, %v11574_v15 }
  0xcb   : > { %9513 = vmatmul.mubr.msk.f32.gmra.mrb[30].mxu0 %vm311_vm1, %v11582_v53 }
  0xcc   : > { %9517 = vmatprep.mubr.msk.f32.mxu0 %vm311_vm1, %v11251_v52  ;;  %v11656_v52 = vld [vmem:[#allocation2 + $0x188] sm:$0xff] }
  0xcf   : > { %9518 = vmatmul.mubr.msk.f32.vlgmr.msra.gmra.mrb[0].mxu0 %vm311_vm1, %v11263_v54  ;;  %v8297_v54 = vld [vmem:[%s13415_s1 + $0x18] sm:$0xf] }
  0xd0   : > { %9566 = vmatpush3.msk.msra.mxu0 %vm567_vm0, %v11397_v21  ;;  %9520 = vmatprep.mubr.msk.f32.mxu0 %vm311_vm1, %v11265_v55  ;;  %v11650_v21 = vld [vmem:[#allocation2 + $0x180] sm:$0xff] }
  0xd1   : > { %9615 = vmatprep.subr.msk.mxu0 %vm567_vm0, %v8263_v20 }
  0xd3   : > { %9521 = vmatmul.mubr.msk.f32.gmra.mrb[2].mxu0 %vm311_vm1, %v11273_v56 }
  0xd4   : > { %9523 = vmatprep.mubr.msk.f32.mxu0 %vm311_vm1, %v11275_v57 }
  0xd7   : > { %9524 = vmatmul.mubr.msk.f32.gmra.mrb[4].mxu0 %vm311_vm1, %v11281_v58 }
  0xd8   : > { %9526 = vmatprep.mubr.msk.f32.mxu0 %vm311_vm1, %v11283_v59 }
  0xdb   : > { %9527 = vmatmul.mubr.msk.f32.gmra.mrb[6].mxu0 %vm311_vm1, %v11289_v60 }
  0xdc   : > { %9529 = vmatprep.mubr.msk.f32.mxu0 %vm311_vm1, %v11291_v61 }
  0xdf   : > { %9530 = vmatmul.mubr.msk.f32.gmra.mrb[8].mxu0 %vm311_vm1, %v11297_v62 }
  0xe0   : > { %9532 = vmatprep.mubr.msk.f32.mxu0 %vm311_vm1, %v11299_v63 }
  0xe3   : > { %9533 = vmatmul.mubr.msk.f32.gmra.mrb[10].mxu0 %vm311_vm1, %v11305_v0 }
  0xe4   : > { %9535 = vmatprep.mubr.msk.f32.mxu0 %vm311_vm1, %v11307_v2 }
  0xe7   : > { %9536 = vmatmul.mubr.msk.f32.gmra.mrb[12].mxu0 %vm311_vm1, %v11313_v6 }
  0xe8   : > { %9538 = vmatprep.mubr.msk.f32.mxu0 %vm311_vm1, %v11315_v7 }
  0xeb   : > { %9539 = vmatmul.mubr.msk.f32.gmra.mrb[14].mxu0 %vm311_vm1, %v11321_v8 }
  0xec   : > { %9541 = vmatprep.mubr.msk.f32.mxu0 %vm311_vm1, %v11323_v50 }
  0xef   : > { %9542 = vmatmul.mubr.msk.f32.gmra.mrb[16].mxu0 %vm311_vm1, %v11329_v51 }
  0xf0   : > { %9544 = vmatprep.mubr.msk.f32.mxu0 %vm311_vm1, %v11331_v1 }
  0xf3   : > { %9545 = vmatmul.mubr.msk.f32.gmra.mrb[18].mxu0 %vm311_vm1, %v11337_v44 }
  0xf4   : > { %9547 = vmatprep.mubr.msk.f32.mxu0 %vm311_vm1, %v11339_v43 }
  0xf7   : > { %9548 = vmatmul.mubr.msk.f32.gmra.mrb[20].mxu0 %vm311_vm1, %v11345_v42 }
  0xf8   : > { %9550 = vmatprep.mubr.msk.f32.mxu0 %vm311_vm1, %v11347_v41 }
  0xfb   : > { %9551 = vmatmul.mubr.msk.f32.gmra.mrb[22].mxu0 %vm311_vm1, %v11353_v40 }
  0xfc   : > { %9553 = vmatprep.mubr.msk.f32.mxu0 %vm311_vm1, %v11355_v39 }
  0xff   : > { %9554 = vmatmul.mubr.msk.f32.gmra.mrb[24].mxu0 %vm311_vm1, %v11361_v38 }
 0x100   : > { %9556 = vmatprep.mubr.msk.f32.mxu0 %vm311_vm1, %v11363_v37 }
 0x103   : > { %9557 = vmatmul.mubr.msk.f32.gmra.mrb[26].mxu0 %vm311_vm1, %v11379_v25 }
 0x104   : > { %9559 = vmatprep.mubr.msk.f32.mxu0 %vm311_vm1, %v11381_v24 }
 0x107   : > { %9560 = vmatmul.mubr.msk.f32.gmra.mrb[28].mxu0 %vm311_vm1, %v11387_v36 }
 0x108   : > { %9562 = vmatprep.mubr.msk.f32.mxu0 %vm311_vm1, %v11650_v21 }
 0x10b   : > { %9563 = vmatmul.mubr.msk.f32.gmra.mrb[30].mxu0 %vm311_vm1, %v11656_v52 }
 0x10c   : > { %9567 = vmatprep.mubr.msk.f32.mxu0 %vm311_vm1, %v11138_v26  ;;  %v11723_v26 = vld [vmem:[#allocation2 + $0x181] sm:$0xff] }
 0x10d   : > { %13639 = vst [vmem:[#allocation70_spill] sm:$0xff] %v11723_v26 }
 0x10f   : > { %9568 = vmatmul.mubr.msk.f32.vlgmr.msra.gmra.mrb[0].mxu0 %vm311_vm1, %v11140_v27  ;;  %v11729_v27 = vld [vmem:[#allocation2 + $0x189] sm:$0xff] }
 0x110   : > { %9616 = vmatpush3.msk.msra.mxu0 %vm567_vm0, %v8263_v20  ;;  %9570 = vmatprep.mubr.msk.f32.mxu0 %vm311_vm1, %v11142_v28  ;;  %v13638_v20 = vld [vmem:[#allocation63_spill] sm:$0xff]  ;;  %13640 = vst [vmem:[#allocation71_spill] sm:$0xff] %v11729_v27 }
 0x111   : > { %9665 = vmatprep.subr.msk.mxu0 %vm567_vm0, %v8297_v54 }
 0x113   : > { %9571 = vmatmul.mubr.msk.f32.gmra.mrb[2].mxu0 %vm311_vm1, %v11156_v29 }
 0x114   : > { %9573 = vmatprep.mubr.msk.f32.mxu0 %vm311_vm1, %v11158_v30 }
 0x117   : > { %9574 = vmatmul.mubr.msk.f32.gmra.mrb[4].mxu0 %vm311_vm1, %v11164_v31 }
 0x118   : > { %9576 = vmatprep.mubr.msk.f32.mxu0 %vm311_vm1, %v11166_v32 }
 0x11b   : > { %9577 = vmatmul.mubr.msk.f32.gmra.mrb[6].mxu0 %vm311_vm1, %v11170_v33 }
 0x11c   : > { %9579 = vmatprep.mubr.msk.f32.mxu0 %vm311_vm1, %v11174_v34 }
 0x11f   : > { %9580 = vmatmul.mubr.msk.f32.gmra.mrb[8].mxu0 %vm311_vm1, %v11226_v45 }
 0x120   : > { %9582 = vmatprep.mubr.msk.f32.mxu0 %vm311_vm1, %v11232_v46 }
 0x123   : > { %9583 = vmatmul.mubr.msk.f32.gmra.mrb[10].mxu0 %vm311_vm1, %v11238_v47 }
 0x124   : > { %9585 = vmatprep.mubr.msk.f32.mxu0 %vm311_vm1, %v11240_v48 }
 0x127   : > { %9586 = vmatmul.mubr.msk.f32.gmra.mrb[12].mxu0 %vm311_vm1, %v11246_v49 }
 0x128   : > { %9588 = vmatprep.mubr.msk.f32.mxu0 %vm311_vm1, %v11452_v11 }
 0x12b   : > { %9589 = vmatmul.mubr.msk.f32.gmra.mrb[14].mxu0 %vm311_vm1, %v11458_v9 }
 0x12c   : > { %9591 = vmatprep.mubr.msk.f32.mxu0 %vm311_vm1, %v11468_v4 }
 0x12f   : > { %9592 = vmatmul.mubr.msk.f32.gmra.mrb[16].mxu0 %vm311_vm1, %v11474_v12 }
 0x130   : > { %9594 = vmatprep.mubr.msk.f32.mxu0 %vm311_vm1, %v11484_v10 }
 0x133   : > { %9595 = vmatmul.mubr.msk.f32.gmra.mrb[18].mxu0 %vm311_vm1, %v11490_v14 }
 0x134   : > { %9597 = vmatprep.mubr.msk.f32.mxu0 %vm311_vm1, %v11500_v3 }
 0x137   : > { %9598 = vmatmul.mubr.msk.f32.gmra.mrb[20].mxu0 %vm311_vm1, %v11506_v16 }
 0x138   : > { %9600 = vmatprep.mubr.msk.f32.mxu0 %vm311_vm1, %v11516_v5 }
 0x13b   : > { %9601 = vmatmul.mubr.msk.f32.gmra.mrb[22].mxu0 %vm311_vm1, %v11522_v18 }
 0x13c   : > { %9603 = vmatprep.mubr.msk.f32.mxu0 %vm311_vm1, %v11532_v13  ;;  %v13651_v13 = vld [vmem:[#allocation46_spill] sm:$0xff] }
 0x13f   : > { %9604 = vmatmul.mubr.msk.f32.gmra.mrb[24].mxu0 %vm311_vm1, %v11538_v35  ;;  %v13647_v35 = vld [vmem:[#allocation42_spill] sm:$0xff] }
 0x140   : > { %9606 = vmatprep.mubr.msk.f32.mxu0 %vm311_vm1, %v13638_v20  ;;  %v13641_v20 = vld [vmem:[#allocation36_spill] sm:$0xff] }
 0x143   : > { %9607 = vmatmul.mubr.msk.f32.gmra.mrb[26].mxu0 %vm311_vm1, %v11554_v19  ;;  %v13642_v19 = vld [vmem:[#allocation37_spill] sm:$0xff] }
 0x144   : > { %9609 = vmatprep.mubr.msk.f32.mxu0 %vm311_vm1, %v11564_v17  ;;  %v8331_v17 = vld [vmem:[%s13415_s1 + $0x1c] sm:$0xf] }
 0x147   : > { %9610 = vmatmul.mubr.msk.f32.gmra.mrb[28].mxu0 %vm311_vm1, %v11570_v22  ;;  %v13643_v22 = vld [vmem:[#allocation38_spill] sm:$0xff] }
 0x148   : > { %9612 = vmatprep.mubr.msk.f32.mxu0 %vm311_vm1, %v11723_v26  ;;  %v13644_v26 = vld [vmem:[#allocation39_spill] sm:$0xff] }
 0x14b   : > { %9613 = vmatmul.mubr.msk.f32.gmra.mrb[30].mxu0 %vm311_vm1, %v11729_v27  ;;  %v13645_v27 = vld [vmem:[#allocation40_spill] sm:$0xff] }
 0x14c   : > { %9617 = vmatprep.mubr.msk.f32.mxu0 %vm311_vm1, %v13641_v20  ;;  %v13646_v20 = vld [vmem:[#allocation41_spill] sm:$0xff] }
 0x14f   : > { %9618 = vmatmul.mubr.msk.f32.vlgmr.msra.gmra.mrb[0].mxu0 %vm311_vm1, %v13642_v19  ;;  %v13648_v19 = vld [vmem:[#allocation43_spill] sm:$0xff] }
 0x150   : > { %9666 = vmatpush3.msk.msra.mxu0 %vm567_vm0, %v8297_v54  ;;  %9620 = vmatprep.mubr.msk.f32.mxu0 %vm311_vm1, %v13643_v22  ;;  %v13649_v54 = vld [vmem:[#allocation44_spill] sm:$0xff]  ;;  %v13650_v22 = vld [vmem:[#allocation45_spill] sm:$0xff] }
 0x151   : > { %9715 = vmatprep.subr.msk.mxu0 %vm567_vm0, %v8331_v17 }
 0x153   : > { %9621 = vmatmul.mubr.msk.f32.gmra.mrb[2].mxu0 %vm311_vm1, %v13644_v26  ;;  %v13652_v26 = vld [vmem:[#allocation47_spill] sm:$0xff] }
 0x154   : > { %9623 = vmatprep.mubr.msk.f32.mxu0 %vm311_vm1, %v13645_v27  ;;  %v13653_v27 = vld [vmem:[#allocation48_spill] sm:$0xff] }
 0x157   : > { %9624 = vmatmul.mubr.msk.f32.gmra.mrb[4].mxu0 %vm311_vm1, %v13646_v20  ;;  %v13654_v20 = vld [vmem:[#allocation49_spill] sm:$0xff] }
 0x158   : > { %9626 = vmatprep.mubr.msk.f32.mxu0 %vm311_vm1, %v13647_v35  ;;  %v13655_v35 = vld [vmem:[#allocation50_spill] sm:$0xff] }
 0x15b   : > { %9627 = vmatmul.mubr.msk.f32.gmra.mrb[6].mxu0 %vm311_vm1, %v13648_v19  ;;  %v13656_v19 = vld [vmem:[#allocation51_spill] sm:$0xff] }
 0x15c   : > { %9629 = vmatprep.mubr.msk.f32.mxu0 %vm311_vm1, %v13649_v54  ;;  %v13657_v54 = vld [vmem:[#allocation52_spill] sm:$0xff] }
 0x15f   : > { %9630 = vmatmul.mubr.msk.f32.gmra.mrb[8].mxu0 %vm311_vm1, %v13650_v22  ;;  %v13658_v22 = vld [vmem:[#allocation53_spill] sm:$0xff] }
 0x160   : > { %9632 = vmatprep.mubr.msk.f32.mxu0 %vm311_vm1, %v13651_v13  ;;  %v13659_v13 = vld [vmem:[#allocation54_spill] sm:$0xff] }
 0x163   : > { %9633 = vmatmul.mubr.msk.f32.gmra.mrb[10].mxu0 %vm311_vm1, %v13652_v26  ;;  %v13660_v26 = vld [vmem:[#allocation55_spill] sm:$0xff] }
 0x164   : > { %9635 = vmatprep.mubr.msk.f32.mxu0 %vm311_vm1, %v13653_v27  ;;  %v13661_v27 = vld [vmem:[#allocation56_spill] sm:$0xff] }
 0x167   : > { %9636 = vmatmul.mubr.msk.f32.gmra.mrb[12].mxu0 %vm311_vm1, %v13654_v20  ;;  %v13662_v20 = vld [vmem:[#allocation57_spill] sm:$0xff] }
 0x168   : > { %9638 = vmatprep.mubr.msk.f32.mxu0 %vm311_vm1, %v13655_v35  ;;  %v13663_v35 = vld [vmem:[#allocation58_spill] sm:$0xff] }
 0x16b   : > { %9639 = vmatmul.mubr.msk.f32.gmra.mrb[14].mxu0 %vm311_vm1, %v13656_v19  ;;  %v13664_v19 = vld [vmem:[#allocation60_spill] sm:$0xff] }
 0x16c   : > { %9641 = vmatprep.mubr.msk.f32.mxu0 %vm311_vm1, %v13657_v54  ;;  %v13665_v54 = vld [vmem:[#allocation62_spill] sm:$0xff] }
 0x16f   : > { %9642 = vmatmul.mubr.msk.f32.gmra.mrb[16].mxu0 %vm311_vm1, %v13658_v22  ;;  %v13666_v22 = vld [vmem:[#allocation64_spill] sm:$0xff] }
 0x170   : > { %9644 = vmatprep.mubr.msk.f32.mxu0 %vm311_vm1, %v13659_v13  ;;  %v13667_v13 = vld [vmem:[#allocation66_spill] sm:$0xff] }
 0x173   : > { %9645 = vmatmul.mubr.msk.f32.gmra.mrb[18].mxu0 %vm311_vm1, %v13660_v26 }
 0x174   : > { %9647 = vmatprep.mubr.msk.f32.mxu0 %vm311_vm1, %v13661_v27 }
 0x177   : > { %9648 = vmatmul.mubr.msk.f32.gmra.mrb[20].mxu0 %vm311_vm1, %v13662_v20  ;;  %v11796_v20 = vld [vmem:[#allocation2 + $0x182] sm:$0xff] }
 0x178   : > { %9650 = vmatprep.mubr.msk.f32.mxu0 %vm311_vm1, %v13663_v35 }
 0x17b   : > { %9651 = vmatmul.mubr.msk.f32.gmra.mrb[22].mxu0 %vm311_vm1, %v13664_v19 }
 0x17c   : > { %9653 = vmatprep.mubr.msk.f32.mxu0 %vm311_vm1, %v13665_v54  ;;  %v11802_v54 = vld [vmem:[#allocation2 + $0x18a] sm:$0xff] }
 0x17f   : > { %9654 = vmatmul.mubr.msk.f32.gmra.mrb[24].mxu0 %vm311_vm1, %v13666_v22 }
 0x180   : > { %9656 = vmatprep.mubr.msk.f32.mxu0 %vm311_vm1, %v13667_v13 }
 0x183   : > { %9657 = vmatmul.mubr.msk.f32.gmra.mrb[26].mxu0 %vm311_vm1, %v11568_v23 }
 0x184   : > { %9659 = vmatprep.mubr.msk.f32.mxu0 %vm311_vm1, %v11574_v15  ;;  %v8365_v15 = vld [vmem:[%s13415_s1 + $0x20] sm:$0xf] }
 0x187   : > { %9660 = vmatmul.mubr.msk.f32.gmra.mrb[28].mxu0 %vm311_vm1, %v11582_v53 }
 0x188   : > { %9662 = vmatprep.mubr.msk.f32.mxu0 %vm311_vm1, %v11796_v20 }
 0x18b   : > { %9663 = vmatmul.mubr.msk.f32.gmra.mrb[30].mxu0 %vm311_vm1, %v11802_v54 }
 0x18c   : > { %9667 = vmatprep.mubr.msk.f32.mxu0 %vm311_vm1, %v11265_v55 }
 0x18f   : > { %9668 = vmatmul.mubr.msk.f32.vlgmr.msra.gmra.mrb[0].mxu0 %vm311_vm1, %v11273_v56  ;;  %v4076_v56 = vld [vmem:[%s13417_s3] sm:$0xff] }
 0x190   : > { %9716 = vmatpush3.msk.msra.mxu0 %vm567_vm0, %v8331_v17  ;;  %9670 = vmatprep.mubr.msk.f32.mxu0 %vm311_vm1, %v11275_v57  ;;  %v2712_v17 = vld [vmem:[#allocation2 + $0x1a0] sm:$0xff]  ;;  %v12116_v57 = vpop.f32.mrb[0].mxu1 }
 0x191   : > { %9765 = vmatprep.subr.msk.mxu0 %vm567_vm0, %v8365_v15 }
 0x193   : > { %9671 = vmatmul.mubr.msk.f32.gmra.mrb[2].mxu0 %vm311_vm1, %v11281_v58  ;;  %v12118_v58 = vpop.f32.mrb[1].mxu1 }
 0x194   : > { %9673 = vmatprep.mubr.msk.f32.mxu0 %vm311_vm1, %v11283_v59  ;;  %v12120_v59 = vpop.f32.mrb[2].mxu1 }
 0x197   : > { %9674 = vmatmul.mubr.msk.f32.gmra.mrb[4].mxu0 %vm311_vm1, %v11289_v60  ;;  %v12122_v60 = vpop.f32.mrb[3].mxu1 }
 0x198   : > { %9676 = vmatprep.mubr.msk.f32.mxu0 %vm311_vm1, %v11291_v61  ;;  %v12124_v61 = vpop.f32.mrb[4].mxu1 }
 0x19b   : > { %9677 = vmatmul.mubr.msk.f32.gmra.mrb[6].mxu0 %vm311_vm1, %v11297_v62  ;;  %v12126_v62 = vpop.f32.mrb[5].mxu1 }
 0x19c   : > { %9679 = vmatprep.mubr.msk.f32.mxu0 %vm311_vm1, %v11299_v63  ;;  %v12128_v63 = vpop.f32.mrb[6].mxu1 }
 0x19f   : > { %9680 = vmatmul.mubr.msk.f32.gmra.mrb[8].mxu0 %vm311_vm1, %v11305_v0  ;;  %v12130_v0 = vpop.f32.mrb[7].mxu1 }
 0x1a0   : > { %9682 = vmatprep.mubr.msk.f32.mxu0 %vm311_vm1, %v11307_v2  ;;  %v12132_v2 = vpop.f32.mrb[8].mxu1 }
 0x1a3   : > { %9683 = vmatmul.mubr.msk.f32.gmra.mrb[10].mxu0 %vm311_vm1, %v11313_v6  ;;  %v12134_v6 = vpop.f32.mrb[9].mxu1 }
 0x1a4   : > { %9685 = vmatprep.mubr.msk.f32.mxu0 %vm311_vm1, %v11315_v7  ;;  %v12136_v7 = vpop.f32.mrb[10].mxu1 }
 0x1a7   : > { %9686 = vmatmul.mubr.msk.f32.gmra.mrb[12].mxu0 %vm311_vm1, %v11321_v8  ;;  %v12138_v8 = vpop.f32.mrb[11].mxu1 }
 0x1a8   : > { %9688 = vmatprep.mubr.msk.f32.mxu0 %vm311_vm1, %v11323_v50  ;;  %v12140_v50 = vpop.f32.mrb[12].mxu1 }
 0x1ab   : > { %9689 = vmatmul.mubr.msk.f32.gmra.mrb[14].mxu0 %vm311_vm1, %v11329_v51  ;;  %v12142_v51 = vpop.f32.mrb[13].mxu1 }
 0x1ac   : > { %9691 = vmatprep.mubr.msk.f32.mxu0 %vm311_vm1, %v11331_v1  ;;  %v2711_v1 = vld [vmem:[#allocation2 + $0x198] sm:$0xff] }
 0x1af   : > { %9692 = vmatmul.mubr.msk.f32.gmra.mrb[16].mxu0 %vm311_vm1, %v11337_v44  ;;  %v13693_v44 = vld [vmem:[#allocation57_spill] sm:$0xff] }
 0x1b0   : > { %9694 = vmatprep.mubr.msk.f32.mxu0 %vm311_vm1, %v11339_v43  ;;  %v13692_v43 = vld [vmem:[#allocation54_spill] sm:$0xff] }
 0x1b3   : > { %9695 = vmatmul.mubr.msk.f32.gmra.mrb[18].mxu0 %vm311_vm1, %v11345_v42  ;;  %v13691_v42 = vld [vmem:[#allocation53_spill] sm:$0xff] }
 0x1b4   : > { %9697 = vmatprep.mubr.msk.f32.mxu0 %vm311_vm1, %v11347_v41  ;;  %v13690_v41 = vld [vmem:[#allocation52_spill] sm:$0xff] }
 0x1b7   : > { %9698 = vmatmul.mubr.msk.f32.gmra.mrb[20].mxu0 %vm311_vm1, %v11353_v40  ;;  %v13689_v40 = vld [vmem:[#allocation51_spill] sm:$0xff] }
 0x1b8   : > { %9700 = vmatprep.mubr.msk.f32.mxu0 %vm311_vm1, %v11355_v39  ;;  %v13688_v39 = vld [vmem:[#allocation50_spill] sm:$0xff] }
 0x1bb   : > { %9701 = vmatmul.mubr.msk.f32.gmra.mrb[22].mxu0 %vm311_vm1, %v11361_v38  ;;  %v13687_v38 = vld [vmem:[#allocation49_spill] sm:$0xff] }
 0x1bc   : > { %9703 = vmatprep.mubr.msk.f32.mxu0 %vm311_vm1, %v11363_v37  ;;  %v13686_v37 = vld [vmem:[#allocation48_spill] sm:$0xff] }
 0x1bf   : > { %9704 = vmatmul.mubr.msk.f32.gmra.mrb[24].mxu0 %vm311_vm1, %v11379_v25  ;;  %v8401_v25 = vld [vmem:[%s13417_s3 + $0x8] sm:$0xff] }
 0x1c0   : > { %9706 = vmatprep.mubr.msk.f32.mxu0 %vm311_vm1, %v11381_v24  ;;  %9815 = vmatprep.subr.mxu1 %v8401_v25  ;;  %v13677_v24 = vld [vmem:[#allocation39_spill] sm:$0xff] }
 0x1c1   : > { %9816 = vmatpush3.msra.mxu1 %v8401_v25 }
 0x1c2   : > { %9865 = vmatprep.subr.mxu1 %v4076_v56 }
 0x1c3   : > { %9707 = vmatmul.mubr.msk.f32.gmra.mrb[26].mxu0 %vm311_vm1, %v11387_v36  ;;  %v13685_v36 = vld [vmem:[#allocation47_spill] sm:$0xff] }
 0x1c4   : > { %9709 = vmatprep.mubr.msk.f32.mxu0 %vm311_vm1, %v11650_v21  ;;  %v12157_v21 = vld [vmem:[%s13416_s2] ss:$0 sm:$0xff] }
 0x1c7   : > { %9710 = vmatmul.mubr.msk.f32.gmra.mrb[28].mxu0 %vm311_vm1, %v11656_v52  ;;  %v12162_v52 = vld [vmem:[%s13416_s2 + $0x1] ss:$0 sm:$0xff] }
 0x1c8   : > { %9712 = vmatprep.mubr.msk.f32.mxu0 %vm311_vm1, %v2711_v1 }
 0x1cb   : > { %9713 = vmatmul.mubr.msk.f32.gmra.mrb[30].mxu0 %vm311_vm1, %v2712_v17 }
 0x1cc   : > { %9717 = vmatprep.mubr.msk.f32.mxu0 %vm311_vm1, %v11142_v28  ;;  %v13678_v28 = vld [vmem:[#allocation40_spill] sm:$0xff] }
 0x1cf   : > { %9718 = vmatmul.mubr.msk.f32.vlgmr.msra.gmra.mrb[0].mxu0 %vm311_vm1, %v11156_v29  ;;  %v13679_v29 = vld [vmem:[#allocation41_spill] sm:$0xff] }
 0x1d0   : > { %9766 = vmatpush3.msk.msra.mxu0 %vm567_vm0, %v8365_v15  ;;  %9720 = vmatprep.mubr.msk.f32.mxu0 %vm311_vm1, %v11158_v30  ;;  %v13675_v15 = vld [vmem:[#allocation71_spill] sm:$0xff]  ;;  %v13680_v30 = vld [vmem:[#allocation42_spill] sm:$0xff] }
 0x1d3   : > { %9721 = vmatmul.mubr.msk.f32.gmra.mrb[2].mxu0 %vm311_vm1, %v11164_v31  ;;  %v13681_v31 = vld [vmem:[#allocation43_spill] sm:$0xff] }
 0x1d4   : > { %9723 = vmatprep.mubr.msk.f32.mxu0 %vm311_vm1, %v11166_v32  ;;  %v13682_v32 = vld [vmem:[#allocation44_spill] sm:$0xff] }
 0x1d7   : > { %9724 = vmatmul.mubr.msk.f32.gmra.mrb[4].mxu0 %vm311_vm1, %v11170_v33  ;;  %v13683_v33 = vld [vmem:[#allocation45_spill] sm:$0xff] }
 0x1d8   : > { %9726 = vmatprep.mubr.msk.f32.mxu0 %vm311_vm1, %v11174_v34  ;;  %v13684_v34 = vld [vmem:[#allocation46_spill] sm:$0xff] }
 0x1db   : > { %9727 = vmatmul.mubr.msk.f32.gmra.mrb[6].mxu0 %vm311_vm1, %v11226_v45  ;;  %v13694_v45 = vld [vmem:[#allocation62_spill] sm:$0xff] }
 0x1dc   : > { %9729 = vmatprep.mubr.msk.f32.mxu0 %vm311_vm1, %v11232_v46  ;;  %v13695_v46 = vld [vmem:[#allocation69_spill] sm:$0xff] }
 0x1df   : > { %9730 = vmatmul.mubr.msk.f32.gmra.mrb[8].mxu0 %vm311_vm1, %v11238_v47  ;;  %v3491_v47 = vld [vmem:[#allocation2 + $0x19a] sm:$0xff] }
 0x1e0   : > { %9732 = vmatprep.mubr.msk.f32.mxu0 %vm311_vm1, %v11240_v48  ;;  %v13697_v48 = vmov 0.0  }
 0x1e1   : > { %3961 = vst.msk [vmem:[#allocation3 + $0x20] sm:$0xff] %vm3955_vm3, %v13697_v48  ;;  %3956 = vst.msk [vmem:[#allocation3] sm:$0xff] %vm3955_vm3, %v13697_v48 }
 0x1e2   : > { %3957 = vst.msk [vmem:[#allocation3 + $0x8] sm:$0xff] %vm3955_vm3, %v13697_v48  ;;  %3960 = vst.msk [vmem:[#allocation3 + $0x18] sm:$0xff] %vm3955_vm3, %v13697_v48 }
 0x1e3   : > { %9733 = vmatmul.mubr.msk.f32.gmra.mrb[10].mxu0 %vm311_vm1, %v11246_v49  ;;  %3963 = vst.msk [vmem:[#allocation3 + $0x30] sm:$0xff] %vm3955_vm3, %v13697_v48  ;;  %3964 = vst.msk [vmem:[#allocation3 + $0x38] sm:$0xff] %vm3955_vm3, %v13697_v48 }
 0x1e4   : > { %9735 = vmatprep.mubr.msk.f32.mxu0 %vm311_vm1, %v11452_v11  ;;  %v13671_v11 = vld [vmem:[#allocation65_spill] sm:$0xff]  ;;  %3966 = vst.msk [vmem:[#allocation3 + $0x48] sm:$0xff] %vm3955_vm3, %v13697_v48  ;;  %3967 = vst.msk [vmem:[#allocation3 + $0x50] sm:$0xff] %vm3955_vm3, %v13697_v48 }
 0x1e5   : > { %3969 = vst.msk [vmem:[#allocation3 + $0x60] sm:$0xff] %vm3955_vm3, %v13697_v48  ;;  %3970 = vst.msk [vmem:[#allocation3 + $0x68] sm:$0xff] %vm3955_vm3, %v13697_v48 }
 0x1e6   : > { %3972 = vst.msk [vmem:[#allocation3 + $0x78] sm:$0xff] %vm3955_vm3, %v13697_v48  ;;  %3973 = vst.msk [vmem:[#allocation3 + $0x80] sm:$0xff] %vm3955_vm3, %v13697_v48 }
 0x1e7   : > { %9736 = vmatmul.mubr.msk.f32.gmra.mrb[12].mxu0 %vm311_vm1, %v11458_v9  ;;  %v13669_v9 = vld [vmem:[#allocation61_spill] sm:$0xff]  ;;  %3975 = vst.msk [vmem:[#allocation3 + $0x90] sm:$0xff] %vm3955_vm3, %v13697_v48  ;;  %3976 = vst.msk [vmem:[#allocation3 + $0x98] sm:$0xff] %vm3955_vm3, %v13697_v48 }
 0x1e8   : > { %9738 = vmatprep.mubr.msk.f32.mxu0 %vm311_vm1, %v11468_v4  ;;  %v13668_v4 = vld [vmem:[#allocation59_spill] sm:$0xff]  ;;  %3978 = vst.msk [vmem:[#allocation3 + $0xa8] sm:$0xff] %vm3955_vm3, %v13697_v48  ;;  %3979 = vst.msk [vmem:[#allocation3 + $0xb0] sm:$0xff] %vm3955_vm3, %v13697_v48 }
 0x1e9   : > { %3981 = vst.msk [vmem:[#allocation3 + $0xc0] sm:$0xff] %vm3955_vm3, %v13697_v48  ;;  %3982 = vst.msk [vmem:[#allocation3 + $0xc8] sm:$0xff] %vm3955_vm3, %v13697_v48  ;;  %v4077_v49 = vld [vmem:[#allocation3 + $0x1] sm:$0xff] }
 0x1ea   : > { %3984 = vst.msk [vmem:[#allocation3 + $0xd8] sm:$0xff] %vm3955_vm3, %v13697_v48  ;;  %3985 = vst.msk [vmem:[#allocation3 + $0xe0] sm:$0xff] %vm3955_vm3, %v13697_v48  ;;  %9817 = vmatprep.mubr.msk.f32.mxu1 %vm3955_vm3, %v4077_v49 }
 0x1eb   : > { %9739 = vmatmul.mubr.msk.f32.gmra.mrb[14].mxu0 %vm311_vm1, %v11474_v12  ;;  %v13673_v12 = vld [vmem:[#allocation68_spill] sm:$0xff]  ;;  %3987 = vst.msk [vmem:[#allocation3 + $0xf0] sm:$0xff] %vm3955_vm3, %v13697_v48  ;;  %3988 = vst.msk [vmem:[#allocation3 + $0xf8] sm:$0xff] %vm3955_vm3, %v13697_v48 }
 0x1ec   : > { %9741 = vmatprep.mubr.msk.f32.mxu0 %vm311_vm1, %v11484_v10  ;;  %v13670_v10 = vld [vmem:[#allocation63_spill] sm:$0xff]  ;;  %3990 = vst.msk [vmem:[#allocation3 + $0x108] sm:$0xff] %vm3955_vm3, %v13697_v48  ;;  %3991 = vst.msk [vmem:[#allocation3 + $0x110] sm:$0xff] %vm3955_vm3, %v13697_v48 }
 0x1ed   : > { %3993 = vst.msk [vmem:[#allocation3 + $0x120] sm:$0xff] %vm3955_vm3, %v13697_v48  ;;  %3994 = vst.msk [vmem:[#allocation3 + $0x128] sm:$0xff] %vm3955_vm3, %v13697_v48 }
 0x1ee   : > { %3996 = vst.msk [vmem:[#allocation3 + $0x138] sm:$0xff] %vm3955_vm3, %v13697_v48  ;;  %3997 = vst.msk [vmem:[#allocation3 + $0x140] sm:$0xff] %vm3955_vm3, %v13697_v48 }
 0x1ef   : > { %9742 = vmatmul.mubr.msk.f32.gmra.mrb[16].mxu0 %vm311_vm1, %v11490_v14  ;;  %v3101_v14 = vld [vmem:[#allocation2 + $0x199] sm:$0xff]  ;;  %3999 = vst.msk [vmem:[#allocation3 + $0x150] sm:$0xff] %vm3955_vm3, %v13697_v48  ;;  %4000 = vst.msk [vmem:[#allocation3 + $0x158] sm:$0xff] %vm3955_vm3, %v13697_v48 }
 0x1f0   : > { %9744 = vmatprep.mubr.msk.f32.mxu0 %vm311_vm1, %v11500_v3  ;;  %v13672_v3 = vld [vmem:[#allocation67_spill] sm:$0xff]  ;;  %4002 = vst.msk [vmem:[#allocation3 + $0x168] sm:$0xff] %vm3955_vm3, %v13697_v48  ;;  %4003 = vst.msk [vmem:[#allocation3 + $0x170] sm:$0xff] %vm3955_vm3, %v13697_v48 }
 0x1f1   : > { %4005 = vst.msk [vmem:[#allocation3 + $0x180] sm:$0xff] %vm3955_vm3, %v13697_v48  ;;  %4006 = vst.msk [vmem:[#allocation3 + $0x188] sm:$0xff] %vm3955_vm3, %v13697_v48 }
 0x1f2   : > { %4008 = vst.msk [vmem:[#allocation3 + $0x198] sm:$0xff] %vm3955_vm3, %v13697_v48  ;;  %4009 = vst.msk [vmem:[#allocation3 + $0x1a0] sm:$0xff] %vm3955_vm3, %v13697_v48 }
 0x1f3   : > { %9745 = vmatmul.mubr.msk.f32.gmra.mrb[18].mxu0 %vm311_vm1, %v11506_v16  ;;  %v3102_v16 = vld [vmem:[#allocation2 + $0x1a1] sm:$0xff]  ;;  %3962 = vst.msk [vmem:[#allocation3 + $0x28] sm:$0x3] %vm3958_vm4, %v13697_v48  ;;  %3959 = vst.msk [vmem:[#allocation3 + $0x10] sm:$0x3] %vm3958_vm4, %v13697_v48 }
 0x1f4   : > { %9747 = vmatprep.mubr.msk.f32.mxu0 %vm311_vm1, %v11516_v5  ;;  %v13674_v5 = vld [vmem:[#allocation70_spill] sm:$0xff]  ;;  %3965 = vst.msk [vmem:[#allocation3 + $0x40] sm:$0x3] %vm3958_vm4, %v13697_v48  ;;  %3968 = vst.msk [vmem:[#allocation3 + $0x58] sm:$0x3] %vm3958_vm4, %v13697_v48 }
 0x1f5   : > { %3971 = vst.msk [vmem:[#allocation3 + $0x70] sm:$0x3] %vm3958_vm4, %v13697_v48  ;;  %3974 = vst.msk [vmem:[#allocation3 + $0x88] sm:$0x3] %vm3958_vm4, %v13697_v48 }
 0x1f6   : > { %3977 = vst.msk [vmem:[#allocation3 + $0xa0] sm:$0x3] %vm3958_vm4, %v13697_v48  ;;  %3980 = vst.msk [vmem:[#allocation3 + $0xb8] sm:$0x3] %vm3958_vm4, %v13697_v48 }
 0x1f7   : > { %9748 = vmatmul.mubr.msk.f32.gmra.mrb[20].mxu0 %vm311_vm1, %v11522_v18  ;;  %v13676_v18 = vld [vmem:[#allocation38_spill] sm:$0xff]  ;;  %3983 = vst.msk [vmem:[#allocation3 + $0xd0] sm:$0x3] %vm3958_vm4, %v13697_v48  ;;  %3986 = vst.msk [vmem:[#allocation3 + $0xe8] sm:$0x3] %vm3958_vm4, %v13697_v48 }
 0x1f8   : > { %9750 = vmatprep.mubr.msk.f32.mxu0 %vm311_vm1, %v13668_v4  ;;  %3989 = vst.msk [vmem:[#allocation3 + $0x100] sm:$0x3] %vm3958_vm4, %v13697_v48  ;;  %3992 = vst.msk [vmem:[#allocation3 + $0x118] sm:$0x3] %vm3958_vm4, %v13697_v48 }
 0x1f9   : > { %3995 = vst.msk [vmem:[#allocation3 + $0x130] sm:$0x3] %vm3958_vm4, %v13697_v48  ;;  %3998 = vst.msk [vmem:[#allocation3 + $0x148] sm:$0x3] %vm3958_vm4, %v13697_v48 }
 0x1fa   : > { %4001 = vst.msk [vmem:[#allocation3 + $0x160] sm:$0x3] %vm3958_vm4, %v13697_v48  ;;  %4004 = vst.msk [vmem:[#allocation3 + $0x178] sm:$0x3] %vm3958_vm4, %v13697_v48  ;;  %v4078_v55 = vld [vmem:[#allocation3 + $0x9] sm:$0xff] }
 0x1fb   : > { %9751 = vmatmul.mubr.msk.f32.gmra.mrb[22].mxu0 %vm311_vm1, %v13669_v9  ;;  %4007 = vst.msk [vmem:[#allocation3 + $0x190] sm:$0x3] %vm3958_vm4, %v13697_v48  ;;  %4010 = vst.msk [vmem:[#allocation3 + $0x1a8] sm:$0x3] %vm3958_vm4, %v13697_v48  ;;  %9818 = vmatmul.mubr.msk.f32.vlgmr.msra.gmra.mrb[16].mxu1 %vm3955_vm3, %v4078_v55 }
 0x1fc   : > { %9753 = vmatprep.mubr.msk.f32.mxu0 %vm311_vm1, %v13670_v10  ;;  %9866 = vmatpush3.msra.mxu1 %v4076_v56 }
 0x1ff   : > { %9754 = vmatmul.mubr.msk.f32.gmra.mrb[24].mxu0 %vm311_vm1, %v13671_v11 }
 0x200   : > { %9756 = vmatprep.mubr.msk.f32.mxu0 %vm311_vm1, %v13672_v3 }
 0x203   : > { %9757 = vmatmul.mubr.msk.f32.gmra.mrb[26].mxu0 %vm311_vm1, %v13673_v12 }
 0x204   : > { %9759 = vmatprep.mubr.msk.f32.mxu0 %vm311_vm1, %v13674_v5 }
 0x207   : > { %9760 = vmatmul.mubr.msk.f32.gmra.mrb[28].mxu0 %vm311_vm1, %v13675_v15 }
 0x208   : > { %9762 = vmatprep.mubr.msk.f32.mxu0 %vm311_vm1, %v3101_v14 }
 0x20b   : > { %9763 = vmatmul.mubr.msk.f32.gmra.mrb[30].mxu0 %vm311_vm1, %v3102_v16 }
 0x20c   : > { %9767 = vmatprep.mubr.msk.f32.mxu0 %vm311_vm1, %v13676_v18 }
 0x20f   : > { %9768 = vmatmul.mubr.msk.f32.vlgmr.msra.gmra.mrb[0].mxu0 %vm311_vm1, %v13677_v24 }
 0x210   : > { %9770 = vmatprep.mubr.msk.f32.mxu0 %vm311_vm1, %v13678_v28 }
 0x213   : > { %9771 = vmatmul.mubr.msk.f32.gmra.mrb[2].mxu0 %vm311_vm1, %v13679_v29 }
 0x214   : > { %9773 = vmatprep.mubr.msk.f32.mxu0 %vm311_vm1, %v13680_v30 }
 0x217   : > { %9774 = vmatmul.mubr.msk.f32.gmra.mrb[4].mxu0 %vm311_vm1, %v13681_v31 }
 0x218   : > { %9776 = vmatprep.mubr.msk.f32.mxu0 %vm311_vm1, %v13682_v32 }
 0x21b   : > { %9777 = vmatmul.mubr.msk.f32.gmra.mrb[6].mxu0 %vm311_vm1, %v13683_v33 }
 0x21c   : > { %9779 = vmatprep.mubr.msk.f32.mxu0 %vm311_vm1, %v13684_v34 }
 0x21f   : > { %9780 = vmatmul.mubr.msk.f32.gmra.mrb[8].mxu0 %vm311_vm1, %v13685_v36 }
 0x220   : > { %9782 = vmatprep.mubr.msk.f32.mxu0 %vm311_vm1, %v13686_v37 }
 0x223   : > { %9783 = vmatmul.mubr.msk.f32.gmra.mrb[10].mxu0 %vm311_vm1, %v13687_v38 }
 0x224   : > { %9785 = vmatprep.mubr.msk.f32.mxu0 %vm311_vm1, %v13688_v39 }
 0x227   : > { %9786 = vmatmul.mubr.msk.f32.gmra.mrb[12].mxu0 %vm311_vm1, %v13689_v40 }
 0x228   : > { %9788 = vmatprep.mubr.msk.f32.mxu0 %vm311_vm1, %v13690_v41 }
 0x22b   : > { %9789 = vmatmul.mubr.msk.f32.gmra.mrb[14].mxu0 %vm311_vm1, %v13691_v42 }
 0x22c   : > { %9791 = vmatprep.mubr.msk.f32.mxu0 %vm311_vm1, %v13692_v43 }
 0x22f   : > { %9792 = vmatmul.mubr.msk.f32.gmra.mrb[16].mxu0 %vm311_vm1, %v13660_v26 }
 0x230   : > { %9794 = vmatprep.mubr.msk.f32.mxu0 %vm311_vm1, %v13661_v27 }
 0x233   : > { %9795 = vmatmul.mubr.msk.f32.gmra.mrb[18].mxu0 %vm311_vm1, %v13693_v44 }
 0x234   : > { %9797 = vmatprep.mubr.msk.f32.mxu0 %vm311_vm1, %v13663_v35 }
 0x237   : > { %9798 = vmatmul.mubr.msk.f32.gmra.mrb[20].mxu0 %vm311_vm1, %v13664_v19 }
 0x238   : > { %9800 = vmatprep.mubr.msk.f32.mxu0 %vm311_vm1, %v13694_v45 }
 0x23b   : > { %9801 = vmatmul.mubr.msk.f32.gmra.mrb[22].mxu0 %vm311_vm1, %v13666_v22  ;;  %v3492_v22 = vld [vmem:[#allocation2 + $0x1a2] sm:$0xff] }
 0x23c   : > { %9803 = vmatprep.mubr.msk.f32.mxu0 %vm311_vm1, %v13667_v13  ;;  %v13696_v13 = vld [vmem:[#allocation4_spill] sm:$0xff] }
 0x23f   : > { %9804 = vmatmul.mubr.msk.f32.gmra.mrb[24].mxu0 %vm311_vm1, %v11568_v23  ;;  %v12144_v23 = vpop.f32.mrb[14].mxu1 }
 0x240   : > { %9806 = vmatprep.mubr.msk.f32.mxu0 %vm311_vm1, %v13695_v46  ;;  %v12146_v35 = vpop.f32.mrb[15].mxu1 }
 0x243   : > { %9807 = vmatmul.mubr.msk.f32.gmra.mrb[26].mxu0 %vm311_vm1, %v11582_v53  ;;  %v12151_v53 = vld [vmem:[%s13417_s3 + $0x10] sm:$0xff] }
 0x244   : > { %9809 = vmatprep.mubr.msk.f32.mxu0 %vm311_vm1, %v11796_v20  ;;  %9915 = vmatprep.subr.mxu1 %v12151_v53 }
 0x247   : > { %9810 = vmatmul.mubr.msk.f32.gmra.mrb[28].mxu0 %vm311_vm1, %v11802_v54 }
 0x248   : > { %9812 = vmatprep.mubr.msk.f32.mxu0 %vm311_vm1, %v3491_v47 }
 0x24b   : > { %9813 = vmatmul.mubr.msk.f32.gmra.mrb[30].mxu0 %vm311_vm1, %v3492_v22 }
 0x24c   : > { %10267 = vmatprep.mubr.msk.f32.mxu0 %vm311_vm1, %v13696_v13 }
 0x2e2   : > { %v9769_v26 = vpop.f32.mrb[0].mxu0 }
 0x2e3   : > { %v3856_v27 = vmul.f32 %v9769_v26, %v12157_v21  ;;  %v3660_v20 = vpop.f32.mrb[1].mxu0 }
 0x2e4   : > { %v3855_v19 = vmul.f32 %v12157_v21, %v3660_v20 }
 0x2e5   : > { %v3892_v54 = vadd.f32 %v12162_v52, %v3856_v27 }
 0x2e6   : > { %v3891_v1 = vadd.f32 %v12162_v52, %v3855_v19  ;;  %v9772_v17 = vpop.f32.mrb[2].mxu0 }
 0x2e7   : > { %v3924_v25 = vmax.f32 %v3892_v54, 0.0  ;;  %v3858_v4 = vmul.f32 %v9772_v17, %v12157_v21  ;;  %v3670_v9 = vpop.f32.mrb[3].mxu0 }
 0x2e8   : > { %v3923_v10 = vmax.f32 %v3891_v1, 0.0  ;;  %v3857_v11 = vmul.f32 %v12157_v21, %v3670_v9 }
 0x2e9   : > { %4013 = vst.msk [vmem:[#allocation3 + $0x21] sm:$0xff] %vm3955_vm3, %v3924_v25  ;;  %v3894_v3 = vadd.f32 %v12162_v52, %v3858_v4 }
 0x2ea   : > { %4012 = vst.msk [vmem:[#allocation3 + $0x19] sm:$0xff] %vm3955_vm3, %v3923_v10  ;;  %v3893_v12 = vadd.f32 %v12162_v52, %v3857_v11  ;;  %v9775_v5 = vpop.f32.mrb[4].mxu0 }
 0x2eb   : > { %v3926_v14 = vmax.f32 %v3894_v3, 0.0  ;;  %v3860_v15 = vmul.f32 %v9775_v5, %v12157_v21  ;;  %v3680_v16 = vpop.f32.mrb[5].mxu0 }
 0x2ec   : > { %v3925_v18 = vmax.f32 %v3893_v12, 0.0  ;;  %v3859_v24 = vmul.f32 %v12157_v21, %v3680_v16 }
 0x2ed   : > { %4015 = vst.msk [vmem:[#allocation3 + $0x39] sm:$0xff] %vm3955_vm3, %v3926_v14  ;;  %v3896_v28 = vadd.f32 %v12162_v52, %v3860_v15 }
 0x2ee   : > { %4014 = vst.msk [vmem:[#allocation3 + $0x31] sm:$0xff] %vm3955_vm3, %v3925_v18  ;;  %v3895_v29 = vadd.f32 %v12162_v52, %v3859_v24  ;;  %v9778_v30 = vpop.f32.mrb[6].mxu0 }
 0x2ef   : > { %v3928_v31 = vmax.f32 %v3896_v28, 0.0  ;;  %v3862_v32 = vmul.f32 %v9778_v30, %v12157_v21  ;;  %v3690_v33 = vpop.f32.mrb[7].mxu0 }
 0x2f0   : > { %v3927_v34 = vmax.f32 %v3895_v29, 0.0  ;;  %v3861_v36 = vmul.f32 %v12157_v21, %v3690_v33  ;;  %v12190_v41 = vld [vmem:[#allocation3 + $0x21] sm:$0xff] }
 0x2f1   : > { %4017 = vst.msk [vmem:[#allocation3 + $0x51] sm:$0xff] %vm3955_vm3, %v3928_v31  ;;  %v3898_v37 = vadd.f32 %v12162_v52, %v3862_v32  ;;  %v12184_v38 = vld [vmem:[#allocation3 + $0x19] sm:$0xff] }
 0x2f2   : > { %4016 = vst.msk [vmem:[#allocation3 + $0x49] sm:$0xff] %vm3955_vm3, %v3927_v34  ;;  %v3897_v39 = vadd.f32 %v12162_v52, %v3861_v36  ;;  %v9781_v40 = vpop.f32.mrb[8].mxu0  ;;  %9820 = vmatprep.mubr.msk.f32.mxu1 %vm3955_vm3, %v12184_v38 }
 0x2f3   : > { %v3930_v42 = vmax.f32 %v3898_v37, 0.0  ;;  %v3864_v43 = vmul.f32 %v9781_v40, %v12157_v21  ;;  %v3700_v44 = vpop.f32.mrb[9].mxu0  ;;  %9821 = vmatmul.mubr.msk.f32.gmra.mrb[18].mxu1 %vm3955_vm3, %v12190_v41 }
 0x2f4   : > { %v3929_v45 = vmax.f32 %v3897_v39, 0.0  ;;  %v3863_v46 = vmul.f32 %v12157_v21, %v3700_v44  ;;  %v12204_v49 = vld [vmem:[#allocation3 + $0x39] sm:$0xff] }
 0x2f5   : > { %4019 = vst.msk [vmem:[#allocation3 + $0x69] sm:$0xff] %vm3955_vm3, %v3930_v42  ;;  %v3900_v47 = vadd.f32 %v12162_v52, %v3864_v43  ;;  %v12198_v22 = vld [vmem:[#allocation3 + $0x31] sm:$0xff] }
 0x2f6   : > { %4018 = vst.msk [vmem:[#allocation3 + $0x61] sm:$0xff] %vm3955_vm3, %v3929_v45  ;;  %v3899_v13 = vadd.f32 %v12162_v52, %v3863_v46  ;;  %v9784_v48 = vpop.f32.mrb[10].mxu0  ;;  %9823 = vmatprep.mubr.msk.f32.mxu1 %vm3955_vm3, %v12198_v22 }
 0x2f7   : > { %v3932_v55 = vmax.f32 %v3900_v47, 0.0  ;;  %v3866_v56 = vmul.f32 %v9784_v48, %v12157_v21  ;;  %v3710_v26 = vpop.f32.mrb[11].mxu0  ;;  %9824 = vmatmul.mubr.msk.f32.gmra.mrb[20].mxu1 %vm3955_vm3, %v12204_v49 }
 0x2f8   : > { %v3931_v27 = vmax.f32 %v3899_v13, 0.0  ;;  %v3865_v20 = vmul.f32 %v12157_v21, %v3710_v26  ;;  %v12218_v25 = vld [vmem:[#allocation3 + $0x51] sm:$0xff] }
 0x2f9   : > { %4021 = vst.msk [vmem:[#allocation3 + $0x81] sm:$0xff] %vm3955_vm3, %v3932_v55  ;;  %v3902_v19 = vadd.f32 %v12162_v52, %v3866_v56  ;;  %v12212_v54 = vld [vmem:[#allocation3 + $0x49] sm:$0xff] }
 0x2fa   : > { %4020 = vst.msk [vmem:[#allocation3 + $0x79] sm:$0xff] %vm3955_vm3, %v3931_v27  ;;  %v3901_v1 = vadd.f32 %v12162_v52, %v3865_v20  ;;  %v9787_v17 = vpop.f32.mrb[12].mxu0  ;;  %9826 = vmatprep.mubr.msk.f32.mxu1 %vm3955_vm3, %v12212_v54 }
 0x2fb   : > { %v3934_v4 = vmax.f32 %v3902_v19, 0.0  ;;  %v3868_v9 = vmul.f32 %v9787_v17, %v12157_v21  ;;  %v3720_v10 = vpop.f32.mrb[13].mxu0  ;;  %9827 = vmatmul.mubr.msk.f32.gmra.mrb[22].mxu1 %vm3955_vm3, %v12218_v25 }
 0x2fc   : > { %v3933_v11 = vmax.f32 %v3901_v1, 0.0  ;;  %v3867_v3 = vmul.f32 %v12157_v21, %v3720_v10  ;;  %v12232_v16 = vld [vmem:[#allocation3 + $0x69] sm:$0xff] }
 0x2fd   : > { %4023 = vst.msk [vmem:[#allocation3 + $0x99] sm:$0xff] %vm3955_vm3, %v3934_v4  ;;  %v3904_v12 = vadd.f32 %v12162_v52, %v3868_v9  ;;  %v12226_v5 = vld [vmem:[#allocation3 + $0x61] sm:$0xff] }
 0x2fe   : > { %4022 = vst.msk [vmem:[#allocation3 + $0x91] sm:$0xff] %vm3955_vm3, %v3933_v11  ;;  %v3903_v14 = vadd.f32 %v12162_v52, %v3867_v3  ;;  %v9790_v15 = vpop.f32.mrb[14].mxu0  ;;  %9829 = vmatprep.mubr.msk.f32.mxu1 %vm3955_vm3, %v12226_v5 }
 0x2ff   : > { %v3936_v18 = vmax.f32 %v3904_v12, 0.0  ;;  %v3870_v24 = vmul.f32 %v9790_v15, %v12157_v21  ;;  %v3730_v28 = vpop.f32.mrb[15].mxu0  ;;  %9830 = vmatmul.mubr.msk.f32.gmra.mrb[24].mxu1 %vm3955_vm3, %v12232_v16 }
 0x300   : > { %v3935_v29 = vmax.f32 %v3903_v14, 0.0  ;;  %v3869_v30 = vmul.f32 %v12157_v21, %v3730_v28  ;;  %v12246_v36 = vld [vmem:[#allocation3 + $0x81] sm:$0xff] }
 0x301   : > { %4025 = vst.msk [vmem:[#allocation3 + $0xb1] sm:$0xff] %vm3955_vm3, %v3936_v18  ;;  %v3906_v31 = vadd.f32 %v12162_v52, %v3870_v24  ;;  %v12240_v32 = vld [vmem:[#allocation3 + $0x79] sm:$0xff] }
 0x302   : > { %4024 = vst.msk [vmem:[#allocation3 + $0xa9] sm:$0xff] %vm3955_vm3, %v3935_v29  ;;  %v3905_v33 = vadd.f32 %v12162_v52, %v3869_v30  ;;  %v9793_v34 = vpop.f32.mrb[16].mxu0  ;;  %9832 = vmatprep.mubr.msk.f32.mxu1 %vm3955_vm3, %v12240_v32 }
 0x303   : > { %v3938_v37 = vmax.f32 %v3906_v31, 0.0  ;;  %v10317_v39 = vadd.f32 %v9793_v34, %v12116_v57  ;;  %v3740_v40 = vpop.f32.mrb[17].mxu0  ;;  %9833 = vmatmul.mubr.msk.f32.gmra.mrb[26].mxu1 %vm3955_vm3, %v12246_v36 }
 0x304   : > { %v3937_v42 = vmax.f32 %v3905_v33, 0.0  ;;  %v10318_v43 = vadd.f32 %v3740_v40, %v12118_v58  ;;  %v12260_v57 = vld [vmem:[#allocation3 + $0x99] sm:$0xff] }
 0x305   : > { %4027 = vst.msk [vmem:[#allocation3 + $0xc9] sm:$0xff] %vm3955_vm3, %v3938_v37  ;;  %v3872_v44 = vmul.f32 %v10317_v39, %v12157_v21  ;;  %v12254_v45 = vld [vmem:[#allocation3 + $0x91] sm:$0xff] }
 0x306   : > { %4026 = vst.msk [vmem:[#allocation3 + $0xc1] sm:$0xff] %vm3955_vm3, %v3937_v42  ;;  %v3871_v46 = vmul.f32 %v10318_v43, %v12157_v21  ;;  %v9796_v47 = vpop.f32.mrb[18].mxu0  ;;  %9835 = vmatprep.mubr.msk.f32.mxu1 %vm3955_vm3, %v12254_v45 }
 0x307   : > { %v3908_v13 = vadd.f32 %v12162_v52, %v3872_v44  ;;  %v10319_v58 = vadd.f32 %v9796_v47, %v12120_v59  ;;  %v3750_v48 = vpop.f32.mrb[19].mxu0  ;;  %9836 = vmatmul.mubr.msk.f32.gmra.mrb[28].mxu1 %vm3955_vm3, %v12260_v57 }
 0x308   : > { %v3907_v55 = vadd.f32 %v12162_v52, %v3871_v46  ;;  %v10320_v56 = vadd.f32 %v3750_v48, %v12122_v60  ;;  %v12274_v59 = vld [vmem:[#allocation3 + $0xb1] sm:$0xff] }
 0x309   : > { %v3940_v26 = vmax.f32 %v3908_v13, 0.0  ;;  %v3874_v27 = vmul.f32 %v10319_v58, %v12157_v21  ;;  %v12269_v20 = vld [vmem:[#allocation3 + $0xa9] sm:$0xff] }
 0x30a   : > { %v3939_v19 = vmax.f32 %v3907_v55, 0.0  ;;  %v3873_v1 = vmul.f32 %v10320_v56, %v12157_v21  ;;  %v9799_v17 = vpop.f32.mrb[20].mxu0  ;;  %9838 = vmatprep.mubr.msk.f32.mxu1 %vm3955_vm3, %v12269_v20 }
 0x30b   : > { %4029 = vst.msk [vmem:[#allocation3 + $0xe1] sm:$0xff] %vm3955_vm3, %v3940_v26  ;;  %v3910_v4 = vadd.f32 %v12162_v52, %v3874_v27  ;;  %v10321_v60 = vadd.f32 %v9799_v17, %v12124_v61  ;;  %v3760_v9 = vpop.f32.mrb[21].mxu0  ;;  %9839 = vmatmul.mubr.msk.f32.gmra.mrb[30].mxu1 %vm3955_vm3, %v12274_v59 }
 0x30c   : > { %4028 = vst.msk [vmem:[#allocation3 + $0xd9] sm:$0xff] %vm3955_vm3, %v3939_v19  ;;  %v3909_v10 = vadd.f32 %v12162_v52, %v3873_v1  ;;  %v10322_v11 = vadd.f32 %v3760_v9, %v12126_v62  ;;  %v12290_v61 = vld [vmem:[#allocation3 + $0xc9] sm:$0xff] }
 0x30d   : > { %v3942_v3 = vmax.f32 %v3910_v4, 0.0  ;;  %v3876_v12 = vmul.f32 %v10321_v60, %v12157_v21  ;;  %v12285_v14 = vld [vmem:[#allocation3 + $0xc1] sm:$0xff] }
 0x30e   : > { %v3941_v15 = vmax.f32 %v3909_v10, 0.0  ;;  %v3875_v18 = vmul.f32 %v10322_v11, %v12157_v21  ;;  %v9802_v24 = vpop.f32.mrb[22].mxu0  ;;  %9841 = vmatprep.mubr.msk.f32.mxu1 %vm3955_vm3, %v12285_v14 }
 0x30f   : > { %4031 = vst.msk [vmem:[#allocation3 + $0xf9] sm:$0xff] %vm3955_vm3, %v3942_v3  ;;  %v3912_v28 = vadd.f32 %v12162_v52, %v3876_v12  ;;  %v10323_v62 = vadd.f32 %v9802_v24, %v12128_v63  ;;  %v3770_v29 = vpop.f32.mrb[23].mxu0  ;;  %9842 = vmatmul.mubr.msk.f32.gmra.mrb[32].mxu1 %vm3955_vm3, %v12290_v61 }
 0x310   : > { %4030 = vst.msk [vmem:[#allocation3 + $0xf1] sm:$0xff] %vm3955_vm3, %v3941_v15  ;;  %v3911_v30 = vadd.f32 %v12162_v52, %v3875_v18  ;;  %v10324_v31 = vadd.f32 %v3770_v29, %v12130_v0 }
 0x311   : > { %v3944_v33 = vmax.f32 %v3912_v28, 0.0  ;;  %v3878_v34 = vmul.f32 %v10323_v62, %v12157_v21 }
 0x312   : > { %v3943_v37 = vmax.f32 %v3911_v30, 0.0  ;;  %v3877_v39 = vmul.f32 %v10324_v31, %v12157_v21  ;;  %v9805_v40 = vpop.f32.mrb[24].mxu0  ;;  %v12312_v47 = vld [vmem:[#allocation3 + $0xe1] sm:$0xff] }
 0x313   : > { %4033 = vst.msk [vmem:[#allocation3 + $0x111] sm:$0xff] %vm3955_vm3, %v3944_v33  ;;  %v3914_v63 = vadd.f32 %v12162_v52, %v3878_v34  ;;  %v10325_v42 = vadd.f32 %v9805_v40, %v12132_v2  ;;  %v3780_v43 = vpop.f32.mrb[25].mxu0  ;;  %v12305_v44 = vld [vmem:[#allocation3 + $0xd9] sm:$0xff] }
 0x314   : > { %4032 = vst.msk [vmem:[#allocation3 + $0x109] sm:$0xff] %vm3955_vm3, %v3943_v37  ;;  %v3913_v0 = vadd.f32 %v12162_v52, %v3877_v39  ;;  %v10326_v46 = vadd.f32 %v3780_v43, %v12134_v6  ;;  %9844 = vmatprep.mubr.msk.f32.mxu1 %vm3955_vm3, %v12305_v44 }
 0x315   : > { %v3946_v13 = vmax.f32 %v3914_v63, 0.0  ;;  %v3880_v58 = vmul.f32 %v10325_v42, %v12157_v21  ;;  %9845 = vmatmul.mubr.msk.f32.gmra.mrb[34].mxu1 %vm3955_vm3, %v12312_v47 }
 0x316   : > { %v3945_v2 = vmax.f32 %v3913_v0, 0.0  ;;  %v3879_v48 = vmul.f32 %v10326_v46, %v12157_v21  ;;  %v9808_v55 = vpop.f32.mrb[26].mxu0  ;;  %v12328_v17 = vld [vmem:[#allocation3 + $0xf9] sm:$0xff] }
 0x317   : > { %4035 = vst.msk [vmem:[#allocation3 + $0x129] sm:$0xff] %vm3955_vm3, %v3946_v13  ;;  %v3916_v56 = vadd.f32 %v12162_v52, %v3880_v58  ;;  %v10327_v6 = vadd.f32 %v9808_v55, %v12136_v7  ;;  %v3790_v26 = vpop.f32.mrb[27].mxu0  ;;  %v12321_v27 = vld [vmem:[#allocation3 + $0xf1] sm:$0xff]  ;;  %v4044_v55 = vld [vmem:[#allocation3] sm:$0xff] }
 0x318   : > { %4034 = vst.msk [vmem:[#allocation3 + $0x121] sm:$0xff] %vm3955_vm3, %v3945_v2  ;;  %v3915_v19 = vadd.f32 %v12162_v52, %v3879_v48  ;;  %v10328_v1 = vadd.f32 %v3790_v26, %v12138_v8  ;;  %9847 = vmatprep.mubr.msk.f32.mxu1 %vm3955_vm3, %v12321_v27  ;;  %v12400_v26 = vld [vmem:[%s13417_s3 + $0x18] sm:$0xff] }
 0x319   : > { %v3948_v4 = vmax.f32 %v3916_v56, 0.0  ;;  %v3882_v60 = vmul.f32 %v10327_v6, %v12157_v21  ;;  %9848 = vmatmul.mubr.msk.f32.gmra.mrb[36].mxu1 %vm3955_vm3, %v12328_v17  ;;  %v4045_v6 = vld [vmem:[#allocation3 + $0x8] sm:$0xff] }
 0x31a   : > { %v3947_v7 = vmax.f32 %v3915_v19, 0.0  ;;  %v3881_v9 = vmul.f32 %v10328_v1, %v12157_v21  ;;  %v9811_v10 = vpop.f32.mrb[28].mxu0  ;;  %v12344_v24 = vld [vmem:[#allocation3 + $0x111] sm:$0xff]  ;;  %v12409_v1 = vld [vmem:[#allocation3 + $0x20] sm:$0xff] }
 0x31b   : > { %4037 = vst.msk [vmem:[#allocation3 + $0x141] sm:$0xff] %vm3955_vm3, %v3948_v4  ;;  %v3918_v11 = vadd.f32 %v12162_v52, %v3882_v60  ;;  %v10329_v8 = vadd.f32 %v9811_v10, %v12140_v50  ;;  %v3800_v3 = vpop.f32.mrb[29].mxu0  ;;  %v12337_v12 = vld [vmem:[#allocation3 + $0x109] sm:$0xff]  ;;  %v12403_v19 = vld [vmem:[#allocation3 + $0x18] sm:$0xff] }
 0x31c   : > { %4036 = vst.msk [vmem:[#allocation3 + $0x139] sm:$0xff] %vm3955_vm3, %v3947_v7  ;;  %v3917_v15 = vadd.f32 %v12162_v52, %v3881_v9  ;;  %v10330_v18 = vadd.f32 %v3800_v3, %v12142_v51  ;;  %9850 = vmatprep.mubr.msk.f32.mxu1 %vm3955_vm3, %v12337_v12  ;;  %v12413_v4 = vld [vmem:[#allocation3 + $0x30] sm:$0xff]  ;;  %v12417_v60 = vld [vmem:[#allocation3 + $0x38] sm:$0xff]  ;;  %v12429_v9 = vld [vmem:[#allocation3 + $0x60] sm:$0xff] }
 0x31d   : > { %v3950_v28 = vmax.f32 %v3918_v11, 0.0  ;;  %v3884_v62 = vmul.f32 %v10329_v8, %v12157_v21  ;;  %9851 = vmatmul.mubr.msk.f32.gmra.mrb[38].mxu1 %vm3955_vm3, %v12344_v24  ;;  %v12425_v7 = vld [vmem:[#allocation3 + $0x50] sm:$0xff]  ;;  %v12433_v10 = vld [vmem:[#allocation3 + $0x68] sm:$0xff]  ;;  %v12437_v11 = vld [vmem:[#allocation3 + $0x78] sm:$0xff] }
 0x31e   : > { %v3949_v50 = vmax.f32 %v3917_v15, 0.0  ;;  %v3883_v29 = vmul.f32 %v10330_v18, %v12157_v21  ;;  %v9814_v30 = vpop.f32.mrb[30].mxu0  ;;  %v12360_v40 = vld [vmem:[#allocation3 + $0x129] sm:$0xff]  ;;  %v12441_v8 = vld [vmem:[#allocation3 + $0x80] sm:$0xff]  ;;  %v12449_v15 = vld [vmem:[#allocation3 + $0x98] sm:$0xff] }
 0x31f   : > { %4039 = vst.msk [vmem:[#allocation3 + $0x159] sm:$0xff] %vm3955_vm3, %v3950_v28  ;;  %v3920_v31 = vadd.f32 %v12162_v52, %v3884_v62  ;;  %v10331_v51 = vadd.f32 %v9814_v30, %v12144_v23  ;;  %v3810_v33 = vpop.f32.mrb[31].mxu0  ;;  %v12353_v34 = vld [vmem:[#allocation3 + $0x121] sm:$0xff]  ;;  %v12445_v3 = vld [vmem:[#allocation3 + $0x90] sm:$0xff] }
 0x320   : > { %4038 = vst.msk [vmem:[#allocation3 + $0x151] sm:$0xff] %vm3955_vm3, %v3949_v50  ;;  %v3919_v37 = vadd.f32 %v12162_v52, %v3883_v29  ;;  %v10332_v39 = vadd.f32 %v3810_v33, %v12146_v35  ;;  %9853 = vmatprep.mubr.msk.f32.mxu1 %vm3955_vm3, %v12353_v34  ;;  %v12453_v18 = vld [vmem:[#allocation3 + $0xa8] sm:$0xff]  ;;  %v12457_v28 = vld [vmem:[#allocation3 + $0xb0] sm:$0xff]  ;;  %v12461_v62 = vld [vmem:[#allocation3 + $0xc0] sm:$0xff] }
 0x321   : > { %v3952_v63 = vmax.f32 %v3920_v31, 0.0  ;;  %v3886_v42 = vmul.f32 %v10331_v51, %v12157_v21  ;;  %9854 = vmatmul.mubr.msk.f32.gmra.mrb[40].mxu1 %vm3955_vm3, %v12360_v40  ;;  %v12465_v50 = vld [vmem:[#allocation3 + $0xc8] sm:$0xff]  ;;  %v12469_v29 = vld [vmem:[#allocation3 + $0xd8] sm:$0xff]  ;;  %v12473_v30 = vld [vmem:[#allocation3 + $0xe0] sm:$0xff] }
 0x322   : > { %v3951_v23 = vmax.f32 %v3919_v37, 0.0  ;;  %v3885_v43 = vmul.f32 %v10332_v39, %v12157_v21  ;;  %v12374_v13 = vld [vmem:[#allocation3 + $0x141] sm:$0xff]  ;;  %v12477_v31 = vld [vmem:[#allocation3 + $0xf0] sm:$0xff]  ;;  %v12481_v51 = vld [vmem:[#allocation3 + $0xf8] sm:$0xff] }
 0x323   : > { %4041 = vst.msk [vmem:[#allocation3 + $0x171] sm:$0xff] %vm3955_vm3, %v3952_v63  ;;  %v3922_v0 = vadd.f32 %v12162_v52, %v3886_v42  ;;  %v12368_v46 = vld [vmem:[#allocation3 + $0x139] sm:$0xff]  ;;  %v12485_v33 = vld [vmem:[#allocation3 + $0x108] sm:$0xff]  ;;  %v12489_v37 = vld [vmem:[#allocation3 + $0x110] sm:$0xff] }
 0x324   : > { %4040 = vst.msk [vmem:[#allocation3 + $0x169] sm:$0xff] %vm3955_vm3, %v3951_v23  ;;  %v3921_v35 = vadd.f32 %v12162_v52, %v3885_v43  ;;  %9856 = vmatprep.mubr.msk.f32.mxu1 %vm3955_vm3, %v12368_v46  ;;  %v12493_v39 = vld [vmem:[#allocation3 + $0x120] sm:$0xff]  ;;  %v12497_v63 = vld [vmem:[#allocation3 + $0x128] sm:$0xff]  ;;  %v12501_v42 = vld [vmem:[#allocation3 + $0x138] sm:$0xff] }
 0x325   : > { %v3954_v58 = vmax.f32 %v3922_v0, 0.0  ;;  %9857 = vmatmul.mubr.msk.f32.gmra.mrb[42].mxu1 %vm3955_vm3, %v12374_v13  ;;  %v12505_v23 = vld [vmem:[#allocation3 + $0x140] sm:$0xff] }
 0x326   : > { %v3953_v21 = vmax.f32 %v3921_v35, 0.0  ;;  %v12384_v52 = vld [vmem:[#allocation3 + $0x159] sm:$0xff] }
 0x327   : > { %4043 = vst.msk [vmem:[#allocation3 + $0x189] sm:$0xff] %vm3955_vm3, %v3954_v58  ;;  %v12379_v2 = vld [vmem:[#allocation3 + $0x151] sm:$0xff]  ;;  %v4753_v58 = vld [vmem:[#allocation3 + $0x2] sm:$0xff] }
 0x328   : > { %4042 = vst.msk [vmem:[#allocation3 + $0x181] sm:$0xff] %vm3955_vm3, %v3953_v21  ;;  %9859 = vmatprep.mubr.msk.f32.mxu1 %vm3955_vm3, %v12379_v2  ;;  %v12509_v43 = vld [vmem:[#allocation3 + $0x150] sm:$0xff]  ;;  %v12513_v0 = vld [vmem:[#allocation3 + $0x158] sm:$0xff] }
 0x329   : > { %9860 = vmatmul.mubr.msk.f32.gmra.mrb[44].mxu1 %vm3955_vm3, %v12384_v52 }
 0x32a   : > { %v12392_v56 = vld [vmem:[#allocation3 + $0x171] sm:$0xff] }
 0x32b   : > { %v12388_v48 = vld [vmem:[#allocation3 + $0x169] sm:$0xff]  ;;  %13699 = vst [vmem:[#allocation37_spill] sm:$0xff] %v12392_v56 }
 0x32c   : > { %13698 = vst [vmem:[#allocation36_spill] sm:$0xff] %v12388_v48  ;;  %9862 = vmatprep.mubr.msk.f32.mxu1 %vm3955_vm3, %v12388_v48  ;;  %v12517_v35 = vld [vmem:[#allocation3 + $0x168] sm:$0xff]  ;;  %v12521_v21 = vld [vmem:[#allocation3 + $0x170] sm:$0xff] }
 0x32d   : > { %9863 = vmatmul.mubr.msk.f32.gmra.mrb[46].mxu1 %vm3955_vm3, %v12392_v56  ;;  %v12532_v56 = vld [vmem:[#allocation3 + $0x1a] sm:$0xff]  ;;  %v12538_v48 = vld [vmem:[#allocation3 + $0x22] sm:$0xff] }
 0x32e   : > { %9867 = vmatprep.mubr.msk.f32.mxu1 %vm3955_vm3, %v4044_v55  ;;  %v4754_v55 = vld [vmem:[#allocation3 + $0xa] sm:$0xff]  ;;  %13700 = vst [vmem:[#allocation55_spill] sm:$0xff] %v12532_v56  ;;  %13701 = vst [vmem:[#allocation56_spill] sm:$0xff] %v12538_v48 }
 0x331   : > { %9868 = vmatmul.mubr.msk.f32.vlgmr.msra.gmra.mrb[16].mxu1 %vm3955_vm3, %v4045_v6  ;;  %v12529_v6 = vld [vmem:[%s13417_s3 + $0x20] sm:$0xff] }
 0x332   : > { %9916 = vmatpush3.msra.mxu1 %v12151_v53  ;;  %9870 = vmatprep.mubr.msk.f32.mxu1 %vm3955_vm3, %v12403_v19  ;;  %v12421_v53 = vld [vmem:[#allocation3 + $0x48] sm:$0xff] }
 0x333   : > { %9965 = vmatprep.subr.mxu1 %v12400_v26 }
 0x335   : > { %9871 = vmatmul.mubr.msk.f32.gmra.mrb[18].mxu1 %vm3955_vm3, %v12409_v1 }
 0x336   : > { %9873 = vmatprep.mubr.msk.f32.mxu1 %vm3955_vm3, %v12413_v4 }
 0x339   : > { %9874 = vmatmul.mubr.msk.f32.gmra.mrb[20].mxu1 %vm3955_vm3, %v12417_v60 }
 0x33a   : > { %9876 = vmatprep.mubr.msk.f32.mxu1 %vm3955_vm3, %v12421_v53 }
 0x33d   : > { %9877 = vmatmul.mubr.msk.f32.gmra.mrb[22].mxu1 %vm3955_vm3, %v12425_v7 }
 0x33e   : > { %9879 = vmatprep.mubr.msk.f32.mxu1 %vm3955_vm3, %v12429_v9 }
 0x341   : > { %9880 = vmatmul.mubr.msk.f32.gmra.mrb[24].mxu1 %vm3955_vm3, %v12433_v10 }
 0x342   : > { %9882 = vmatprep.mubr.msk.f32.mxu1 %vm3955_vm3, %v12437_v11 }
 0x345   : > { %9883 = vmatmul.mubr.msk.f32.gmra.mrb[26].mxu1 %vm3955_vm3, %v12441_v8 }
 0x346   : > { %9885 = vmatprep.mubr.msk.f32.mxu1 %vm3955_vm3, %v12445_v3 }
 0x349   : > { %9886 = vmatmul.mubr.msk.f32.gmra.mrb[28].mxu1 %vm3955_vm3, %v12449_v15 }
 0x34a   : > { %9888 = vmatprep.mubr.msk.f32.mxu1 %vm3955_vm3, %v12453_v18 }
 0x34d   : > { %9889 = vmatmul.mubr.msk.f32.gmra.mrb[30].mxu1 %vm3955_vm3, %v12457_v28 }
 0x34e   : > { %9891 = vmatprep.mubr.msk.f32.mxu1 %vm3955_vm3, %v12461_v62 }
 0x351   : > { %9892 = vmatmul.mubr.msk.f32.gmra.mrb[32].mxu1 %vm3955_vm3, %v12465_v50 }
 0x352   : > { %9894 = vmatprep.mubr.msk.f32.mxu1 %vm3955_vm3, %v12469_v29 }
 0x355   : > { %9895 = vmatmul.mubr.msk.f32.gmra.mrb[34].mxu1 %vm3955_vm3, %v12473_v30 }
 0x356   : > { %9897 = vmatprep.mubr.msk.f32.mxu1 %vm3955_vm3, %v12477_v31 }
 0x359   : > { %9898 = vmatmul.mubr.msk.f32.gmra.mrb[36].mxu1 %vm3955_vm3, %v12481_v51 }
 0x35a   : > { %9900 = vmatprep.mubr.msk.f32.mxu1 %vm3955_vm3, %v12485_v33 }
 0x35d   : > { %9901 = vmatmul.mubr.msk.f32.gmra.mrb[38].mxu1 %vm3955_vm3, %v12489_v37 }
 0x35e   : > { %9903 = vmatprep.mubr.msk.f32.mxu1 %vm3955_vm3, %v12493_v39 }
 0x361   : > { %9904 = vmatmul.mubr.msk.f32.gmra.mrb[40].mxu1 %vm3955_vm3, %v12497_v63 }
 0x362   : > { %9906 = vmatprep.mubr.msk.f32.mxu1 %vm3955_vm3, %v12501_v42 }
 0x365   : > { %9907 = vmatmul.mubr.msk.f32.gmra.mrb[42].mxu1 %vm3955_vm3, %v12505_v23 }
 0x366   : > { %9909 = vmatprep.mubr.msk.f32.mxu1 %vm3955_vm3, %v12509_v43 }
 0x369   : > { %9910 = vmatmul.mubr.msk.f32.gmra.mrb[44].mxu1 %vm3955_vm3, %v12513_v0 }
 0x36a   : > { %9912 = vmatprep.mubr.msk.f32.mxu1 %vm3955_vm3, %v12517_v35 }
 0x36d   : > { %9913 = vmatmul.mubr.msk.f32.gmra.mrb[46].mxu1 %vm3955_vm3, %v12521_v21 }
 0x36e   : > { %9917 = vmatprep.mubr.msk.f32.mxu1 %vm3955_vm3, %v4753_v58  ;;  %v12542_v58 = vld [vmem:[#allocation3 + $0x32] sm:$0xff] }
 0x36f   : > { %13702 = vst [vmem:[#allocation58_spill] sm:$0xff] %v12542_v58 }
 0x371   : > { %9918 = vmatmul.mubr.msk.f32.vlgmr.msra.gmra.mrb[16].mxu1 %vm3955_vm3, %v4754_v55  ;;  %v12546_v55 = vld [vmem:[#allocation3 + $0x3a] sm:$0xff] }
 0x372   : > { %9966 = vmatpush3.msra.mxu1 %v12400_v26  ;;  %9920 = vmatprep.mubr.msk.f32.mxu1 %vm3955_vm3, %v12532_v56  ;;  %13703 = vst [vmem:[#allocation60_spill] sm:$0xff] %v12546_v55  ;;  %v12550_v26 = vld [vmem:[#allocation3 + $0x4a] sm:$0xff]  ;;  %v12554_v56 = vld [vmem:[#allocation3 + $0x52] sm:$0xff] }
 0x373   : > { %10015 = vmatprep.subr.mxu1 %v12529_v6  ;;  %13704 = vst [vmem:[#allocation64_spill] sm:$0xff] %v12550_v26  ;;  %13705 = vst [vmem:[#allocation66_spill] sm:$0xff] %v12554_v56 }
 0x375   : > { %9921 = vmatmul.mubr.msk.f32.gmra.mrb[18].mxu1 %vm3955_vm3, %v12538_v48  ;;  %v12558_v48 = vld [vmem:[#allocation3 + $0x62] sm:$0xff] }
 0x376   : > { %9923 = vmatprep.mubr.msk.f32.mxu1 %vm3955_vm3, %v12542_v58  ;;  %13706 = vst [vmem:[#allocation59_spill] sm:$0xff] %v12558_v48  ;;  %v12562_v58 = vld [vmem:[#allocation3 + $0x6a] sm:$0xff] }
 0x377   : > { %13707 = vst [vmem:[#allocation61_spill] sm:$0xff] %v12562_v58 }
 0x379   : > { %9924 = vmatmul.mubr.msk.f32.gmra.mrb[20].mxu1 %vm3955_vm3, %v12546_v55  ;;  %v12566_v55 = vld [vmem:[#allocation3 + $0x7a] sm:$0xff] }
 0x37a   : > { %9926 = vmatprep.mubr.msk.f32.mxu1 %vm3955_vm3, %v12550_v26  ;;  %13708 = vst [vmem:[#allocation63_spill] sm:$0xff] %v12566_v55  ;;  %v12570_v26 = vld [vmem:[#allocation3 + $0x82] sm:$0xff] }
 0x37b   : > { %13709 = vst [vmem:[#allocation65_spill] sm:$0xff] %v12570_v26 }
 0x37d   : > { %9927 = vmatmul.mubr.msk.f32.gmra.mrb[22].mxu1 %vm3955_vm3, %v12554_v56  ;;  %v12574_v56 = vld [vmem:[#allocation3 + $0x92] sm:$0xff] }
 0x37e   : > { %9929 = vmatprep.mubr.msk.f32.mxu1 %vm3955_vm3, %v12558_v48  ;;  %13710 = vst [vmem:[#allocation67_spill] sm:$0xff] %v12574_v56  ;;  %v12578_v48 = vld [vmem:[#allocation3 + $0x9a] sm:$0xff] }
 0x37f   : > { %13711 = vst [vmem:[#allocation68_spill] sm:$0xff] %v12578_v48 }
 0x381   : > { %9930 = vmatmul.mubr.msk.f32.gmra.mrb[24].mxu1 %vm3955_vm3, %v12562_v58  ;;  %v12582_v58 = vld [vmem:[#allocation3 + $0xaa] sm:$0xff] }
 0x382   : > { %9932 = vmatprep.mubr.msk.f32.mxu1 %vm3955_vm3, %v12566_v55  ;;  %13712 = vst [vmem:[#allocation70_spill] sm:$0xff] %v12582_v58  ;;  %v12586_v55 = vld [vmem:[#allocation3 + $0xb2] sm:$0xff] }
 0x383   : > { %13713 = vst [vmem:[#allocation71_spill] sm:$0xff] %v12586_v55 }
 0x385   : > { %9933 = vmatmul.mubr.msk.f32.gmra.mrb[26].mxu1 %vm3955_vm3, %v12570_v26  ;;  %v12590_v26 = vld [vmem:[#allocation3 + $0xc2] sm:$0xff] }
 0x386   : > { %9935 = vmatprep.mubr.msk.f32.mxu1 %vm3955_vm3, %v12574_v56  ;;  %13714 = vst [vmem:[#allocation38_spill] sm:$0xff] %v12590_v26  ;;  %v12594_v56 = vld [vmem:[#allocation3 + $0xca] sm:$0xff] }
 0x387   : > { %13715 = vst [vmem:[#allocation39_spill] sm:$0xff] %v12594_v56 }
 0x389   : > { %9936 = vmatmul.mubr.msk.f32.gmra.mrb[28].mxu1 %vm3955_vm3, %v12578_v48  ;;  %v12598_v48 = vld [vmem:[#allocation3 + $0xda] sm:$0xff] }
 0x38a   : > { %9938 = vmatprep.mubr.msk.f32.mxu1 %vm3955_vm3, %v12582_v58  ;;  %13716 = vst [vmem:[#allocation40_spill] sm:$0xff] %v12598_v48  ;;  %v12602_v58 = vld [vmem:[#allocation3 + $0xe2] sm:$0xff] }
 0x38b   : > { %13717 = vst [vmem:[#allocation41_spill] sm:$0xff] %v12602_v58 }
 0x38d   : > { %9939 = vmatmul.mubr.msk.f32.gmra.mrb[30].mxu1 %vm3955_vm3, %v12586_v55  ;;  %v12606_v55 = vld [vmem:[#allocation3 + $0xf2] sm:$0xff] }
 0x38e   : > { %9941 = vmatprep.mubr.msk.f32.mxu1 %vm3955_vm3, %v12590_v26  ;;  %13718 = vst [vmem:[#allocation42_spill] sm:$0xff] %v12606_v55  ;;  %v12610_v26 = vld [vmem:[#allocation3 + $0xfa] sm:$0xff] }
 0x38f   : > { %13719 = vst [vmem:[#allocation43_spill] sm:$0xff] %v12610_v26 }
 0x391   : > { %9942 = vmatmul.mubr.msk.f32.gmra.mrb[32].mxu1 %vm3955_vm3, %v12594_v56  ;;  %v12614_v56 = vld [vmem:[#allocation3 + $0x10a] sm:$0xff] }
 0x392   : > { %9944 = vmatprep.mubr.msk.f32.mxu1 %vm3955_vm3, %v12598_v48  ;;  %13720 = vst [vmem:[#allocation44_spill] sm:$0xff] %v12614_v56  ;;  %v12618_v48 = vld [vmem:[#allocation3 + $0x112] sm:$0xff] }
 0x393   : > { %13721 = vst [vmem:[#allocation45_spill] sm:$0xff] %v12618_v48 }
 0x395   : > { %9945 = vmatmul.mubr.msk.f32.gmra.mrb[34].mxu1 %vm3955_vm3, %v12602_v58  ;;  %v12622_v58 = vld [vmem:[#allocation3 + $0x122] sm:$0xff] }
 0x396   : > { %9947 = vmatprep.mubr.msk.f32.mxu1 %vm3955_vm3, %v12606_v55  ;;  %13722 = vst [vmem:[#allocation46_spill] sm:$0xff] %v12622_v58  ;;  %v12626_v55 = vld [vmem:[#allocation3 + $0x12a] sm:$0xff] }
 0x397   : > { %13723 = vst [vmem:[#allocation47_spill] sm:$0xff] %v12626_v55 }
 0x399   : > { %9948 = vmatmul.mubr.msk.f32.gmra.mrb[36].mxu1 %vm3955_vm3, %v12610_v26  ;;  %v12630_v26 = vld [vmem:[#allocation3 + $0x13a] sm:$0xff] }
 0x39a   : > { %9950 = vmatprep.mubr.msk.f32.mxu1 %vm3955_vm3, %v12614_v56  ;;  %13724 = vst [vmem:[#allocation48_spill] sm:$0xff] %v12630_v26  ;;  %v12634_v56 = vld [vmem:[#allocation3 + $0x142] sm:$0xff] }
 0x39d   : > { %9951 = vmatmul.mubr.msk.f32.gmra.mrb[38].mxu1 %vm3955_vm3, %v12618_v48  ;;  %v12638_v48 = vld [vmem:[#allocation3 + $0x152] sm:$0xff] }
 0x39e   : > { %9953 = vmatprep.mubr.msk.f32.mxu1 %vm3955_vm3, %v12622_v58  ;;  %13725 = vst [vmem:[#allocation49_spill] sm:$0xff] %v12638_v48  ;;  %v12642_v58 = vld [vmem:[#allocation3 + $0x15a] sm:$0xff] }
 0x3a1   : > { %9954 = vmatmul.mubr.msk.f32.gmra.mrb[40].mxu1 %vm3955_vm3, %v12626_v55  ;;  %v12646_v55 = vld [vmem:[#allocation3 + $0x16a] sm:$0xff] }
 0x3a2   : > { %9956 = vmatprep.mubr.msk.f32.mxu1 %vm3955_vm3, %v12630_v26  ;;  %v12650_v26 = vld [vmem:[#allocation3 + $0x172] sm:$0xff] }
 0x3a5   : > { %9957 = vmatmul.mubr.msk.f32.gmra.mrb[42].mxu1 %vm3955_vm3, %v12634_v56 }
 0x3a6   : > { %9959 = vmatprep.mubr.msk.f32.mxu1 %vm3955_vm3, %v12638_v48  ;;  %v8565_v48 = vld [vmem:[%s13417_s3 + $0x28] sm:$0xff] }
 0x3a9   : > { %9960 = vmatmul.mubr.msk.f32.gmra.mrb[44].mxu1 %vm3955_vm3, %v12642_v58 }
 0x3aa   : > { %9962 = vmatprep.mubr.msk.f32.mxu1 %vm3955_vm3, %v12646_v55 }
 0x3ad   : > { %9963 = vmatmul.mubr.msk.f32.gmra.mrb[46].mxu1 %vm3955_vm3, %v12650_v26 }
 0x3ae   : > { %9967 = vmatprep.mubr.msk.f32.mxu1 %vm3955_vm3, %v12403_v19  ;;  %v12718_v19 = vld [vmem:[#allocation3 + $0x180] sm:$0xff] }
 0x3b1   : > { %9968 = vmatmul.mubr.msk.f32.vlgmr.msra.gmra.mrb[16].mxu1 %vm3955_vm3, %v12409_v1  ;;  %v12722_v1 = vld [vmem:[#allocation3 + $0x188] sm:$0xff] }
 0x3b2   : > { %10016 = vmatpush3.msra.mxu1 %v12529_v6  ;;  %9970 = vmatprep.mubr.msk.f32.mxu1 %vm3955_vm3, %v12413_v4  ;;  %v8598_v6 = vld [vmem:[%s13417_s3 + $0x30] sm:$0xff] }
 0x3b3   : > { %10065 = vmatprep.subr.mxu1 %v8565_v48 }
 0x3b5   : > { %9971 = vmatmul.mubr.msk.f32.gmra.mrb[18].mxu1 %vm3955_vm3, %v12417_v60 }
 0x3b6   : > { %9973 = vmatprep.mubr.msk.f32.mxu1 %vm3955_vm3, %v12421_v53 }
 0x3b9   : > { %9974 = vmatmul.mubr.msk.f32.gmra.mrb[20].mxu1 %vm3955_vm3, %v12425_v7 }
 0x3ba   : > { %9976 = vmatprep.mubr.msk.f32.mxu1 %vm3955_vm3, %v12429_v9 }
 0x3bd   : > { %9977 = vmatmul.mubr.msk.f32.gmra.mrb[22].mxu1 %vm3955_vm3, %v12433_v10 }
 0x3be   : > { %9979 = vmatprep.mubr.msk.f32.mxu1 %vm3955_vm3, %v12437_v11 }
 0x3c1   : > { %9980 = vmatmul.mubr.msk.f32.gmra.mrb[24].mxu1 %vm3955_vm3, %v12441_v8 }
 0x3c2   : > { %9982 = vmatprep.mubr.msk.f32.mxu1 %vm3955_vm3, %v12445_v3 }
 0x3c5   : > { %9983 = vmatmul.mubr.msk.f32.gmra.mrb[26].mxu1 %vm3955_vm3, %v12449_v15 }
 0x3c6   : > { %9985 = vmatprep.mubr.msk.f32.mxu1 %vm3955_vm3, %v12453_v18 }
 0x3c9   : > { %9986 = vmatmul.mubr.msk.f32.gmra.mrb[28].mxu1 %vm3955_vm3, %v12457_v28 }
 0x3ca   : > { %9988 = vmatprep.mubr.msk.f32.mxu1 %vm3955_vm3, %v12461_v62 }
 0x3cd   : > { %9989 = vmatmul.mubr.msk.f32.gmra.mrb[30].mxu1 %vm3955_vm3, %v12465_v50 }
 0x3ce   : > { %9991 = vmatprep.mubr.msk.f32.mxu1 %vm3955_vm3, %v12469_v29 }
 0x3d1   : > { %9992 = vmatmul.mubr.msk.f32.gmra.mrb[32].mxu1 %vm3955_vm3, %v12473_v30 }
 0x3d2   : > { %9994 = vmatprep.mubr.msk.f32.mxu1 %vm3955_vm3, %v12477_v31 }
 0x3d5   : > { %9995 = vmatmul.mubr.msk.f32.gmra.mrb[34].mxu1 %vm3955_vm3, %v12481_v51 }
 0x3d6   : > { %9997 = vmatprep.mubr.msk.f32.mxu1 %vm3955_vm3, %v12485_v33 }
 0x3d9   : > { %9998 = vmatmul.mubr.msk.f32.gmra.mrb[36].mxu1 %vm3955_vm3, %v12489_v37 }
 0x3da   : > { %10000 = vmatprep.mubr.msk.f32.mxu1 %vm3955_vm3, %v12493_v39 }
 0x3dd   : > { %10001 = vmatmul.mubr.msk.f32.gmra.mrb[38].mxu1 %vm3955_vm3, %v12497_v63 }
 0x3de   : > { %10003 = vmatprep.mubr.msk.f32.mxu1 %vm3955_vm3, %v12501_v42 }
 0x3e1   : > { %10004 = vmatmul.mubr.msk.f32.gmra.mrb[40].mxu1 %vm3955_vm3, %v12505_v23 }
 0x3e2   : > { %10006 = vmatprep.mubr.msk.f32.mxu1 %vm3955_vm3, %v12509_v43 }
 0x3e5   : > { %10007 = vmatmul.mubr.msk.f32.gmra.mrb[42].mxu1 %vm3955_vm3, %v12513_v0 }
 0x3e6   : > { %10009 = vmatprep.mubr.msk.f32.mxu1 %vm3955_vm3, %v12517_v35 }
 0x3e9   : > { %10010 = vmatmul.mubr.msk.f32.gmra.mrb[44].mxu1 %vm3955_vm3, %v12521_v21 }
 0x3ea   : > { %10012 = vmatprep.mubr.msk.f32.mxu1 %vm3955_vm3, %v12718_v19 }
 0x3ed   : > { %10013 = vmatmul.mubr.msk.f32.gmra.mrb[46].mxu1 %vm3955_vm3, %v12722_v1 }
 0x3ee   : > { %10017 = vmatprep.mubr.msk.f32.mxu1 %vm3955_vm3, %v12184_v38  ;;  %v13726_v38 = vld [vmem:[#allocation36_spill] sm:$0xff] }
 0x3f1   : > { %10018 = vmatmul.mubr.msk.f32.vlgmr.msra.gmra.mrb[16].mxu1 %vm3955_vm3, %v12190_v41  ;;  %v13727_v41 = vld [vmem:[#allocation37_spill] sm:$0xff] }
 0x3f2   : > { %10066 = vmatpush3.msra.mxu1 %v8565_v48  ;;  %10020 = vmatprep.mubr.msk.f32.mxu1 %vm3955_vm3, %v12198_v22  ;;  %v12789_v22 = vld [vmem:[#allocation3 + $0x181] sm:$0xff]  ;;  %v13738_v48 = vld [vmem:[#allocation9_spill] sm:$0xff] }
 0x3f3   : > { %10115 = vmatprep.subr.mxu1 %v8598_v6 }
 0x3f5   : > { %10021 = vmatmul.mubr.msk.f32.gmra.mrb[18].mxu1 %vm3955_vm3, %v12204_v49  ;;  %v12793_v49 = vld [vmem:[#allocation3 + $0x189] sm:$0xff] }
 0x3f6   : > { %10023 = vmatprep.mubr.msk.f32.mxu1 %vm3955_vm3, %v12212_v54  ;;  %v13728_v54 = vld [vmem:[#allocation55_spill] sm:$0xff] }
 0x3f9   : > { %10024 = vmatmul.mubr.msk.f32.gmra.mrb[20].mxu1 %vm3955_vm3, %v12218_v25  ;;  %v7535_v25 = vld [vmem:[%s13419_s5] sm:$0xf] }
 0x3fa   : > { %10026 = vmatprep.mubr.msk.f32.mxu1 %vm3955_vm3, %v12226_v5  ;;  %10265 = vmatprep.subr.msk.mxu0 %vm567_vm0, %v7535_v25  ;;  %v12806_v5 = vld [vmem:[%s13417_s3 + $0x38] sm:$0xff] }
 0x3fb   : > { %10266 = vmatpush3.msk.msra.mxu0 %vm567_vm0, %v7535_v25  ;;  %v13741_v25 = vld [vmem:[#allocation61_spill] sm:$0xff] }
 0x3fd   : > { %10027 = vmatmul.mubr.msk.f32.gmra.mrb[22].mxu1 %vm3955_vm3, %v12232_v16  ;;  %v13729_v16 = vld [vmem:[#allocation56_spill] sm:$0xff] }
 0x3fe   : > { %10029 = vmatprep.mubr.msk.f32.mxu1 %vm3955_vm3, %v12240_v32  ;;  %v13730_v32 = vld [vmem:[#allocation5_spill] sm:$0xff] }
 0x3ff   : > { %10268 = vmatmul.mubr.msk.f32.vlgmr.msra.gmra.mrb[32].mxu0 %vm311_vm1, %v13730_v32  ;;  %v13743_v32 = vld [vmem:[#allocation63_spill] sm:$0xff] }
 0x401   : > { %10030 = vmatmul.mubr.msk.f32.gmra.mrb[24].mxu1 %vm3955_vm3, %v12246_v36  ;;  %v13731_v36 = vld [vmem:[#allocation58_spill] sm:$0xff] }
 0x402   : > { %10032 = vmatprep.mubr.msk.f32.mxu1 %vm3955_vm3, %v12254_v45  ;;  %v13732_v45 = vld [vmem:[#allocation6_spill] sm:$0xff] }
 0x403   : > { %10270 = vmatprep.mubr.msk.f32.mxu0 %vm311_vm1, %v13732_v45  ;;  %v13744_v45 = vld [vmem:[#allocation12_spill] sm:$0xff] }
 0x405   : > { %10033 = vmatmul.mubr.msk.f32.gmra.mrb[26].mxu1 %vm3955_vm3, %v12260_v57  ;;  %v13733_v57 = vld [vmem:[#allocation60_spill] sm:$0xff] }
 0x406   : > { %10035 = vmatprep.mubr.msk.f32.mxu1 %vm3955_vm3, %v12269_v20  ;;  %v13734_v20 = vld [vmem:[#allocation7_spill] sm:$0xff] }
 0x407   : > { %10271 = vmatmul.mubr.msk.f32.gmra.mrb[34].mxu0 %vm311_vm1, %v13734_v20  ;;  %v13745_v20 = vld [vmem:[#allocation65_spill] sm:$0xff] }
 0x409   : > { %10036 = vmatmul.mubr.msk.f32.gmra.mrb[28].mxu1 %vm3955_vm3, %v12274_v59  ;;  %v13735_v59 = vld [vmem:[#allocation64_spill] sm:$0xff] }
 0x40a   : > { %10038 = vmatprep.mubr.msk.f32.mxu1 %vm3955_vm3, %v12285_v14  ;;  %v13736_v14 = vld [vmem:[#allocation8_spill] sm:$0xff] }
 0x40b   : > { %10273 = vmatprep.mubr.msk.f32.mxu0 %vm311_vm1, %v13736_v14  ;;  %v13746_v14 = vld [vmem:[#allocation13_spill] sm:$0xff] }
 0x40c   : > { %10274 = vmatmul.mubr.msk.f32.gmra.mrb[36].mxu0 %vm311_vm1, %v13738_v48  ;;  %v13747_v48 = vld [vmem:[#allocation67_spill] sm:$0xff] }
 0x40d   : > { %10039 = vmatmul.mubr.msk.f32.gmra.mrb[30].mxu1 %vm3955_vm3, %v12290_v61  ;;  %v13737_v61 = vld [vmem:[#allocation66_spill] sm:$0xff] }
 0x40e   : > { %10041 = vmatprep.mubr.msk.f32.mxu1 %vm3955_vm3, %v12305_v44 }
 0x411   : > { %10042 = vmatmul.mubr.msk.f32.gmra.mrb[32].mxu1 %vm3955_vm3, %v12312_v47 }
 0x412   : > { %10044 = vmatprep.mubr.msk.f32.mxu1 %vm3955_vm3, %v12321_v27 }
 0x415   : > { %10045 = vmatmul.mubr.msk.f32.gmra.mrb[34].mxu1 %vm3955_vm3, %v12328_v17 }
 0x416   : > { %10047 = vmatprep.mubr.msk.f32.mxu1 %vm3955_vm3, %v12337_v12 }
 0x419   : > { %10048 = vmatmul.mubr.msk.f32.gmra.mrb[36].mxu1 %vm3955_vm3, %v12344_v24 }
 0x41a   : > { %10050 = vmatprep.mubr.msk.f32.mxu1 %vm3955_vm3, %v12353_v34 }
 0x41d   : > { %10051 = vmatmul.mubr.msk.f32.gmra.mrb[38].mxu1 %vm3955_vm3, %v12360_v40 }
 0x41e   : > { %10053 = vmatprep.mubr.msk.f32.mxu1 %vm3955_vm3, %v12368_v46 }
 0x421   : > { %10054 = vmatmul.mubr.msk.f32.gmra.mrb[40].mxu1 %vm3955_vm3, %v12374_v13 }
 0x422   : > { %10056 = vmatprep.mubr.msk.f32.mxu1 %vm3955_vm3, %v12379_v2 }
 0x425   : > { %10057 = vmatmul.mubr.msk.f32.gmra.mrb[42].mxu1 %vm3955_vm3, %v12384_v52 }
 0x426   : > { %10059 = vmatprep.mubr.msk.f32.mxu1 %vm3955_vm3, %v13726_v38 }
 0x429   : > { %10060 = vmatmul.mubr.msk.f32.gmra.mrb[44].mxu1 %vm3955_vm3, %v13727_v41 }
 0x42a   : > { %10062 = vmatprep.mubr.msk.f32.mxu1 %vm3955_vm3, %v12789_v22 }
 0x42d   : > { %10063 = vmatmul.mubr.msk.f32.gmra.mrb[46].mxu1 %vm3955_vm3, %v12793_v49 }
 0x42e   : > { %10067 = vmatprep.mubr.msk.f32.mxu1 %vm3955_vm3, %v13728_v54  ;;  %v13740_v54 = vld [vmem:[#allocation10_spill] sm:$0xff] }
 0x42f   : > { %10276 = vmatprep.mubr.msk.f32.mxu0 %vm311_vm1, %v13740_v54  ;;  %v13748_v54 = vld [vmem:[#allocation14_spill] sm:$0xff] }
 0x431   : > { %10068 = vmatmul.mubr.msk.f32.vlgmr.msra.gmra.mrb[16].mxu1 %vm3955_vm3, %v13729_v16  ;;  %v13742_v16 = vld [vmem:[#allocation11_spill] sm:$0xff] }
 0x432   : > { %10116 = vmatpush3.msra.mxu1 %v8598_v6  ;;  %10070 = vmatprep.mubr.msk.f32.mxu1 %vm3955_vm3, %v13731_v36  ;;  %v13739_v6 = vld [vmem:[#allocation59_spill] sm:$0xff] }
 0x433   : > { %10165 = vmatprep.subr.mxu1 %v12806_v5  ;;  %10277 = vmatmul.mubr.msk.f32.gmra.mrb[38].mxu0 %vm311_vm1, %v13742_v16  ;;  %v13750_v16 = vld [vmem:[#allocation15_spill] sm:$0xff] }
 0x434   : > { %10279 = vmatprep.mubr.msk.f32.mxu0 %vm311_vm1, %v13744_v45  ;;  %v13752_v45 = vld [vmem:[#allocation16_spill] sm:$0xff] }
 0x435   : > { %10071 = vmatmul.mubr.msk.f32.gmra.mrb[18].mxu1 %vm3955_vm3, %v13733_v57 }
 0x436   : > { %10073 = vmatprep.mubr.msk.f32.mxu1 %vm3955_vm3, %v13735_v59 }
 0x437   : > { %10280 = vmatmul.mubr.msk.f32.gmra.mrb[40].mxu0 %vm311_vm1, %v13746_v14  ;;  %v13754_v14 = vld [vmem:[#allocation17_spill] sm:$0xff] }
 0x438   : > { %10282 = vmatprep.mubr.msk.f32.mxu0 %vm311_vm1, %v13748_v54  ;;  %v13756_v54 = vld [vmem:[#allocation18_spill] sm:$0xff] }
 0x439   : > { %10074 = vmatmul.mubr.msk.f32.gmra.mrb[20].mxu1 %vm3955_vm3, %v13737_v61 }
 0x43a   : > { %10076 = vmatprep.mubr.msk.f32.mxu1 %vm3955_vm3, %v13739_v6 }
 0x43b   : > { %10283 = vmatmul.mubr.msk.f32.gmra.mrb[42].mxu0 %vm311_vm1, %v13750_v16  ;;  %v13758_v16 = vld [vmem:[#allocation19_spill] sm:$0xff] }
 0x43c   : > { %10285 = vmatprep.mubr.msk.f32.mxu0 %vm311_vm1, %v13752_v45  ;;  %v13760_v45 = vld [vmem:[#allocation20_spill] sm:$0xff] }
 0x43d   : > { %10077 = vmatmul.mubr.msk.f32.gmra.mrb[22].mxu1 %vm3955_vm3, %v13741_v25  ;;  %v13749_v25 = vld [vmem:[#allocation68_spill] sm:$0xff] }
 0x43e   : > { %10079 = vmatprep.mubr.msk.f32.mxu1 %vm3955_vm3, %v13743_v32  ;;  %v13751_v32 = vld [vmem:[#allocation70_spill] sm:$0xff] }
 0x43f   : > { %10286 = vmatmul.mubr.msk.f32.gmra.mrb[44].mxu0 %vm311_vm1, %v13754_v14  ;;  %v13762_v14 = vld [vmem:[#allocation21_spill] sm:$0xff] }
 0x440   : > { %10288 = vmatprep.mubr.msk.f32.mxu0 %vm311_vm1, %v13756_v54  ;;  %v13764_v54 = vld [vmem:[#allocation22_spill] sm:$0xff] }
 0x441   : > { %10080 = vmatmul.mubr.msk.f32.gmra.mrb[24].mxu1 %vm3955_vm3, %v13745_v20  ;;  %v13753_v20 = vld [vmem:[#allocation71_spill] sm:$0xff] }
 0x442   : > { %10082 = vmatprep.mubr.msk.f32.mxu1 %vm3955_vm3, %v13747_v48  ;;  %v13755_v48 = vld [vmem:[#allocation38_spill] sm:$0xff] }
 0x443   : > { %10289 = vmatmul.mubr.msk.f32.gmra.mrb[46].mxu0 %vm311_vm1, %v13758_v16  ;;  %v13766_v16 = vld [vmem:[#allocation23_spill] sm:$0xff] }
 0x444   : > { %10291 = vmatprep.mubr.msk.f32.mxu0 %vm311_vm1, %v13760_v45  ;;  %v13768_v45 = vld [vmem:[#allocation24_spill] sm:$0xff] }
 0x445   : > { %10083 = vmatmul.mubr.msk.f32.gmra.mrb[26].mxu1 %vm3955_vm3, %v13749_v25  ;;  %v13757_v25 = vld [vmem:[#allocation39_spill] sm:$0xff] }
 0x446   : > { %10085 = vmatprep.mubr.msk.f32.mxu1 %vm3955_vm3, %v13751_v32  ;;  %v13759_v32 = vld [vmem:[#allocation40_spill] sm:$0xff] }
 0x447   : > { %10292 = vmatmul.mubr.msk.f32.gmra.mrb[48].mxu0 %vm311_vm1, %v13762_v14  ;;  %v13770_v14 = vld [vmem:[#allocation25_spill] sm:$0xff] }
 0x448   : > { %10294 = vmatprep.mubr.msk.f32.mxu0 %vm311_vm1, %v13764_v54  ;;  %v13772_v54 = vld [vmem:[#allocation26_spill] sm:$0xff] }
 0x449   : > { %10086 = vmatmul.mubr.msk.f32.gmra.mrb[28].mxu1 %vm3955_vm3, %v13753_v20  ;;  %v13761_v20 = vld [vmem:[#allocation41_spill] sm:$0xff] }
 0x44a   : > { %10088 = vmatprep.mubr.msk.f32.mxu1 %vm3955_vm3, %v13755_v48  ;;  %v13763_v48 = vld [vmem:[#allocation42_spill] sm:$0xff] }
 0x44b   : > { %10295 = vmatmul.mubr.msk.f32.gmra.mrb[50].mxu0 %vm311_vm1, %v13766_v16  ;;  %v13774_v16 = vld [vmem:[#allocation27_spill] sm:$0xff] }
 0x44c   : > { %10297 = vmatprep.mubr.msk.f32.mxu0 %vm311_vm1, %v13768_v45  ;;  %v13776_v45 = vld [vmem:[#allocation28_spill] sm:$0xff] }
 0x44d   : > { %10089 = vmatmul.mubr.msk.f32.gmra.mrb[30].mxu1 %vm3955_vm3, %v13757_v25  ;;  %v13765_v25 = vld [vmem:[#allocation43_spill] sm:$0xff] }
 0x44e   : > { %10091 = vmatprep.mubr.msk.f32.mxu1 %vm3955_vm3, %v13759_v32  ;;  %v13767_v32 = vld [vmem:[#allocation44_spill] sm:$0xff] }
 0x44f   : > { %10298 = vmatmul.mubr.msk.f32.gmra.mrb[52].mxu0 %vm311_vm1, %v13770_v14  ;;  %v13777_v14 = vld [vmem:[#allocation29_spill] sm:$0xff] }
 0x450   : > { %10300 = vmatprep.mubr.msk.f32.mxu0 %vm311_vm1, %v13772_v54  ;;  %v13779_v54 = vld [vmem:[#allocation30_spill] sm:$0xff] }
 0x451   : > { %10092 = vmatmul.mubr.msk.f32.gmra.mrb[32].mxu1 %vm3955_vm3, %v13761_v20  ;;  %v13769_v20 = vld [vmem:[#allocation45_spill] sm:$0xff] }
 0x452   : > { %10094 = vmatprep.mubr.msk.f32.mxu1 %vm3955_vm3, %v13763_v48  ;;  %v13771_v48 = vld [vmem:[#allocation46_spill] sm:$0xff] }
 0x453   : > { %10301 = vmatmul.mubr.msk.f32.gmra.mrb[54].mxu0 %vm311_vm1, %v13774_v16  ;;  %v13780_v16 = vld [vmem:[#allocation31_spill] sm:$0xff] }
 0x454   : > { %10303 = vmatprep.mubr.msk.f32.mxu0 %vm311_vm1, %v13776_v45  ;;  %v13781_v45 = vld [vmem:[#allocation32_spill] sm:$0xff] }
 0x455   : > { %10095 = vmatmul.mubr.msk.f32.gmra.mrb[34].mxu1 %vm3955_vm3, %v13765_v25  ;;  %v13773_v25 = vld [vmem:[#allocation47_spill] sm:$0xff] }
 0x456   : > { %10097 = vmatprep.mubr.msk.f32.mxu1 %vm3955_vm3, %v13767_v32  ;;  %v13775_v32 = vld [vmem:[#allocation48_spill] sm:$0xff] }
 0x457   : > { %10304 = vmatmul.mubr.msk.f32.gmra.mrb[56].mxu0 %vm311_vm1, %v13777_v14  ;;  %v12924_v14 = vld [vmem:[#allocation3 + $0x182] sm:$0xff] }
 0x458   : > { %10306 = vmatprep.mubr.msk.f32.mxu0 %vm311_vm1, %v13779_v54  ;;  %v13783_v54 = vld [vmem:[#allocation34_spill] sm:$0xff] }
 0x459   : > { %10098 = vmatmul.mubr.msk.f32.gmra.mrb[36].mxu1 %vm3955_vm3, %v13769_v20 }
 0x45a   : > { %10100 = vmatprep.mubr.msk.f32.mxu1 %vm3955_vm3, %v13771_v48  ;;  %v13778_v48 = vld [vmem:[#allocation49_spill] sm:$0xff] }
 0x45b   : > { %10307 = vmatmul.mubr.msk.f32.gmra.mrb[58].mxu0 %vm311_vm1, %v13780_v16  ;;  %v12932_v16 = vld [vmem:[#allocation3 + $0x18a] sm:$0xff] }
 0x45c   : > { %10309 = vmatprep.mubr.msk.f32.mxu0 %vm311_vm1, %v13781_v45  ;;  %v13784_v45 = vld [vmem:[#allocation35_spill] sm:$0xff] }
 0x45d   : > { %10101 = vmatmul.mubr.msk.f32.gmra.mrb[38].mxu1 %vm3955_vm3, %v13773_v25 }
 0x45e   : > { %10103 = vmatprep.mubr.msk.f32.mxu1 %vm3955_vm3, %v13775_v32 }
 0x461   : > { %10104 = vmatmul.mubr.msk.f32.gmra.mrb[40].mxu1 %vm3955_vm3, %v12634_v56 }
 0x462   : > { %10106 = vmatprep.mubr.msk.f32.mxu1 %vm3955_vm3, %v13778_v48  ;;  %v13782_v48 = vld [vmem:[#allocation33_spill] sm:$0xff] }
 0x463   : > { %10310 = vmatmul.mubr.msk.f32.gmra.mrb[60].mxu0 %vm311_vm1, %v13782_v48  ;;  %v8664_v48 = vld [vmem:[%s13417_s3 + $0x40] sm:$0xff] }
 0x464   : > { %10312 = vmatprep.mubr.msk.f32.mxu0 %vm311_vm1, %v13783_v54 }
 0x465   : > { %10107 = vmatmul.mubr.msk.f32.gmra.mrb[42].mxu1 %vm3955_vm3, %v12642_v58 }
 0x466   : > { %10109 = vmatprep.mubr.msk.f32.mxu1 %vm3955_vm3, %v12646_v55 }
 0x467   : > { %10313 = vmatmul.mubr.msk.f32.gmra.mrb[62].mxu0 %vm311_vm1, %v13784_v45 }
 0x469   : > { %10110 = vmatmul.mubr.msk.f32.gmra.mrb[44].mxu1 %vm3955_vm3, %v12650_v26 }
 0x46a   : > { %10112 = vmatprep.mubr.msk.f32.mxu1 %vm3955_vm3, %v12924_v14 }
 0x46d   : > { %10113 = vmatmul.mubr.msk.f32.gmra.mrb[46].mxu1 %vm3955_vm3, %v12932_v16 }
 0x46e   : > { %10117 = vmatprep.mubr.msk.f32.mxu1 %vm3955_vm3, %v12413_v4  ;;  %v6332_v4 = vld [vmem:[#allocation3 + $0x198] sm:$0xff] }
 0x471   : > { %10118 = vmatmul.mubr.msk.f32.vlgmr.msra.gmra.mrb[16].mxu1 %vm3955_vm3, %v12417_v60  ;;  %v6333_v60 = vld [vmem:[#allocation3 + $0x1a0] sm:$0xff] }
 0x472   : > { %10166 = vmatpush3.msra.mxu1 %v12806_v5  ;;  %10120 = vmatprep.mubr.msk.f32.mxu1 %vm3955_vm3, %v12421_v53  ;;  %v6689_v53 = vld [vmem:[#allocation3 + $0x31] sm:$0xff] }
 0x473   : > { %10215 = vmatprep.subr.mxu1 %v8664_v48 }
 0x475   : > { %10121 = vmatmul.mubr.msk.f32.gmra.mrb[18].mxu1 %vm3955_vm3, %v12425_v7  ;;  %v6690_v7 = vld [vmem:[#allocation3 + $0x39] sm:$0xff] }
 0x476   : > { %10123 = vmatprep.mubr.msk.f32.mxu1 %vm3955_vm3, %v12429_v9  ;;  %v6691_v9 = vld [vmem:[#allocation3 + $0x49] sm:$0xff] }
 0x479   : > { %10124 = vmatmul.mubr.msk.f32.gmra.mrb[20].mxu1 %vm3955_vm3, %v12433_v10  ;;  %v6692_v10 = vld [vmem:[#allocation3 + $0x51] sm:$0xff] }
 0x47a   : > { %10126 = vmatprep.mubr.msk.f32.mxu1 %vm3955_vm3, %v12437_v11  ;;  %v6693_v11 = vld [vmem:[#allocation3 + $0x61] sm:$0xff] }
 0x47d   : > { %10127 = vmatmul.mubr.msk.f32.gmra.mrb[22].mxu1 %vm3955_vm3, %v12441_v8  ;;  %v6694_v8 = vld [vmem:[#allocation3 + $0x69] sm:$0xff] }
 0x47e   : > { %10129 = vmatprep.mubr.msk.f32.mxu1 %vm3955_vm3, %v12445_v3  ;;  %v6695_v3 = vld [vmem:[#allocation3 + $0x79] sm:$0xff] }
 0x481   : > { %10130 = vmatmul.mubr.msk.f32.gmra.mrb[24].mxu1 %vm3955_vm3, %v12449_v15  ;;  %v6696_v15 = vld [vmem:[#allocation3 + $0x81] sm:$0xff] }
 0x482   : > { %10132 = vmatprep.mubr.msk.f32.mxu1 %vm3955_vm3, %v12453_v18  ;;  %v6697_v18 = vld [vmem:[#allocation3 + $0x91] sm:$0xff] }
 0x485   : > { %10133 = vmatmul.mubr.msk.f32.gmra.mrb[26].mxu1 %vm3955_vm3, %v12457_v28  ;;  %v6698_v28 = vld [vmem:[#allocation3 + $0x99] sm:$0xff] }
 0x486   : > { %10135 = vmatprep.mubr.msk.f32.mxu1 %vm3955_vm3, %v12461_v62  ;;  %v6699_v62 = vld [vmem:[#allocation3 + $0xa9] sm:$0xff] }
 0x489   : > { %10136 = vmatmul.mubr.msk.f32.gmra.mrb[28].mxu1 %vm3955_vm3, %v12465_v50  ;;  %v6700_v50 = vld [vmem:[#allocation3 + $0xb1] sm:$0xff] }
 0x48a   : > { %10138 = vmatprep.mubr.msk.f32.mxu1 %vm3955_vm3, %v12469_v29  ;;  %v6701_v29 = vld [vmem:[#allocation3 + $0xc1] sm:$0xff] }
 0x48d   : > { %10139 = vmatmul.mubr.msk.f32.gmra.mrb[30].mxu1 %vm3955_vm3, %v12473_v30  ;;  %v6702_v30 = vld [vmem:[#allocation3 + $0xc9] sm:$0xff] }
 0x48e   : > { %10141 = vmatprep.mubr.msk.f32.mxu1 %vm3955_vm3, %v12477_v31  ;;  %v13794_v31 = vld [vmem:[#allocation40_spill] sm:$0xff] }
 0x491   : > { %10142 = vmatmul.mubr.msk.f32.gmra.mrb[32].mxu1 %vm3955_vm3, %v12481_v51  ;;  %v13795_v51 = vld [vmem:[#allocation41_spill] sm:$0xff] }
 0x492   : > { %10144 = vmatprep.mubr.msk.f32.mxu1 %vm3955_vm3, %v12485_v33  ;;  %v13796_v33 = vld [vmem:[#allocation42_spill] sm:$0xff] }
 0x495   : > { %10145 = vmatmul.mubr.msk.f32.gmra.mrb[34].mxu1 %vm3955_vm3, %v12489_v37  ;;  %v13797_v37 = vld [vmem:[#allocation43_spill] sm:$0xff] }
 0x496   : > { %10147 = vmatprep.mubr.msk.f32.mxu1 %vm3955_vm3, %v12493_v39  ;;  %v13798_v39 = vld [vmem:[#allocation44_spill] sm:$0xff] }
 0x499   : > { %10148 = vmatmul.mubr.msk.f32.gmra.mrb[36].mxu1 %vm3955_vm3, %v12497_v63  ;;  %v13799_v63 = vld [vmem:[#allocation46_spill] sm:$0xff] }
 0x49a   : > { %10150 = vmatprep.mubr.msk.f32.mxu1 %vm3955_vm3, %v12501_v42  ;;  %v13800_v42 = vld [vmem:[#allocation49_spill] sm:$0xff] }
 0x49d   : > { %10151 = vmatmul.mubr.msk.f32.gmra.mrb[38].mxu1 %vm3955_vm3, %v12505_v23  ;;  %v7106_v23 = vld [vmem:[#allocation3 + $0x19a] sm:$0xff] }
 0x49e   : > { %10153 = vmatprep.mubr.msk.f32.mxu1 %vm3955_vm3, %v12509_v43 }
 0x4a1   : > { %10154 = vmatmul.mubr.msk.f32.gmra.mrb[40].mxu1 %vm3955_vm3, %v12513_v0 }
 0x4a2   : > { %10156 = vmatprep.mubr.msk.f32.mxu1 %vm3955_vm3, %v12517_v35 }
 0x4a5   : > { %10157 = vmatmul.mubr.msk.f32.gmra.mrb[42].mxu1 %vm3955_vm3, %v12521_v21 }
 0x4a6   : > { %10159 = vmatprep.mubr.msk.f32.mxu1 %vm3955_vm3, %v12718_v19 }
 0x4a9   : > { %10160 = vmatmul.mubr.msk.f32.gmra.mrb[44].mxu1 %vm3955_vm3, %v12722_v1 }
 0x4aa   : > { %10162 = vmatprep.mubr.msk.f32.mxu1 %vm3955_vm3, %v6332_v4 }
 0x4ad   : > { %10163 = vmatmul.mubr.msk.f32.gmra.mrb[46].mxu1 %vm3955_vm3, %v6333_v60 }
 0x4ae   : > { %10167 = vmatprep.mubr.msk.f32.mxu1 %vm3955_vm3, %v6689_v53 }
 0x4b1   : > { %10168 = vmatmul.mubr.msk.f32.vlgmr.msra.gmra.mrb[16].mxu1 %vm3955_vm3, %v6690_v7 }
 0x4b2   : > { %10216 = vmatpush3.msra.mxu1 %v8664_v48  ;;  %10170 = vmatprep.mubr.msk.f32.mxu1 %vm3955_vm3, %v6691_v9  ;;  %v13169_v9 = vld [vmem:[%s13420_s6] ss:$0 sm:$0xff] }
 0x4b5   : > { %10171 = vmatmul.mubr.msk.f32.gmra.mrb[18].mxu1 %vm3955_vm3, %v6692_v10 }
 0x4b6   : > { %10173 = vmatprep.mubr.msk.f32.mxu1 %vm3955_vm3, %v6693_v11  ;;  %v13175_v11 = vld [vmem:[%s13420_s6 + $0x1] ss:$0 sm:$0xff] }
 0x4b9   : > { %10174 = vmatmul.mubr.msk.f32.gmra.mrb[20].mxu1 %vm3955_vm3, %v6694_v8  ;;  %v13180_v8 = vld [vmem:[%s13418_s4] ss:$0 sm:$0xff] }
 0x4ba   : > { %10176 = vmatprep.mubr.msk.f32.mxu1 %vm3955_vm3, %v6695_v3 }
 0x4bd   : > { %10177 = vmatmul.mubr.msk.f32.gmra.mrb[22].mxu1 %vm3955_vm3, %v6696_v15  ;;  %v13186_v15 = vld [vmem:[%s13418_s4 + $0x1] ss:$0 sm:$0xff] }
 0x4be   : > { %10179 = vmatprep.mubr.msk.f32.mxu1 %vm3955_vm3, %v6697_v18 }
 0x4c1   : > { %10180 = vmatmul.mubr.msk.f32.gmra.mrb[24].mxu1 %vm3955_vm3, %v6698_v28 }
 0x4c2   : > { %10182 = vmatprep.mubr.msk.f32.mxu1 %vm3955_vm3, %v6699_v62 }
 0x4c5   : > { %10183 = vmatmul.mubr.msk.f32.gmra.mrb[26].mxu1 %vm3955_vm3, %v6700_v50 }
 0x4c6   : > { %10185 = vmatprep.mubr.msk.f32.mxu1 %vm3955_vm3, %v6701_v29 }
 0x4c9   : > { %10186 = vmatmul.mubr.msk.f32.gmra.mrb[28].mxu1 %vm3955_vm3, %v6702_v30 }
 0x4ca   : > { %10188 = vmatprep.mubr.msk.f32.mxu1 %vm3955_vm3, %v12305_v44  ;;  %v6719_v44 = vld [vmem:[#allocation3 + $0x199] sm:$0xff] }
 0x4cd   : > { %10189 = vmatmul.mubr.msk.f32.gmra.mrb[30].mxu1 %vm3955_vm3, %v12312_v47  ;;  %v6720_v47 = vld [vmem:[#allocation3 + $0x1a1] sm:$0xff] }
 0x4ce   : > { %10191 = vmatprep.mubr.msk.f32.mxu1 %vm3955_vm3, %v12321_v27  ;;  %v13785_v27 = vld [vmem:[#allocation61_spill] sm:$0xff] }
 0x4d1   : > { %10192 = vmatmul.mubr.msk.f32.gmra.mrb[32].mxu1 %vm3955_vm3, %v12328_v17  ;;  %v13786_v17 = vld [vmem:[#allocation63_spill] sm:$0xff] }
 0x4d2   : > { %10194 = vmatprep.mubr.msk.f32.mxu1 %vm3955_vm3, %v12337_v12  ;;  %v13787_v12 = vld [vmem:[#allocation65_spill] sm:$0xff] }
 0x4d5   : > { %10195 = vmatmul.mubr.msk.f32.gmra.mrb[34].mxu1 %vm3955_vm3, %v12344_v24  ;;  %v13788_v24 = vld [vmem:[#allocation67_spill] sm:$0xff] }
 0x4d6   : > { %10197 = vmatprep.mubr.msk.f32.mxu1 %vm3955_vm3, %v12353_v34  ;;  %v13789_v34 = vld [vmem:[#allocation68_spill] sm:$0xff] }
 0x4d9   : > { %10198 = vmatmul.mubr.msk.f32.gmra.mrb[36].mxu1 %vm3955_vm3, %v12360_v40  ;;  %v13790_v40 = vld [vmem:[#allocation70_spill] sm:$0xff] }
 0x4da   : > { %10200 = vmatprep.mubr.msk.f32.mxu1 %vm3955_vm3, %v12368_v46  ;;  %v10269_v46 = vpop.f32.mrb[32].mxu0 }
 0x4db   : > { %v7701_v43 = vpop.f32.mrb[33].mxu0  ;;  %v7866_v10 = vmul.f32 %v10269_v46, %v13169_v9 }
 0x4dc   : > { %v10272_v0 = vpop.f32.mrb[34].mxu0  ;;  %v7865_v3 = vmul.f32 %v13169_v9, %v7701_v43 }
 0x4dd   : > { %10201 = vmatmul.mubr.msk.f32.gmra.mrb[38].mxu1 %vm3955_vm3, %v12374_v13  ;;  %v13791_v13 = vld [vmem:[#allocation71_spill] sm:$0xff]  ;;  %v7711_v35 = vpop.f32.mrb[35].mxu0  ;;  %v7903_v28 = vadd.f32 %v13175_v11, %v7866_v10  ;;  %v7868_v29 = vmul.f32 %v10272_v0, %v13169_v9 }
 0x4de   : > { %10203 = vmatprep.mubr.msk.f32.mxu1 %vm3955_vm3, %v12379_v2  ;;  %v13792_v2 = vld [vmem:[#allocation38_spill] sm:$0xff]  ;;  %v7902_v30 = vadd.f32 %v13175_v11, %v7865_v3 }
 0x4df   : > { %v10275_v21 = vpop.f32.mrb[36].mxu0 }
 0x4e1   : > { %10204 = vmatmul.mubr.msk.f32.gmra.mrb[40].mxu1 %vm3955_vm3, %v12384_v52  ;;  %v13793_v52 = vld [vmem:[#allocation39_spill] sm:$0xff] }
 0x4e2   : > { %10206 = vmatprep.mubr.msk.f32.mxu1 %vm3955_vm3, %v13726_v38 }
 0x4e5   : > { %10207 = vmatmul.mubr.msk.f32.gmra.mrb[42].mxu1 %vm3955_vm3, %v13727_v41 }
 0x4e6   : > { %10209 = vmatprep.mubr.msk.f32.mxu1 %vm3955_vm3, %v12789_v22 }
 0x4e9   : > { %10210 = vmatmul.mubr.msk.f32.gmra.mrb[44].mxu1 %vm3955_vm3, %v12793_v49 }
 0x4ea   : > { %10212 = vmatprep.mubr.msk.f32.mxu1 %vm3955_vm3, %v6719_v44 }
 0x4ed   : > { %10213 = vmatmul.mubr.msk.f32.gmra.mrb[46].mxu1 %vm3955_vm3, %v6720_v47  ;;  %v7867_v47 = vmul.f32 %v13169_v9, %v7711_v35 }
 0x4ee   : > { %10217 = vmatprep.mubr.msk.f32.mxu1 %vm3955_vm3, %v13731_v36 }
 0x4f1   : > { %10218 = vmatmul.mubr.msk.f32.vlgmr.msra.gmra.mrb[16].mxu1 %vm3955_vm3, %v13733_v57 }
 0x4f2   : > { %10220 = vmatprep.mubr.msk.f32.mxu1 %vm3955_vm3, %v13735_v59 }
 0x4f5   : > { %10221 = vmatmul.mubr.msk.f32.gmra.mrb[18].mxu1 %vm3955_vm3, %v13737_v61 }
 0x4f6   : > { %10223 = vmatprep.mubr.msk.f32.mxu1 %vm3955_vm3, %v13739_v6 }
 0x4f9   : > { %10224 = vmatmul.mubr.msk.f32.gmra.mrb[20].mxu1 %vm3955_vm3, %v13785_v27 }
 0x4fa   : > { %10226 = vmatprep.mubr.msk.f32.mxu1 %vm3955_vm3, %v13786_v17 }
 0x4fd   : > { %10227 = vmatmul.mubr.msk.f32.gmra.mrb[22].mxu1 %vm3955_vm3, %v13787_v12 }
 0x4fe   : > { %10229 = vmatprep.mubr.msk.f32.mxu1 %vm3955_vm3, %v13788_v24 }
 0x501   : > { %10230 = vmatmul.mubr.msk.f32.gmra.mrb[24].mxu1 %vm3955_vm3, %v13789_v34  ;;  %v7905_v34 = vadd.f32 %v13175_v11, %v7868_v29 }
 0x502   : > { %10232 = vmatprep.mubr.msk.f32.mxu1 %vm3955_vm3, %v13790_v40 }
 0x505   : > { %10233 = vmatmul.mubr.msk.f32.gmra.mrb[26].mxu1 %vm3955_vm3, %v13791_v13  ;;  %v7870_v13 = vmul.f32 %v10275_v21, %v13169_v9 }
 0x506   : > { %10235 = vmatprep.mubr.msk.f32.mxu1 %vm3955_vm3, %v13792_v2 }
 0x509   : > { %10236 = vmatmul.mubr.msk.f32.gmra.mrb[28].mxu1 %vm3955_vm3, %v13793_v52  ;;  %v7904_v52 = vadd.f32 %v13175_v11, %v7867_v47 }
 0x50a   : > { %10238 = vmatprep.mubr.msk.f32.mxu1 %vm3955_vm3, %v13794_v31 }
 0x50d   : > { %10239 = vmatmul.mubr.msk.f32.gmra.mrb[30].mxu1 %vm3955_vm3, %v13795_v51 }
 0x50e   : > { %10241 = vmatprep.mubr.msk.f32.mxu1 %vm3955_vm3, %v13796_v33 }
 0x511   : > { %10242 = vmatmul.mubr.msk.f32.gmra.mrb[32].mxu1 %vm3955_vm3, %v13797_v37 }
 0x512   : > { %10244 = vmatprep.mubr.msk.f32.mxu1 %vm3955_vm3, %v13798_v39 }
 0x515   : > { %10245 = vmatmul.mubr.msk.f32.gmra.mrb[34].mxu1 %vm3955_vm3, %v13769_v20 }
 0x516   : > { %10247 = vmatprep.mubr.msk.f32.mxu1 %vm3955_vm3, %v13799_v63 }
 0x519   : > { %10248 = vmatmul.mubr.msk.f32.gmra.mrb[36].mxu1 %vm3955_vm3, %v13773_v25 }
 0x51a   : > { %10250 = vmatprep.mubr.msk.f32.mxu1 %vm3955_vm3, %v13775_v32 }
 0x51d   : > { %10251 = vmatmul.mubr.msk.f32.gmra.mrb[38].mxu1 %vm3955_vm3, %v12634_v56  ;;  %v7107_v56 = vld [vmem:[#allocation3 + $0x1a2] sm:$0xff] }
 0x51e   : > { %10253 = vmatprep.mubr.msk.f32.mxu1 %vm3955_vm3, %v13800_v42 }
 0x521   : > { %10254 = vmatmul.mubr.msk.f32.gmra.mrb[40].mxu1 %vm3955_vm3, %v12642_v58  ;;  %v7721_v58 = vpop.f32.mrb[37].mxu0 }
 0x522   : > { %10256 = vmatprep.mubr.msk.f32.mxu1 %vm3955_vm3, %v12646_v55  ;;  %v13114_v55 = vpop.f32.mrb[38].mxu0  ;;  %v7869_v51 = vmul.f32 %v13169_v9, %v7721_v58 }
 0x523   : > { %v7872_v35 = vmul.f32 %v13114_v55, %v13169_v9 }
 0x524   : > { %v7906_v58 = vadd.f32 %v13175_v11, %v7869_v51 }
 0x525   : > { %10257 = vmatmul.mubr.msk.f32.gmra.mrb[42].mxu1 %vm3955_vm3, %v12650_v26  ;;  %v13116_v26 = vpop.f32.mrb[39].mxu0 }
 0x526   : > { %10259 = vmatprep.mubr.msk.f32.mxu1 %vm3955_vm3, %v12924_v14  ;;  %v13118_v19 = vpop.f32.mrb[40].mxu0  ;;  %v7871_v3 = vmul.f32 %v13169_v9, %v13116_v26 }
 0x527   : > { %v13120_v1 = vpop.f32.mrb[41].mxu0 }
 0x528   : > { %v13122_v38 = vpop.f32.mrb[42].mxu0 }
 0x529   : > { %10260 = vmatmul.mubr.msk.f32.gmra.mrb[44].mxu1 %vm3955_vm3, %v12932_v16  ;;  %v13124_v41 = vpop.f32.mrb[43].mxu0 }
 0x52a   : > { %10262 = vmatprep.mubr.msk.f32.mxu1 %vm3955_vm3, %v7106_v23  ;;  %v13126_v22 = vpop.f32.mrb[44].mxu0 }
 0x52b   : > { %v13128_v49 = vpop.f32.mrb[45].mxu0 }
 0x52c   : > { %v13130_v5 = vpop.f32.mrb[46].mxu0 }
 0x52d   : > { %10263 = vmatmul.mubr.msk.f32.gmra.mrb[46].mxu1 %vm3955_vm3, %v7107_v56  ;;  %v13132_v36 = vpop.f32.mrb[47].mxu0  ;;  %v7907_v56 = vadd.f32 %v13175_v11, %v7870_v13 }
 0x52e   : > { %v13134_v57 = vpop.f32.mrb[48].mxu0 }
 0x52f   : > { %v13136_v59 = vpop.f32.mrb[49].mxu0 }
 0x530   : > { %v13138_v61 = vpop.f32.mrb[50].mxu0 }
 0x531   : > { %v13140_v6 = vpop.f32.mrb[51].mxu0 }
 0x532   : > { %v13142_v25 = vpop.f32.mrb[52].mxu0 }
 0x533   : > { %v13144_v32 = vpop.f32.mrb[53].mxu0 }
 0x534   : > { %v13146_v20 = vpop.f32.mrb[54].mxu0 }
 0x535   : > { %v13148_v14 = vpop.f32.mrb[55].mxu0 }
 0x536   : > { %v13150_v54 = vpop.f32.mrb[56].mxu0 }
 0x537   : > { %v13152_v16 = vpop.f32.mrb[57].mxu0 }
 0x538   : > { %v13154_v45 = vpop.f32.mrb[58].mxu0 }
 0x539   : > { %v13156_v48 = vpop.f32.mrb[59].mxu0 }
 0x53a   : > { %v13158_v4 = vpop.f32.mrb[60].mxu0 }
 0x53b   : > { %v13160_v60 = vpop.f32.mrb[61].mxu0 }
 0x53c   : > { %v13162_v53 = vpop.f32.mrb[62].mxu0 }
 0x53d   : > { %v13164_v7 = vpop.f32.mrb[63].mxu0 }
 0x5c4   : > { %v10219_v18 = vpop.f32.mrb[16].mxu1 }
 0x5c5   : > { %v7468_v62 = vmul.f32 %v10219_v18, %v13180_v8  ;;  %v7272_v50 = vpop.f32.mrb[17].mxu1 }
 0x5c6   : > { %v7467_v44 = vmul.f32 %v13180_v8, %v7272_v50 }
 0x5c7   : > { %v7504_v27 = vadd.f32 %v13186_v15, %v7468_v62 }
 0x5c8   : > { %v7503_v17 = vadd.f32 %v13186_v15, %v7467_v44  ;;  %v10222_v12 = vpop.f32.mrb[18].mxu1 }
 0x5c9   : > { %v7935_v24 = vadd.f32 %v7903_v28, %v7504_v27  ;;  %v7470_v40 = vmul.f32 %v10222_v12, %v13180_v8  ;;  %v7282_v46 = vpop.f32.mrb[19].mxu1  ;;  %v7874_v27 = vmul.f32 %v13118_v19, %v13169_v9 }
 0x5ca   : > { %v7934_v2 = vadd.f32 %v7902_v30, %v7503_v17  ;;  %v7469_v31 = vmul.f32 %v13180_v8, %v7282_v46  ;;  %v7909_v30 = vadd.f32 %v13175_v11, %v7872_v35  ;;  %v7908_v17 = vadd.f32 %v13175_v11, %v7871_v3 }
 0x5cb   : > { %v7967_v33 = vmax.f32 %v7935_v24, 0.0  ;;  %v7506_v37 = vadd.f32 %v13186_v15, %v7470_v40  ;;  %v7873_v24 = vmul.f32 %v13169_v9, %v13120_v1 }
 0x5cc   : > { %v7966_v39 = vmax.f32 %v7934_v2, 0.0  ;;  %v7505_v63 = vadd.f32 %v13186_v15, %v7469_v31  ;;  %v10225_v42 = vpop.f32.mrb[20].mxu1 }
 0x5cd   : > { %7999 = vst.msk [vmem:[%s13204_s19 + $0x8] sm:$0xff] %vm3955_vm3, %v7967_v33  ;;  %v7937_v23 = vadd.f32 %v7905_v34, %v7506_v37  ;;  %v7472_v43 = vmul.f32 %v10225_v42, %v13180_v8  ;;  %v7292_v0 = vpop.f32.mrb[21].mxu1  ;;  %v7876_v33 = vmul.f32 %v13122_v38, %v13169_v9  ;;  %v7910_v37 = vadd.f32 %v13175_v11, %v7873_v24 }
 0x5ce   : > { %7998 = vst.msk [vmem:[%s13204_s19] sm:$0xff] %vm3955_vm3, %v7966_v39  ;;  %v7936_v21 = vadd.f32 %v7904_v52, %v7505_v63  ;;  %v7471_v10 = vmul.f32 %v13180_v8, %v7292_v0  ;;  %v7911_v52 = vadd.f32 %v13175_v11, %v7874_v27  ;;  %v7875_v63 = vmul.f32 %v13169_v9, %v13124_v41 }
 0x5cf   : > { %v7969_v18 = vmax.f32 %v7937_v23, 0.0  ;;  %v7508_v28 = vadd.f32 %v13186_v15, %v7472_v43  ;;  %v7913_v35 = vadd.f32 %v13175_v11, %v7876_v33  ;;  %v7879_v24 = vmul.f32 %v13169_v9, %v13132_v36 }
 0x5d0   : > { %v7968_v62 = vmax.f32 %v7936_v21, 0.0  ;;  %v7507_v50 = vadd.f32 %v13186_v15, %v7471_v10  ;;  %v10228_v29 = vpop.f32.mrb[22].mxu1  ;;  %v7878_v10 = vmul.f32 %v13126_v22, %v13169_v9  ;;  %v7912_v3 = vadd.f32 %v13175_v11, %v7875_v63 }
 0x5d1   : > { %8001 = vst.msk [vmem:[%s13204_s19 + $0x18] sm:$0xff] %vm3955_vm3, %v7969_v18  ;;  %v7939_v55 = vadd.f32 %v7907_v56, %v7508_v28  ;;  %v7474_v44 = vmul.f32 %v10228_v29, %v13180_v8  ;;  %v7302_v47 = vpop.f32.mrb[23].mxu1  ;;  %v7877_v28 = vmul.f32 %v13169_v9, %v13128_v49  ;;  %v7916_v33 = vadd.f32 %v13175_v11, %v7879_v24 }
 0x5d2   : > { %8000 = vst.msk [vmem:[%s13204_s19 + $0x10] sm:$0xff] %vm3955_vm3, %v7968_v62  ;;  %v7938_v26 = vadd.f32 %v7906_v58, %v7507_v50  ;;  %v7473_v12 = vmul.f32 %v13180_v8, %v7302_v47 }
 0x5d3   : > { %v7971_v34 = vmax.f32 %v7939_v55, 0.0  ;;  %v7510_v40 = vadd.f32 %v13186_v15, %v7474_v44  ;;  %v7915_v44 = vadd.f32 %v13175_v11, %v7878_v10  ;;  %v7883_v10 = vmul.f32 %v13169_v9, %v13140_v6 }
 0x5d4   : > { %v7970_v46 = vmax.f32 %v7938_v26, 0.0  ;;  %v7509_v13 = vadd.f32 %v13186_v15, %v7473_v12  ;;  %v10231_v2 = vpop.f32.mrb[24].mxu1  ;;  %v7880_v26 = vmul.f32 %v13130_v5, %v13169_v9 }
 0x5d5   : > { %8003 = vst.msk [vmem:[%s13204_s19 + $0x28] sm:$0xff] %vm3955_vm3, %v7971_v34  ;;  %v7941_v19 = vadd.f32 %v7909_v30, %v7510_v40  ;;  %v7476_v31 = vmul.f32 %v10231_v2, %v13180_v8  ;;  %v7312_v51 = vpop.f32.mrb[25].mxu1 }
 0x5d6   : > { %8002 = vst.msk [vmem:[%s13204_s19 + $0x20] sm:$0xff] %vm3955_vm3, %v7970_v46  ;;  %v7940_v1 = vadd.f32 %v7908_v17, %v7509_v13  ;;  %v7475_v39 = vmul.f32 %v13180_v8, %v7312_v51  ;;  %v7914_v17 = vadd.f32 %v13175_v11, %v7877_v28  ;;  %v7882_v51 = vmul.f32 %v13134_v57, %v13169_v9 }
 0x5d7   : > { %v7973_v42 = vmax.f32 %v7941_v19, 0.0  ;;  %v7512_v23 = vadd.f32 %v13186_v15, %v7476_v31  ;;  %v7917_v19 = vadd.f32 %v13175_v11, %v7880_v26 }
 0x5d8   : > { %v7972_v56 = vmax.f32 %v7940_v1, 0.0  ;;  %v7511_v43 = vadd.f32 %v13186_v15, %v7475_v39  ;;  %v10234_v0 = vpop.f32.mrb[26].mxu1 }
 0x5d9   : > { %8005 = vst.msk [vmem:[%s13204_s19 + $0x38] sm:$0xff] %vm3955_vm3, %v7973_v42  ;;  %v7943_v38 = vadd.f32 %v7911_v52, %v7512_v23  ;;  %v7478_v21 = vmul.f32 %v10234_v0, %v13180_v8  ;;  %v7322_v58 = vpop.f32.mrb[27].mxu1 }
 0x5da   : > { %8004 = vst.msk [vmem:[%s13204_s19 + $0x30] sm:$0xff] %vm3955_vm3, %v7972_v56  ;;  %v7942_v41 = vadd.f32 %v7910_v37, %v7511_v43  ;;  %v7477_v18 = vmul.f32 %v13180_v8, %v7322_v58  ;;  %v7881_v37 = vmul.f32 %v13169_v9, %v13136_v59  ;;  %v7919_v43 = vadd.f32 %v13175_v11, %v7882_v51 }
 0x5db   : > { %v7975_v62 = vmax.f32 %v7943_v38, 0.0  ;;  %v7514_v50 = vadd.f32 %v13186_v15, %v7478_v21 }
 0x5dc   : > { %v7974_v29 = vmax.f32 %v7942_v41, 0.0  ;;  %v7513_v55 = vadd.f32 %v13186_v15, %v7477_v18  ;;  %v10237_v30 = vpop.f32.mrb[28].mxu1  ;;  %v7918_v21 = vadd.f32 %v13175_v11, %v7881_v37 }
 0x5dd   : > { %8007 = vst.msk [vmem:[%s13204_s19 + $0x48] sm:$0xff] %vm3955_vm3, %v7975_v62  ;;  %v7945_v22 = vadd.f32 %v7913_v35, %v7514_v50  ;;  %v7480_v47 = vmul.f32 %v10237_v30, %v13180_v8  ;;  %v7332_v27 = vpop.f32.mrb[29].mxu1  ;;  %v7884_v35 = vmul.f32 %v13138_v61, %v13169_v9  ;;  %v7886_v30 = vmul.f32 %v13142_v25, %v13169_v9 }
 0x5de   : > { %8006 = vst.msk [vmem:[%s13204_s19 + $0x40] sm:$0xff] %vm3955_vm3, %v7974_v29  ;;  %v7944_v49 = vadd.f32 %v7912_v3, %v7513_v55  ;;  %v7479_v12 = vmul.f32 %v13180_v8, %v7332_v27 }
 0x5df   : > { %v7977_v34 = vmax.f32 %v7945_v22, 0.0  ;;  %v7516_v40 = vadd.f32 %v13186_v15, %v7480_v47  ;;  %v7921_v50 = vadd.f32 %v13175_v11, %v7884_v35  ;;  %v7920_v22 = vadd.f32 %v13175_v11, %v7883_v10 }
 0x5e0   : > { %v7976_v46 = vmax.f32 %v7944_v49, 0.0  ;;  %v7515_v13 = vadd.f32 %v13186_v15, %v7479_v12  ;;  %v10240_v2 = vpop.f32.mrb[30].mxu1  ;;  %v7885_v47 = vmul.f32 %v13169_v9, %v13144_v32  ;;  %v7923_v24 = vadd.f32 %v13175_v11, %v7886_v30 }
 0x5e1   : > { %8009 = vst.msk [vmem:[%s13204_s19 + $0x58] sm:$0xff] %vm3955_vm3, %v7977_v34  ;;  %v7947_v5 = vadd.f32 %v7915_v44, %v7516_v40  ;;  %v7482_v52 = vmul.f32 %v10240_v2, %v13180_v8  ;;  %v7342_v31 = vpop.f32.mrb[31].mxu1 }
 0x5e2   : > { %8008 = vst.msk [vmem:[%s13204_s19 + $0x50] sm:$0xff] %vm3955_vm3, %v7976_v46  ;;  %v7946_v36 = vadd.f32 %v7914_v17, %v7515_v13  ;;  %v7481_v1 = vmul.f32 %v13180_v8, %v7342_v31  ;;  %v7888_v46 = vmul.f32 %v13146_v20, %v13169_v9  ;;  %v7922_v13 = vadd.f32 %v13175_v11, %v7885_v47 }
 0x5e3   : > { %v7979_v39 = vmax.f32 %v7947_v5, 0.0  ;;  %v7518_v63 = vadd.f32 %v13186_v15, %v7482_v52  ;;  %v7887_v5 = vmul.f32 %v13169_v9, %v13148_v14  ;;  %v7893_v47 = vmul.f32 %v13169_v9, %v13160_v60 }
 0x5e4   : > { %v7978_v42 = vmax.f32 %v7946_v36, 0.0  ;;  %v7517_v23 = vadd.f32 %v13186_v15, %v7481_v1  ;;  %v10243_v56 = vpop.f32.mrb[32].mxu1 }
 0x5e5   : > { %8011 = vst.msk [vmem:[%s13204_s19 + $0x68] sm:$0xff] %vm3955_vm3, %v7979_v39  ;;  %v7949_v57 = vadd.f32 %v7917_v19, %v7518_v63  ;;  %v7484_v0 = vmul.f32 %v10243_v56, %v13180_v8  ;;  %v7352_v38 = vpop.f32.mrb[33].mxu1  ;;  %v7890_v39 = vmul.f32 %v13150_v54, %v13169_v9  ;;  %v7924_v63 = vadd.f32 %v13175_v11, %v7887_v5 }
 0x5e6   : > { %8010 = vst.msk [vmem:[%s13204_s19 + $0x60] sm:$0xff] %vm3955_vm3, %v7978_v42  ;;  %v7948_v59 = vadd.f32 %v7916_v33, %v7517_v23  ;;  %v7483_v58 = vmul.f32 %v13180_v8, %v7352_v38  ;;  %v7925_v33 = vadd.f32 %v13175_v11, %v7888_v46  ;;  %v7889_v23 = vmul.f32 %v13169_v9, %v13152_v16 }
 0x5e7   : > { %v7981_v41 = vmax.f32 %v7949_v57, 0.0  ;;  %v7520_v3 = vadd.f32 %v13186_v15, %v7484_v0  ;;  %v7927_v35 = vadd.f32 %v13175_v11, %v7890_v39  ;;  %v7930_v46 = vadd.f32 %v13175_v11, %v7893_v47 }
 0x5e8   : > { %v7980_v18 = vmax.f32 %v7948_v59, 0.0  ;;  %v7519_v28 = vadd.f32 %v13186_v15, %v7483_v58  ;;  %v10246_v62 = vpop.f32.mrb[34].mxu1  ;;  %v7892_v58 = vmul.f32 %v13154_v45, %v13169_v9  ;;  %v7926_v10 = vadd.f32 %v13175_v11, %v7889_v23 }
 0x5e9   : > { %8013 = vst.msk [vmem:[%s13204_s19 + $0x78] sm:$0xff] %vm3955_vm3, %v7981_v41  ;;  %v7951_v61 = vadd.f32 %v7919_v43, %v7520_v3  ;;  %v7486_v29 = vmul.f32 %v10246_v62, %v13180_v8  ;;  %v7362_v55 = vpop.f32.mrb[35].mxu1  ;;  %v7891_v3 = vmul.f32 %v13169_v9, %v13156_v48 }
 0x5ea   : > { %8012 = vst.msk [vmem:[%s13204_s19 + $0x70] sm:$0xff] %vm3955_vm3, %v7980_v18  ;;  %v7950_v6 = vadd.f32 %v7918_v21, %v7519_v28  ;;  %v7485_v44 = vmul.f32 %v13180_v8, %v7362_v55 }
 0x5eb   : > { %v7983_v27 = vmax.f32 %v7951_v61, 0.0  ;;  %v7522_v26 = vadd.f32 %v13186_v15, %v7486_v29  ;;  %v7929_v29 = vadd.f32 %v13175_v11, %v7892_v58 }
 0x5ec   : > { %v7982_v49 = vmax.f32 %v7950_v6, 0.0  ;;  %v7521_v17 = vadd.f32 %v13186_v15, %v7485_v44  ;;  %v10249_v12 = vpop.f32.mrb[36].mxu1  ;;  %v7894_v6 = vmul.f32 %v13158_v4, %v13169_v9 }
 0x5ed   : > { %8015 = vst.msk [vmem:[%s13204_s19 + $0x88] sm:$0xff] %vm3955_vm3, %v7983_v27  ;;  %v7953_v25 = vadd.f32 %v7921_v50, %v7522_v26  ;;  %v7488_v34 = vmul.f32 %v10249_v12, %v13180_v8  ;;  %v7372_v40 = vpop.f32.mrb[37].mxu1 }
 0x5ee   : > { %8014 = vst.msk [vmem:[%s13204_s19 + $0x80] sm:$0xff] %vm3955_vm3, %v7982_v49  ;;  %v7952_v32 = vadd.f32 %v7920_v22, %v7521_v17  ;;  %v7487_v2 = vmul.f32 %v13180_v8, %v7372_v40  ;;  %v7928_v22 = vadd.f32 %v13175_v11, %v7891_v3  ;;  %v7896_v40 = vmul.f32 %v13162_v53, %v13169_v9 }
 0x5ef   : > { %v7985_v19 = vmax.f32 %v7953_v25, 0.0  ;;  %v7524_v52 = vadd.f32 %v13186_v15, %v7488_v34  ;;  %v7931_v25 = vadd.f32 %v13175_v11, %v7894_v6 }
 0x5f0   : > { %v7984_v31 = vmax.f32 %v7952_v32, 0.0  ;;  %v7523_v51 = vadd.f32 %v13186_v15, %v7487_v2  ;;  %v10252_v36 = vpop.f32.mrb[38].mxu1 }
 0x5f1   : > { %8017 = vst.msk [vmem:[%s13204_s19 + $0x98] sm:$0xff] %vm3955_vm3, %v7985_v19  ;;  %v7955_v20 = vadd.f32 %v7923_v24, %v7524_v52  ;;  %v7490_v1 = vmul.f32 %v10252_v36, %v13180_v8  ;;  %v7382_v37 = vpop.f32.mrb[39].mxu1 }
 0x5f2   : > { %8016 = vst.msk [vmem:[%s13204_s19 + $0x90] sm:$0xff] %vm3955_vm3, %v7984_v31  ;;  %v7954_v14 = vadd.f32 %v7922_v13, %v7523_v51  ;;  %v7489_v42 = vmul.f32 %v13180_v8, %v7382_v37  ;;  %v7895_v13 = vmul.f32 %v13169_v9, %v13164_v7  ;;  %v7933_v51 = vadd.f32 %v13175_v11, %v7896_v40 }
 0x5f3   : > { %v7987_v56 = vmax.f32 %v7955_v20, 0.0  ;;  %v7526_v57 = vadd.f32 %v13186_v15, %v7490_v1 }
 0x5f4   : > { %v7986_v43 = vmax.f32 %v7954_v14, 0.0  ;;  %v7525_v0 = vadd.f32 %v13186_v15, %v7489_v42  ;;  %v10255_v38 = vpop.f32.mrb[40].mxu1  ;;  %v7932_v9 = vadd.f32 %v13175_v11, %v7895_v13 }
 0x5f5   : > { %8019 = vst.msk [vmem:[%s13204_s19 + $0xa8] sm:$0xff] %vm3955_vm3, %v7987_v56  ;;  %v7957_v54 = vadd.f32 %v7925_v33, %v7526_v57  ;;  %v7492_v59 = vmul.f32 %v10255_v38, %v13180_v8  ;;  %v7392_v21 = vpop.f32.mrb[41].mxu1 }
 0x5f6   : > { %8018 = vst.msk [vmem:[%s13204_s19 + $0xa0] sm:$0xff] %vm3955_vm3, %v7986_v43  ;;  %v7956_v16 = vadd.f32 %v7924_v63, %v7525_v0  ;;  %v7491_v41 = vmul.f32 %v13180_v8, %v7392_v21 }
 0x5f7   : > { %v7989_v18 = vmax.f32 %v7957_v54, 0.0  ;;  %v7528_v28 = vadd.f32 %v13186_v15, %v7492_v59 }
 0x5f8   : > { %v7988_v62 = vmax.f32 %v7956_v16, 0.0  ;;  %v7527_v61 = vadd.f32 %v13186_v15, %v7491_v41  ;;  %v10258_v50 = vpop.f32.mrb[42].mxu1 }
 0x5f9   : > { %8021 = vst.msk [vmem:[%s13204_s19 + $0xb8] sm:$0xff] %vm3955_vm3, %v7989_v18  ;;  %v7959_v45 = vadd.f32 %v7927_v35, %v7528_v28  ;;  %v7494_v55 = vmul.f32 %v10258_v50, %v13180_v8  ;;  %v7402_v30 = vpop.f32.mrb[43].mxu1 }
 0x5fa   : > { %8020 = vst.msk [vmem:[%s13204_s19 + $0xb0] sm:$0xff] %vm3955_vm3, %v7988_v62  ;;  %v7958_v48 = vadd.f32 %v7926_v10, %v7527_v61  ;;  %v7493_v44 = vmul.f32 %v13180_v8, %v7402_v30 }
 0x5fb   : > { %v7991_v27 = vmax.f32 %v7959_v45, 0.0  ;;  %v7530_v26 = vadd.f32 %v13186_v15, %v7494_v55 }
 0x5fc   : > { %v7990_v49 = vmax.f32 %v7958_v48, 0.0  ;;  %v7529_v17 = vadd.f32 %v13186_v15, %v7493_v44  ;;  %v10261_v12 = vpop.f32.mrb[44].mxu1 }
 0x5fd   : > { %8023 = vst.msk [vmem:[%s13204_s19 + $0xc8] sm:$0xff] %vm3955_vm3, %v7991_v27  ;;  %v7961_v4 = vadd.f32 %v7929_v29, %v7530_v26  ;;  %v7496_v24 = vmul.f32 %v10261_v12, %v13180_v8  ;;  %v7412_v34 = vpop.f32.mrb[45].mxu1 }
 0x5fe   : > { %8022 = vst.msk [vmem:[%s13204_s19 + $0xc0] sm:$0xff] %vm3955_vm3, %v7990_v49  ;;  %v7960_v60 = vadd.f32 %v7928_v22, %v7529_v17  ;;  %v7495_v32 = vmul.f32 %v13180_v8, %v7412_v34 }
 0x5ff   : > { %v7993_v2 = vmax.f32 %v7961_v4, 0.0  ;;  %v7532_v5 = vadd.f32 %v13186_v15, %v7496_v24 }
 0x600   : > { %v7992_v19 = vmax.f32 %v7960_v60, 0.0  ;;  %v7531_v52 = vadd.f32 %v13186_v15, %v7495_v32  ;;  %v10264_v31 = vpop.f32.mrb[46].mxu1 }
 0x601   : > { %8025 = vst.msk [vmem:[%s13204_s19 + $0xd8] sm:$0xff] %vm3955_vm3, %v7993_v2  ;;  %v7963_v53 = vadd.f32 %v7931_v25, %v7532_v5  ;;  %v7498_v36 = vmul.f32 %v10264_v31, %v13180_v8  ;;  %v7422_v20 = vpop.f32.mrb[47].mxu1 }
 0x602   : > { %8024 = vst.msk [vmem:[%s13204_s19 + $0xd0] sm:$0xff] %vm3955_vm3, %v7992_v19  ;;  %v7962_v7 = vadd.f32 %v7930_v46, %v7531_v52  ;;  %v7497_v33 = vmul.f32 %v13180_v8, %v7422_v20 }
 0x603   : > { %v7995_v1 = vmax.f32 %v7963_v53, 0.0  ;;  %v7534_v37 = vadd.f32 %v13186_v15, %v7498_v36 }
 0x604   : > { %v7994_v39 = vmax.f32 %v7962_v7, 0.0  ;;  %v7533_v14 = vadd.f32 %v13186_v15, %v7497_v33 }
 0x605   : > { %8027 = vst.msk [vmem:[%s13204_s19 + $0xe8] sm:$0xff] %vm3955_vm3, %v7995_v1  ;;  %v7965_v63 = vadd.f32 %v7933_v51, %v7534_v37 }
 0x606   : > { %8026 = vst.msk [vmem:[%s13204_s19 + $0xe0] sm:$0xff] %vm3955_vm3, %v7994_v39  ;;  %v7964_v42 = vadd.f32 %v7932_v9, %v7533_v14 }
 0x607   : > { %v7997_v23 = vmax.f32 %v7965_v63, 0.0 }
 0x608   : > { %v7996_v56 = vmax.f32 %v7964_v42, 0.0 }
 0x609   : > { %8029 = vst.msk [vmem:[%s13204_s19 + $0xf8] sm:$0xff] %vm3955_vm3, %v7997_v23 }
 0x60a   : > { %8028 = vst.msk [vmem:[%s13204_s19 + $0xf0] sm:$0xff] %vm3955_vm3, %v7996_v56 }
 0x60b PF: > { %s17_s24 = sadd.s32 1, %s10844_s24  }
 0x60c   : > { %p14_p4 = scmp.ge.s32.totalorder %s17_s24, 4  }
 0x60e   :  { %16 = sbr.rel (!%p14_p4) target bundleno = 1 (0x1), region = 98 }

</bundles_post_ra>
